<compile_context>
chip_gen: v5e
topology: v5e:2x2
jax: 0.10.0
libtpu: 0.0.40
codegen_flags: <defaults>
</compile_context>

<pallas_src>
import functools

import jax
import jax.numpy as jnp
from jax.experimental import pallas as pl
from jax.experimental.pallas import tpu as pltpu


_WEIGHT_KEYS = ("w1", "wr1a", "wr1b", "wr2a", "wr2b", "w2", "wr3a", "wr3b")


def _leaky_relu(x, slope=0.01):
    # F.leaky_relu default negative_slope = 0.01; max form is 2 VALU ops.
    return jnp.maximum(x, slope * x)


def _gen_net_kernel(
    z_ref,
    w1_ref, b1_ref,
    wr1a_ref, br1a_ref, wr1b_ref, br1b_ref,
    wr2a_ref, br2a_ref, wr2b_ref, br2b_ref,
    w2_ref, b2_ref,
    wr3a_ref, br3a_ref, wr3b_ref, br3b_ref,
    var_ref,
    out_ref,
    *, outsize, n_sub,
):
    def linear(x_f32, w_ref, b_ref):
        # bf16 operands on the MXU, f32 accumulation, f32 bias add.
        return (
            jnp.dot(
                x_f32.astype(jnp.bfloat16),
                w_ref[...],
                preferred_element_type=jnp.float32,
            )
            + b_ref[...]
        )

    tb = z_ref.shape[0]
    rows = tb // n_sub
    var = var_ref[0, 0]  # scalar variance from SMEM

    # n_sub independent row sub-chains, all traced into the same basic block so
    # the LLO scheduler can interleave their MXU work (fills drain/epilogue
    # bubbles of the strictly sequential 8-matmul chain).
    for s in range(n_sub):
        r0 = s * rows
        z = z_ref[r0:r0 + rows, :]

        # x = leaky_relu(dense1(z))
        x = _leaky_relu(linear(z, w1_ref, b1_ref))
        # x = x + residual_block1(x)
        x = x + linear(_leaky_relu(linear(x, wr1a_ref, br1a_ref)), wr1b_ref, br1b_ref)
        # x = x + residual_block2(x)
        x = x + linear(_leaky_relu(linear(x, wr2a_ref, br2a_ref)), wr2b_ref, br2b_ref)
        # y = leaky_relu(dense2(x))
        y = _leaky_relu(linear(x, w2_ref, b2_ref))
        # y = y + residual_block3(y)
        y = y + linear(_leaky_relu(linear(y, wr3a_ref, br3a_ref)), wr3b_ref, br3b_ref)

        # out = concat([y, var_tile], dim=-1); both halves are lane-dense stores.
        out_ref[r0:r0 + rows, :outsize] = y
        out_ref[r0:r0 + rows, outsize:] = jnp.full(
            (rows, outsize), var, dtype=out_ref.dtype)


def _num_tensorcores_per_chip():
    """Best-effort TC-per-chip detection; perf heuristic only."""
    try:
        dev = jax.devices()[0]
        nc = getattr(dev, "num_cores", None)
        if nc:
            return int(nc)
        kind = str(getattr(dev, "device_kind", "")).lower()
        if "v7" in kind:
            return 2
    except Exception:
        pass
    return 1


def _choose_tiling(B, requested_tb, num_tc):
    """Pick (batch_tile, padded_batch). tb is a multiple of 8; padded batch is a
    multiple of tb.  1-TC chips may run a single grid step; multi-TC chips get
    >= num_tc steps with the step count rounded to a multiple of num_tc."""
    B8 = -(-B // 8) * 8
    tb = max(8, min((requested_tb // 8) * 8, B8))
    if num_tc >= 2 and B8 >= 8 * num_tc:
        tb = min(tb, max(8, (-(-B8 // num_tc) + 7) // 8 * 8))
    steps = -(-B8 // tb)
    if num_tc >= 2 and steps > 1 and steps % num_tc != 0:
        steps = -(-steps // num_tc) * num_tc
    return tb, steps * tb


def _choose_sub_tiles(tb, requested):
    """Largest n <= requested such that tb/n is a multiple of 8."""
    n = max(1, int(requested))
    while n > 1 and (tb % n != 0 or (tb // n) % 8 != 0):
        n -= 1
    return n


def prepare_params(params, weight_dtype=jnp.bfloat16):
    """One-time cast of matmul weights to the MXU operand dtype.  Do this at
    init/load time so the forward path does not re-read all f32 weights from
    HBM on every call."""
    out = dict(params)
    for k in _WEIGHT_KEYS:
        out[k] = params[k].astype(weight_dtype)
    return out


def generative_network_gaussian_fix(z, params, *, tb=512, sub_tiles=4):
    """Pallas implementation of GenerativeNetworkGaussianFix.forward.

    z: (B, insize) float32.  Returns (B, 2*outsize) float32.
    `params` should come from prepare_params() (bf16 weights); f32 weights are
    accepted and cast (at extra HBM cost).
    """
    B, insize = z.shape
    hidsize = params["w1"].shape[1]
    outsize = params["w2"].shape[1]

    num_tc = _num_tensorcores_per_chip()
    tb, B_pad = _choose_tiling(B, tb, num_tc)
    n_sub = _choose_sub_tiles(tb, sub_tiles)

    if B_pad != B:
        z = jnp.pad(z, ((0, B_pad - B), (0, 0)))

    wdt = jnp.bfloat16  # MXU operand dtype; astype is a no-op if already bf16.

    # (name, array, block_shape) in exact kernel argument order (minus var).
    weight_args = [
        ("w1", params["w1"].astype(wdt), (insize, hidsize)),
        ("b1", params["b1"], (1, hidsize)),
        ("wr1a", params["wr1a"].astype(wdt), (hidsize, hidsize)),
        ("br1a", params["br1a"], (1, hidsize)),
        ("wr1b", params["wr1b"].astype(wdt), (hidsize, hidsize)),
        ("br1b", params["br1b"], (1, hidsize)),
        ("wr2a", params["wr2a"].astype(wdt), (hidsize, hidsize)),
        ("br2a", params["br2a"], (1, hidsize)),
        ("wr2b", params["wr2b"].astype(wdt), (hidsize, hidsize)),
        ("br2b", params["br2b"], (1, hidsize)),
        ("w2", params["w2"].astype(wdt), (hidsize, outsize)),
        ("b2", params["b2"], (1, outsize)),
        ("wr3a", params["wr3a"].astype(wdt), (outsize, outsize)),
        ("br3a", params["br3a"], (1, outsize)),
        ("wr3b", params["wr3b"].astype(wdt), (outsize, outsize)),
        ("br3b", params["br3b"], (1, outsize)),
    ]

    in_specs = [pl.BlockSpec((tb, insize), lambda i: (i, 0))]
    # Grid-invariant weights/biases: single-buffered (index_map is constant).
    in_specs += [
        pl.BlockSpec(shape, lambda i: (0, 0), pipeline_mode=pl.Buffered(1))
        for _, _, shape in weight_args
    ]
    # Scalar variance parameter lives in SMEM.
    in_specs.append(pl.BlockSpec(memory_space=pltpu.MemorySpace.SMEM))

    out_spec = pl.BlockSpec((tb, 2 * outsize), lambda i: (i, 0))

    # VMEM budget: weights (single copy) + double-buffered z/out blocks +
    # live f32 intermediates of the interleaved sub-chains, with 25% headroom.
    feat_max = max(insize, hidsize, outsize)
    weight_bytes = sum(int(a.size) * a.dtype.itemsize for _, a, _ in weight_args)
    io_bytes = 2 * tb * insize * 4 + 2 * tb * 2 * outsize * 4
    live_bytes = 4 * tb * feat_max * 4
    vmem_limit = int(1.25 * (weight_bytes + io_bytes + live_bytes))
    vmem_limit = min(64 * 1024 * 1024, max(8 * 1024 * 1024, vmem_limit))

    # Advisory cost estimate for the XLA scheduler around the custom call.
    flops_per_row = 2 * (insize * hidsize + 4 * hidsize * hidsize
                         + hidsize * outsize + 2 * outsize * outsize)
    cost = pl.CostEstimate(
        flops=int(flops_per_row * B_pad),
        transcendentals=0,
        bytes_accessed=int(weight_bytes + B_pad * insize * 4
                           + B_pad * 2 * outsize * 4),
    )

    kernel = functools.partial(_gen_net_kernel, outsize=outsize, n_sub=n_sub)

    out = pl.pallas_call(
        kernel,
        out_shape=jax.ShapeDtypeStruct((B_pad, 2 * outsize), jnp.float32),
        grid_spec=pltpu.PrefetchScalarGridSpec(
            num_scalar_prefetch=0,
            grid=(B_pad // tb,),
            in_specs=in_specs,
            out_specs=out_spec,
        ),
        compiler_params=pltpu.CompilerParams(
            dimension_semantics=("parallel",),
            vmem_limit_bytes=int(vmem_limit),
        ),
        cost_estimate=cost,
    )(z, *[a for _, a, _ in weight_args], params["var"])

    return out[:B] if B_pad != B else out


def init_params(key, insize, hidsize, outsize):
    """Deterministic synthetic parameters (weights stored (in, out), f32)."""
    ks = jax.random.split(key, 16)

    def lin(kw, kb, fan_in, fan_out):
        bound = 1.0 / jnp.sqrt(fan_in)
        w = jax.random.uniform(kw, (fan_in, fan_out), jnp.float32, -bound, bound)
        b = jax.random.uniform(kb, (1, fan_out), jnp.float32, -bound, bound)
        return w, b

    p = {}
    p["w1"], p["b1"] = lin(ks[0], ks[1], insize, hidsize)
    p["wr1a"], p["br1a"] = lin(ks[2], ks[3], hidsize, hidsize)
    p["wr1b"], p["br1b"] = lin(ks[4], ks[5], hidsize, hidsize)
    p["wr2a"], p["br2a"] = lin(ks[6], ks[7], hidsize, hidsize)
    p["wr2b"], p["br2b"] = lin(ks[8], ks[9], hidsize, hidsize)
    p["w2"], p["b2"] = lin(ks[10], ks[11], hidsize, outsize)
    p["wr3a"], p["br3a"] = lin(ks[12], ks[13], outsize, outsize)
    p["wr3b"], p["br3b"] = lin(ks[14], ks[15], outsize, outsize)
    p["var"] = jnp.ones((1, 1), jnp.float32)  # var_single initialized to 1.0
    return p


def reference_forward(z, p):
    """Plain-JAX f32 reference replicating the PyTorch forward."""
    def lrelu(x):
        return jnp.where(x > 0, x, 0.01 * x)

    x = lrelu(z @ p["w1"] + p["b1"])
    x = x + (lrelu(x @ p["wr1a"] + p["br1a"]) @ p["wr1b"] + p["br1b"])
    x = x + (lrelu(x @ p["wr2a"] + p["br2a"]) @ p["wr2b"] + p["br2b"])
    y = lrelu(x @ p["w2"] + p["b2"])
    y = y + (lrelu(y @ p["wr3a"] + p["br3a"]) @ p["wr3b"] + p["br3b"])
    var_tile = jnp.broadcast_to(p["var"][0, 0], (z.shape[0], p["w2"].shape[1]))
    return jnp.concatenate([y, var_tile], axis=-1)


if __name__ == "__main__":
    # Feature dims lane-aligned (128); batch big enough for MXU-sized row
    # sub-tiles and (on multi-TC chips) >= 2 grid steps.
    B, INSIZE, HIDSIZE, OUTSIZE = 256, 128, 128, 128

    key = jax.random.PRNGKey(0)
    kz, kp = jax.random.split(key)
    z = jax.random.normal(kz, (B, INSIZE), jnp.float32)
    params_f32 = init_params(kp, INSIZE, HIDSIZE, OUTSIZE)
    params_dev = prepare_params(params_f32)   # one-time bf16 weight cast

    out = generative_network_gaussian_fix(z, params_dev, tb=512, sub_tiles=4)
    out = jax.block_until_ready(out)

    ref = reference_forward(z, params_f32)
    assert out.shape == (B, 2 * OUTSIZE)
    # bf16 MXU operands vs f32 reference -> loosened tolerance.
    max_err = float(jnp.max(jnp.abs(out - ref)))
    assert jnp.allclose(out, ref, atol=5e-2, rtol=5e-2), (
        f"mismatch vs reference (max abs err {max_err})"
    )

    print("KERNEL_OK")
</pallas_src>

<mosaic_0001>
module attributes {stable_mosaic.version = 11 : i64} {
  func.func @_gen_net_kernel(%arg0: i32, %arg1: memref<256x128xf32, #tpu.memory_space<vmem>>, %arg2: memref<128x128xbf16, #tpu.memory_space<vmem>>, %arg3: memref<1x128xf32, #tpu.memory_space<vmem>>, %arg4: memref<128x128xbf16, #tpu.memory_space<vmem>>, %arg5: memref<1x128xf32, #tpu.memory_space<vmem>>, %arg6: memref<128x128xbf16, #tpu.memory_space<vmem>>, %arg7: memref<1x128xf32, #tpu.memory_space<vmem>>, %arg8: memref<128x128xbf16, #tpu.memory_space<vmem>>, %arg9: memref<1x128xf32, #tpu.memory_space<vmem>>, %arg10: memref<128x128xbf16, #tpu.memory_space<vmem>>, %arg11: memref<1x128xf32, #tpu.memory_space<vmem>>, %arg12: memref<128x128xbf16, #tpu.memory_space<vmem>>, %arg13: memref<1x128xf32, #tpu.memory_space<vmem>>, %arg14: memref<128x128xbf16, #tpu.memory_space<vmem>>, %arg15: memref<1x128xf32, #tpu.memory_space<vmem>>, %arg16: memref<128x128xbf16, #tpu.memory_space<vmem>>, %arg17: memref<1x128xf32, #tpu.memory_space<vmem>>, %arg18: memref<1x1xf32, #tpu.memory_space<smem>>, %arg19: memref<256x256xf32, #tpu.memory_space<vmem>>) attributes {dimension_semantics = [#tpu.dimension_semantics<parallel>], iteration_bounds = array<i64: 1>, scalar_prefetch = 0 : i64, scratch_operands = 0 : i64, tpu.core_type = #tpu.core_type<tc>, window_params = [{transform_indices = @transform_0, window_bounds = array<i64: 256, 128>}, {pipeline_mode = #tpu.pipeline_mode<synchronous>, transform_indices = @transform_1, window_bounds = array<i64: 128, 128>}, {pipeline_mode = #tpu.pipeline_mode<synchronous>, transform_indices = @transform_2, window_bounds = array<i64: 1, 128>}, {pipeline_mode = #tpu.pipeline_mode<synchronous>, transform_indices = @transform_3, window_bounds = array<i64: 128, 128>}, {pipeline_mode = #tpu.pipeline_mode<synchronous>, transform_indices = @transform_4, window_bounds = array<i64: 1, 128>}, {pipeline_mode = #tpu.pipeline_mode<synchronous>, transform_indices = @transform_5, window_bounds = array<i64: 128, 128>}, {pipeline_mode = #tpu.pipeline_mode<synchronous>, transform_indices = @transform_6, window_bounds = array<i64: 1, 128>}, {pipeline_mode = #tpu.pipeline_mode<synchronous>, transform_indices = @transform_7, window_bounds = array<i64: 128, 128>}, {pipeline_mode = #tpu.pipeline_mode<synchronous>, transform_indices = @transform_8, window_bounds = array<i64: 1, 128>}, {pipeline_mode = #tpu.pipeline_mode<synchronous>, transform_indices = @transform_9, window_bounds = array<i64: 128, 128>}, {pipeline_mode = #tpu.pipeline_mode<synchronous>, transform_indices = @transform_10, window_bounds = array<i64: 1, 128>}, {pipeline_mode = #tpu.pipeline_mode<synchronous>, transform_indices = @transform_11, window_bounds = array<i64: 128, 128>}, {pipeline_mode = #tpu.pipeline_mode<synchronous>, transform_indices = @transform_12, window_bounds = array<i64: 1, 128>}, {pipeline_mode = #tpu.pipeline_mode<synchronous>, transform_indices = @transform_13, window_bounds = array<i64: 128, 128>}, {pipeline_mode = #tpu.pipeline_mode<synchronous>, transform_indices = @transform_14, window_bounds = array<i64: 1, 128>}, {pipeline_mode = #tpu.pipeline_mode<synchronous>, transform_indices = @transform_15, window_bounds = array<i64: 128, 128>}, {pipeline_mode = #tpu.pipeline_mode<synchronous>, transform_indices = @transform_16, window_bounds = array<i64: 1, 128>}, {transform_indices = @transform_17, window_bounds = array<i64: 1, 1>}, {transform_indices = @transform_18, window_bounds = array<i64: 256, 256>}]} {
    %c0 = arith.constant 0 : index
    %c0_0 = arith.constant 0 : index
    %0 = memref.load %arg18[%c0, %c0_0] : memref<1x1xf32, #tpu.memory_space<smem>>
    %c0_1 = arith.constant 0 : index
    %c0_2 = arith.constant 0 : index
    %1 = vector.load %arg1[%c0_1, %c0_2] : memref<256x128xf32, #tpu.memory_space<vmem>>, vector<64x128xf32>
    %2 = arith.truncf %1 : vector<64x128xf32> to vector<64x128xbf16>
    %c0_3 = arith.constant 0 : index
    %c0_4 = arith.constant 0 : index
    %3 = vector.load %arg2[%c0_3, %c0_4] : memref<128x128xbf16, #tpu.memory_space<vmem>>, vector<128x128xbf16>
    %cst = arith.constant dense<0.000000e+00> : vector<64x128xf32>
    %4 = tpu.matmul %2, %3, %cst {dimension_numbers = #tpu.dot_dimension_numbers<[1], [0], [0], [1], [0, 0, 1, 1], [], []>} : vector<64x128xbf16>, vector<128x128xbf16>, vector<64x128xf32> -> vector<64x128xf32>
    %c0_5 = arith.constant 0 : index
    %c0_6 = arith.constant 0 : index
    %5 = vector.load %arg3[%c0_5, %c0_6] : memref<1x128xf32, #tpu.memory_space<vmem>>, vector<1x128xf32>
    %6 = vector.broadcast %5 : vector<1x128xf32> to vector<64x128xf32>
    %7 = arith.addf %4, %6 : vector<64x128xf32>
    %cst_7 = arith.constant 0.00999999977 : f32
    %8 = vector.broadcast %cst_7 : f32 to vector<64x128xf32>
    %9 = arith.mulf %8, %7 : vector<64x128xf32>
    %10 = arith.maximumf %7, %9 : vector<64x128xf32>
    %11 = arith.truncf %10 : vector<64x128xf32> to vector<64x128xbf16>
    %c0_8 = arith.constant 0 : index
    %c0_9 = arith.constant 0 : index
    %12 = vector.load %arg4[%c0_8, %c0_9] : memref<128x128xbf16, #tpu.memory_space<vmem>>, vector<128x128xbf16>
    %cst_10 = arith.constant dense<0.000000e+00> : vector<64x128xf32>
    %13 = tpu.matmul %11, %12, %cst_10 {dimension_numbers = #tpu.dot_dimension_numbers<[1], [0], [0], [1], [0, 0, 1, 1], [], []>} : vector<64x128xbf16>, vector<128x128xbf16>, vector<64x128xf32> -> vector<64x128xf32>
    %c0_11 = arith.constant 0 : index
    %c0_12 = arith.constant 0 : index
    %14 = vector.load %arg5[%c0_11, %c0_12] : memref<1x128xf32, #tpu.memory_space<vmem>>, vector<1x128xf32>
    %15 = vector.broadcast %14 : vector<1x128xf32> to vector<64x128xf32>
    %16 = arith.addf %13, %15 : vector<64x128xf32>
    %cst_13 = arith.constant 0.00999999977 : f32
    %17 = vector.broadcast %cst_13 : f32 to vector<64x128xf32>
    %18 = arith.mulf %17, %16 : vector<64x128xf32>
    %19 = arith.maximumf %16, %18 : vector<64x128xf32>
    %20 = arith.truncf %19 : vector<64x128xf32> to vector<64x128xbf16>
    %c0_14 = arith.constant 0 : index
    %c0_15 = arith.constant 0 : index
    %21 = vector.load %arg6[%c0_14, %c0_15] : memref<128x128xbf16, #tpu.memory_space<vmem>>, vector<128x128xbf16>
    %cst_16 = arith.constant dense<0.000000e+00> : vector<64x128xf32>
    %22 = tpu.matmul %20, %21, %cst_16 {dimension_numbers = #tpu.dot_dimension_numbers<[1], [0], [0], [1], [0, 0, 1, 1], [], []>} : vector<64x128xbf16>, vector<128x128xbf16>, vector<64x128xf32> -> vector<64x128xf32>
    %c0_17 = arith.constant 0 : index
    %c0_18 = arith.constant 0 : index
    %23 = vector.load %arg7[%c0_17, %c0_18] : memref<1x128xf32, #tpu.memory_space<vmem>>, vector<1x128xf32>
    %24 = vector.broadcast %23 : vector<1x128xf32> to vector<64x128xf32>
    %25 = arith.addf %22, %24 : vector<64x128xf32>
    %26 = arith.addf %10, %25 : vector<64x128xf32>
    %27 = arith.truncf %26 : vector<64x128xf32> to vector<64x128xbf16>
    %c0_19 = arith.constant 0 : index
    %c0_20 = arith.constant 0 : index
    %28 = vector.load %arg8[%c0_19, %c0_20] : memref<128x128xbf16, #tpu.memory_space<vmem>>, vector<128x128xbf16>
    %cst_21 = arith.constant dense<0.000000e+00> : vector<64x128xf32>
    %29 = tpu.matmul %27, %28, %cst_21 {dimension_numbers = #tpu.dot_dimension_numbers<[1], [0], [0], [1], [0, 0, 1, 1], [], []>} : vector<64x128xbf16>, vector<128x128xbf16>, vector<64x128xf32> -> vector<64x128xf32>
    %c0_22 = arith.constant 0 : index
    %c0_23 = arith.constant 0 : index
    %30 = vector.load %arg9[%c0_22, %c0_23] : memref<1x128xf32, #tpu.memory_space<vmem>>, vector<1x128xf32>
    %31 = vector.broadcast %30 : vector<1x128xf32> to vector<64x128xf32>
    %32 = arith.addf %29, %31 : vector<64x128xf32>
    %cst_24 = arith.constant 0.00999999977 : f32
    %33 = vector.broadcast %cst_24 : f32 to vector<64x128xf32>
    %34 = arith.mulf %33, %32 : vector<64x128xf32>
    %35 = arith.maximumf %32, %34 : vector<64x128xf32>
    %36 = arith.truncf %35 : vector<64x128xf32> to vector<64x128xbf16>
    %c0_25 = arith.constant 0 : index
    %c0_26 = arith.constant 0 : index
    %37 = vector.load %arg10[%c0_25, %c0_26] : memref<128x128xbf16, #tpu.memory_space<vmem>>, vector<128x128xbf16>
    %cst_27 = arith.constant dense<0.000000e+00> : vector<64x128xf32>
    %38 = tpu.matmul %36, %37, %cst_27 {dimension_numbers = #tpu.dot_dimension_numbers<[1], [0], [0], [1], [0, 0, 1, 1], [], []>} : vector<64x128xbf16>, vector<128x128xbf16>, vector<64x128xf32> -> vector<64x128xf32>
    %c0_28 = arith.constant 0 : index
    %c0_29 = arith.constant 0 : index
    %39 = vector.load %arg11[%c0_28, %c0_29] : memref<1x128xf32, #tpu.memory_space<vmem>>, vector<1x128xf32>
    %40 = vector.broadcast %39 : vector<1x128xf32> to vector<64x128xf32>
    %41 = arith.addf %38, %40 : vector<64x128xf32>
    %42 = arith.addf %26, %41 : vector<64x128xf32>
    %43 = arith.truncf %42 : vector<64x128xf32> to vector<64x128xbf16>
    %c0_30 = arith.constant 0 : index
    %c0_31 = arith.constant 0 : index
    %44 = vector.load %arg12[%c0_30, %c0_31] : memref<128x128xbf16, #tpu.memory_space<vmem>>, vector<128x128xbf16>
    %cst_32 = arith.constant dense<0.000000e+00> : vector<64x128xf32>
    %45 = tpu.matmul %43, %44, %cst_32 {dimension_numbers = #tpu.dot_dimension_numbers<[1], [0], [0], [1], [0, 0, 1, 1], [], []>} : vector<64x128xbf16>, vector<128x128xbf16>, vector<64x128xf32> -> vector<64x128xf32>
    %c0_33 = arith.constant 0 : index
    %c0_34 = arith.constant 0 : index
    %46 = vector.load %arg13[%c0_33, %c0_34] : memref<1x128xf32, #tpu.memory_space<vmem>>, vector<1x128xf32>
    %47 = vector.broadcast %46 : vector<1x128xf32> to vector<64x128xf32>
    %48 = arith.addf %45, %47 : vector<64x128xf32>
    %cst_35 = arith.constant 0.00999999977 : f32
    %49 = vector.broadcast %cst_35 : f32 to vector<64x128xf32>
    %50 = arith.mulf %49, %48 : vector<64x128xf32>
    %51 = arith.maximumf %48, %50 : vector<64x128xf32>
    %52 = arith.truncf %51 : vector<64x128xf32> to vector<64x128xbf16>
    %c0_36 = arith.constant 0 : index
    %c0_37 = arith.constant 0 : index
    %53 = vector.load %arg14[%c0_36, %c0_37] : memref<128x128xbf16, #tpu.memory_space<vmem>>, vector<128x128xbf16>
    %cst_38 = arith.constant dense<0.000000e+00> : vector<64x128xf32>
    %54 = tpu.matmul %52, %53, %cst_38 {dimension_numbers = #tpu.dot_dimension_numbers<[1], [0], [0], [1], [0, 0, 1, 1], [], []>} : vector<64x128xbf16>, vector<128x128xbf16>, vector<64x128xf32> -> vector<64x128xf32>
    %c0_39 = arith.constant 0 : index
    %c0_40 = arith.constant 0 : index
    %55 = vector.load %arg15[%c0_39, %c0_40] : memref<1x128xf32, #tpu.memory_space<vmem>>, vector<1x128xf32>
    %56 = vector.broadcast %55 : vector<1x128xf32> to vector<64x128xf32>
    %57 = arith.addf %54, %56 : vector<64x128xf32>
    %cst_41 = arith.constant 0.00999999977 : f32
    %58 = vector.broadcast %cst_41 : f32 to vector<64x128xf32>
    %59 = arith.mulf %58, %57 : vector<64x128xf32>
    %60 = arith.maximumf %57, %59 : vector<64x128xf32>
    %61 = arith.truncf %60 : vector<64x128xf32> to vector<64x128xbf16>
    %c0_42 = arith.constant 0 : index
    %c0_43 = arith.constant 0 : index
    %62 = vector.load %arg16[%c0_42, %c0_43] : memref<128x128xbf16, #tpu.memory_space<vmem>>, vector<128x128xbf16>
    %cst_44 = arith.constant dense<0.000000e+00> : vector<64x128xf32>
    %63 = tpu.matmul %61, %62, %cst_44 {dimension_numbers = #tpu.dot_dimension_numbers<[1], [0], [0], [1], [0, 0, 1, 1], [], []>} : vector<64x128xbf16>, vector<128x128xbf16>, vector<64x128xf32> -> vector<64x128xf32>
    %c0_45 = arith.constant 0 : index
    %c0_46 = arith.constant 0 : index
    %64 = vector.load %arg17[%c0_45, %c0_46] : memref<1x128xf32, #tpu.memory_space<vmem>>, vector<1x128xf32>
    %65 = vector.broadcast %64 : vector<1x128xf32> to vector<64x128xf32>
    %66 = arith.addf %63, %65 : vector<64x128xf32>
    %67 = arith.addf %51, %66 : vector<64x128xf32>
    %c0_47 = arith.constant 0 : index
    %c0_48 = arith.constant 0 : index
    %68 = vector.load %arg19[%c0_47, %c0_48] : memref<256x256xf32, #tpu.memory_space<vmem>>, vector<64x128xf32>
    tpu.vector_store %arg19[%c0_47, %c0_48], %67 {strides = array<i32>} : memref<256x256xf32, #tpu.memory_space<vmem>>, vector<64x128xf32>,
    %69 = vector.broadcast %0 : f32 to vector<64x128xf32>
    %c0_49 = arith.constant 0 : index
    %c128 = arith.constant 128 : index
    %70 = vector.load %arg19[%c0_49, %c128] : memref<256x256xf32, #tpu.memory_space<vmem>>, vector<64x128xf32>
    tpu.vector_store %arg19[%c0_49, %c128], %69 {strides = array<i32>} : memref<256x256xf32, #tpu.memory_space<vmem>>, vector<64x128xf32>,
    %c64 = arith.constant 64 : index
    %c0_50 = arith.constant 0 : index
    %71 = vector.load %arg1[%c64, %c0_50] : memref<256x128xf32, #tpu.memory_space<vmem>>, vector<64x128xf32>
    %72 = arith.truncf %71 : vector<64x128xf32> to vector<64x128xbf16>
    %c0_51 = arith.constant 0 : index
    %c0_52 = arith.constant 0 : index
    %73 = vector.load %arg2[%c0_51, %c0_52] : memref<128x128xbf16, #tpu.memory_space<vmem>>, vector<128x128xbf16>
    %cst_53 = arith.constant dense<0.000000e+00> : vector<64x128xf32>
    %74 = tpu.matmul %72, %73, %cst_53 {dimension_numbers = #tpu.dot_dimension_numbers<[1], [0], [0], [1], [0, 0, 1, 1], [], []>} : vector<64x128xbf16>, vector<128x128xbf16>, vector<64x128xf32> -> vector<64x128xf32>
    %c0_54 = arith.constant 0 : index
    %c0_55 = arith.constant 0 : index
    %75 = vector.load %arg3[%c0_54, %c0_55] : memref<1x128xf32, #tpu.memory_space<vmem>>, vector<1x128xf32>
    %76 = vector.broadcast %75 : vector<1x128xf32> to vector<64x128xf32>
    %77 = arith.addf %74, %76 : vector<64x128xf32>
    %cst_56 = arith.constant 0.00999999977 : f32
    %78 = vector.broadcast %cst_56 : f32 to vector<64x128xf32>
    %79 = arith.mulf %78, %77 : vector<64x128xf32>
    %80 = arith.maximumf %77, %79 : vector<64x128xf32>
    %81 = arith.truncf %80 : vector<64x128xf32> to vector<64x128xbf16>
    %c0_57 = arith.constant 0 : index
    %c0_58 = arith.constant 0 : index
    %82 = vector.load %arg4[%c0_57, %c0_58] : memref<128x128xbf16, #tpu.memory_space<vmem>>, vector<128x128xbf16>
    %cst_59 = arith.constant dense<0.000000e+00> : vector<64x128xf32>
    %83 = tpu.matmul %81, %82, %cst_59 {dimension_numbers = #tpu.dot_dimension_numbers<[1], [0], [0], [1], [0, 0, 1, 1], [], []>} : vector<64x128xbf16>, vector<128x128xbf16>, vector<64x128xf32> -> vector<64x128xf32>
    %c0_60 = arith.constant 0 : index
    %c0_61 = arith.constant 0 : index
    %84 = vector.load %arg5[%c0_60, %c0_61] : memref<1x128xf32, #tpu.memory_space<vmem>>, vector<1x128xf32>
    %85 = vector.broadcast %84 : vector<1x128xf32> to vector<64x128xf32>
    %86 = arith.addf %83, %85 : vector<64x128xf32>
    %cst_62 = arith.constant 0.00999999977 : f32
    %87 = vector.broadcast %cst_62 : f32 to vector<64x128xf32>
    %88 = arith.mulf %87, %86 : vector<64x128xf32>
    %89 = arith.maximumf %86, %88 : vector<64x128xf32>
    %90 = arith.truncf %89 : vector<64x128xf32> to vector<64x128xbf16>
    %c0_63 = arith.constant 0 : index
    %c0_64 = arith.constant 0 : index
    %91 = vector.load %arg6[%c0_63, %c0_64] : memref<128x128xbf16, #tpu.memory_space<vmem>>, vector<128x128xbf16>
    %cst_65 = arith.constant dense<0.000000e+00> : vector<64x128xf32>
    %92 = tpu.matmul %90, %91, %cst_65 {dimension_numbers = #tpu.dot_dimension_numbers<[1], [0], [0], [1], [0, 0, 1, 1], [], []>} : vector<64x128xbf16>, vector<128x128xbf16>, vector<64x128xf32> -> vector<64x128xf32>
    %c0_66 = arith.constant 0 : index
    %c0_67 = arith.constant 0 : index
    %93 = vector.load %arg7[%c0_66, %c0_67] : memref<1x128xf32, #tpu.memory_space<vmem>>, vector<1x128xf32>
    %94 = vector.broadcast %93 : vector<1x128xf32> to vector<64x128xf32>
    %95 = arith.addf %92, %94 : vector<64x128xf32>
    %96 = arith.addf %80, %95 : vector<64x128xf32>
    %97 = arith.truncf %96 : vector<64x128xf32> to vector<64x128xbf16>
    %c0_68 = arith.constant 0 : index
    %c0_69 = arith.constant 0 : index
    %98 = vector.load %arg8[%c0_68, %c0_69] : memref<128x128xbf16, #tpu.memory_space<vmem>>, vector<128x128xbf16>
    %cst_70 = arith.constant dense<0.000000e+00> : vector<64x128xf32>
    %99 = tpu.matmul %97, %98, %cst_70 {dimension_numbers = #tpu.dot_dimension_numbers<[1], [0], [0], [1], [0, 0, 1, 1], [], []>} : vector<64x128xbf16>, vector<128x128xbf16>, vector<64x128xf32> -> vector<64x128xf32>
    %c0_71 = arith.constant 0 : index
    %c0_72 = arith.constant 0 : index
    %100 = vector.load %arg9[%c0_71, %c0_72] : memref<1x128xf32, #tpu.memory_space<vmem>>, vector<1x128xf32>
    %101 = vector.broadcast %100 : vector<1x128xf32> to vector<64x128xf32>
    %102 = arith.addf %99, %101 : vector<64x128xf32>
    %cst_73 = arith.constant 0.00999999977 : f32
    %103 = vector.broadcast %cst_73 : f32 to vector<64x128xf32>
    %104 = arith.mulf %103, %102 : vector<64x128xf32>
    %105 = arith.maximumf %102, %104 : vector<64x128xf32>
    %106 = arith.truncf %105 : vector<64x128xf32> to vector<64x128xbf16>
    %c0_74 = arith.constant 0 : index
    %c0_75 = arith.constant 0 : index
    %107 = vector.load %arg10[%c0_74, %c0_75] : memref<128x128xbf16, #tpu.memory_space<vmem>>, vector<128x128xbf16>
    %cst_76 = arith.constant dense<0.000000e+00> : vector<64x128xf32>
    %108 = tpu.matmul %106, %107, %cst_76 {dimension_numbers = #tpu.dot_dimension_numbers<[1], [0], [0], [1], [0, 0, 1, 1], [], []>} : vector<64x128xbf16>, vector<128x128xbf16>, vector<64x128xf32> -> vector<64x128xf32>
    %c0_77 = arith.constant 0 : index
    %c0_78 = arith.constant 0 : index
    %109 = vector.load %arg11[%c0_77, %c0_78] : memref<1x128xf32, #tpu.memory_space<vmem>>, vector<1x128xf32>
    %110 = vector.broadcast %109 : vector<1x128xf32> to vector<64x128xf32>
    %111 = arith.addf %108, %110 : vector<64x128xf32>
    %112 = arith.addf %96, %111 : vector<64x128xf32>
    %113 = arith.truncf %112 : vector<64x128xf32> to vector<64x128xbf16>
    %c0_79 = arith.constant 0 : index
    %c0_80 = arith.constant 0 : index
    %114 = vector.load %arg12[%c0_79, %c0_80] : memref<128x128xbf16, #tpu.memory_space<vmem>>, vector<128x128xbf16>
    %cst_81 = arith.constant dense<0.000000e+00> : vector<64x128xf32>
    %115 = tpu.matmul %113, %114, %cst_81 {dimension_numbers = #tpu.dot_dimension_numbers<[1], [0], [0], [1], [0, 0, 1, 1], [], []>} : vector<64x128xbf16>, vector<128x128xbf16>, vector<64x128xf32> -> vector<64x128xf32>
    %c0_82 = arith.constant 0 : index
    %c0_83 = arith.constant 0 : index
    %116 = vector.load %arg13[%c0_82, %c0_83] : memref<1x128xf32, #tpu.memory_space<vmem>>, vector<1x128xf32>
    %117 = vector.broadcast %116 : vector<1x128xf32> to vector<64x128xf32>
    %118 = arith.addf %115, %117 : vector<64x128xf32>
    %cst_84 = arith.constant 0.00999999977 : f32
    %119 = vector.broadcast %cst_84 : f32 to vector<64x128xf32>
    %120 = arith.mulf %119, %118 : vector<64x128xf32>
    %121 = arith.maximumf %118, %120 : vector<64x128xf32>
    %122 = arith.truncf %121 : vector<64x128xf32> to vector<64x128xbf16>
    %c0_85 = arith.constant 0 : index
    %c0_86 = arith.constant 0 : index
    %123 = vector.load %arg14[%c0_85, %c0_86] : memref<128x128xbf16, #tpu.memory_space<vmem>>, vector<128x128xbf16>
    %cst_87 = arith.constant dense<0.000000e+00> : vector<64x128xf32>
    %124 = tpu.matmul %122, %123, %cst_87 {dimension_numbers = #tpu.dot_dimension_numbers<[1], [0], [0], [1], [0, 0, 1, 1], [], []>} : vector<64x128xbf16>, vector<128x128xbf16>, vector<64x128xf32> -> vector<64x128xf32>
    %c0_88 = arith.constant 0 : index
    %c0_89 = arith.constant 0 : index
    %125 = vector.load %arg15[%c0_88, %c0_89] : memref<1x128xf32, #tpu.memory_space<vmem>>, vector<1x128xf32>
    %126 = vector.broadcast %125 : vector<1x128xf32> to vector<64x128xf32>
    %127 = arith.addf %124, %126 : vector<64x128xf32>
    %cst_90 = arith.constant 0.00999999977 : f32
    %128 = vector.broadcast %cst_90 : f32 to vector<64x128xf32>
    %129 = arith.mulf %128, %127 : vector<64x128xf32>
    %130 = arith.maximumf %127, %129 : vector<64x128xf32>
    %131 = arith.truncf %130 : vector<64x128xf32> to vector<64x128xbf16>
    %c0_91 = arith.constant 0 : index
    %c0_92 = arith.constant 0 : index
    %132 = vector.load %arg16[%c0_91, %c0_92] : memref<128x128xbf16, #tpu.memory_space<vmem>>, vector<128x128xbf16>
    %cst_93 = arith.constant dense<0.000000e+00> : vector<64x128xf32>
    %133 = tpu.matmul %131, %132, %cst_93 {dimension_numbers = #tpu.dot_dimension_numbers<[1], [0], [0], [1], [0, 0, 1, 1], [], []>} : vector<64x128xbf16>, vector<128x128xbf16>, vector<64x128xf32> -> vector<64x128xf32>
    %c0_94 = arith.constant 0 : index
    %c0_95 = arith.constant 0 : index
    %134 = vector.load %arg17[%c0_94, %c0_95] : memref<1x128xf32, #tpu.memory_space<vmem>>, vector<1x128xf32>
    %135 = vector.broadcast %134 : vector<1x128xf32> to vector<64x128xf32>
    %136 = arith.addf %133, %135 : vector<64x128xf32>
    %137 = arith.addf %121, %136 : vector<64x128xf32>
    %c64_96 = arith.constant 64 : index
    %c0_97 = arith.constant 0 : index
    %138 = vector.load %arg19[%c64_96, %c0_97] : memref<256x256xf32, #tpu.memory_space<vmem>>, vector<64x128xf32>
    tpu.vector_store %arg19[%c64_96, %c0_97], %137 {strides = array<i32>} : memref<256x256xf32, #tpu.memory_space<vmem>>, vector<64x128xf32>,
    %139 = vector.broadcast %0 : f32 to vector<64x128xf32>
    %c64_98 = arith.constant 64 : index
    %c128_99 = arith.constant 128 : index
    %140 = vector.load %arg19[%c64_98, %c128_99] : memref<256x256xf32, #tpu.memory_space<vmem>>, vector<64x128xf32>
    tpu.vector_store %arg19[%c64_98, %c128_99], %139 {strides = array<i32>} : memref<256x256xf32, #tpu.memory_space<vmem>>, vector<64x128xf32>,
    %c128_100 = arith.constant 128 : index
    %c0_101 = arith.constant 0 : index
    %141 = vector.load %arg1[%c128_100, %c0_101] : memref<256x128xf32, #tpu.memory_space<vmem>>, vector<64x128xf32>
    %142 = arith.truncf %141 : vector<64x128xf32> to vector<64x128xbf16>
    %c0_102 = arith.constant 0 : index
    %c0_103 = arith.constant 0 : index
    %143 = vector.load %arg2[%c0_102, %c0_103] : memref<128x128xbf16, #tpu.memory_space<vmem>>, vector<128x128xbf16>
    %cst_104 = arith.constant dense<0.000000e+00> : vector<64x128xf32>
    %144 = tpu.matmul %142, %143, %cst_104 {dimension_numbers = #tpu.dot_dimension_numbers<[1], [0], [0], [1], [0, 0, 1, 1], [], []>} : vector<64x128xbf16>, vector<128x128xbf16>, vector<64x128xf32> -> vector<64x128xf32>
    %c0_105 = arith.constant 0 : index
    %c0_106 = arith.constant 0 : index
    %145 = vector.load %arg3[%c0_105, %c0_106] : memref<1x128xf32, #tpu.memory_space<vmem>>, vector<1x128xf32>
    %146 = vector.broadcast %145 : vector<1x128xf32> to vector<64x128xf32>
    %147 = arith.addf %144, %146 : vector<64x128xf32>
    %cst_107 = arith.constant 0.00999999977 : f32
    %148 = vector.broadcast %cst_107 : f32 to vector<64x128xf32>
    %149 = arith.mulf %148, %147 : vector<64x128xf32>
    %150 = arith.maximumf %147, %149 : vector<64x128xf32>
    %151 = arith.truncf %150 : vector<64x128xf32> to vector<64x128xbf16>
    %c0_108 = arith.constant 0 : index
    %c0_109 = arith.constant 0 : index
    %152 = vector.load %arg4[%c0_108, %c0_109] : memref<128x128xbf16, #tpu.memory_space<vmem>>, vector<128x128xbf16>
    %cst_110 = arith.constant dense<0.000000e+00> : vector<64x128xf32>
    %153 = tpu.matmul %151, %152, %cst_110 {dimension_numbers = #tpu.dot_dimension_numbers<[1], [0], [0], [1], [0, 0, 1, 1], [], []>} : vector<64x128xbf16>, vector<128x128xbf16>, vector<64x128xf32> -> vector<64x128xf32>
    %c0_111 = arith.constant 0 : index
    %c0_112 = arith.constant 0 : index
    %154 = vector.load %arg5[%c0_111, %c0_112] : memref<1x128xf32, #tpu.memory_space<vmem>>, vector<1x128xf32>
    %155 = vector.broadcast %154 : vector<1x128xf32> to vector<64x128xf32>
    %156 = arith.addf %153, %155 : vector<64x128xf32>
    %cst_113 = arith.constant 0.00999999977 : f32
    %157 = vector.broadcast %cst_113 : f32 to vector<64x128xf32>
    %158 = arith.mulf %157, %156 : vector<64x128xf32>
    %159 = arith.maximumf %156, %158 : vector<64x128xf32>
    %160 = arith.truncf %159 : vector<64x128xf32> to vector<64x128xbf16>
    %c0_114 = arith.constant 0 : index
    %c0_115 = arith.constant 0 : index
    %161 = vector.load %arg6[%c0_114, %c0_115] : memref<128x128xbf16, #tpu.memory_space<vmem>>, vector<128x128xbf16>
    %cst_116 = arith.constant dense<0.000000e+00> : vector<64x128xf32>
    %162 = tpu.matmul %160, %161, %cst_116 {dimension_numbers = #tpu.dot_dimension_numbers<[1], [0], [0], [1], [0, 0, 1, 1], [], []>} : vector<64x128xbf16>, vector<128x128xbf16>, vector<64x128xf32> -> vector<64x128xf32>
    %c0_117 = arith.constant 0 : index
    %c0_118 = arith.constant 0 : index
    %163 = vector.load %arg7[%c0_117, %c0_118] : memref<1x128xf32, #tpu.memory_space<vmem>>, vector<1x128xf32>
    %164 = vector.broadcast %163 : vector<1x128xf32> to vector<64x128xf32>
    %165 = arith.addf %162, %164 : vector<64x128xf32>
    %166 = arith.addf %150, %165 : vector<64x128xf32>
    %167 = arith.truncf %166 : vector<64x128xf32> to vector<64x128xbf16>
    %c0_119 = arith.constant 0 : index
    %c0_120 = arith.constant 0 : index
    %168 = vector.load %arg8[%c0_119, %c0_120] : memref<128x128xbf16, #tpu.memory_space<vmem>>, vector<128x128xbf16>
    %cst_121 = arith.constant dense<0.000000e+00> : vector<64x128xf32>
    %169 = tpu.matmul %167, %168, %cst_121 {dimension_numbers = #tpu.dot_dimension_numbers<[1], [0], [0], [1], [0, 0, 1, 1], [], []>} : vector<64x128xbf16>, vector<128x128xbf16>, vector<64x128xf32> -> vector<64x128xf32>
    %c0_122 = arith.constant 0 : index
    %c0_123 = arith.constant 0 : index
    %170 = vector.load %arg9[%c0_122, %c0_123] : memref<1x128xf32, #tpu.memory_space<vmem>>, vector<1x128xf32>
    %171 = vector.broadcast %170 : vector<1x128xf32> to vector<64x128xf32>
    %172 = arith.addf %169, %171 : vector<64x128xf32>
    %cst_124 = arith.constant 0.00999999977 : f32
    %173 = vector.broadcast %cst_124 : f32 to vector<64x128xf32>
    %174 = arith.mulf %173, %172 : vector<64x128xf32>
    %175 = arith.maximumf %172, %174 : vector<64x128xf32>
    %176 = arith.truncf %175 : vector<64x128xf32> to vector<64x128xbf16>
    %c0_125 = arith.constant 0 : index
    %c0_126 = arith.constant 0 : index
    %177 = vector.load %arg10[%c0_125, %c0_126] : memref<128x128xbf16, #tpu.memory_space<vmem>>, vector<128x128xbf16>
    %cst_127 = arith.constant dense<0.000000e+00> : vector<64x128xf32>
    %178 = tpu.matmul %176, %177, %cst_127 {dimension_numbers = #tpu.dot_dimension_numbers<[1], [0], [0], [1], [0, 0, 1, 1], [], []>} : vector<64x128xbf16>, vector<128x128xbf16>, vector<64x128xf32> -> vector<64x128xf32>
    %c0_128 = arith.constant 0 : index
    %c0_129 = arith.constant 0 : index
    %179 = vector.load %arg11[%c0_128, %c0_129] : memref<1x128xf32, #tpu.memory_space<vmem>>, vector<1x128xf32>
    %180 = vector.broadcast %179 : vector<1x128xf32> to vector<64x128xf32>
    %181 = arith.addf %178, %180 : vector<64x128xf32>
    %182 = arith.addf %166, %181 : vector<64x128xf32>
    %183 = arith.truncf %182 : vector<64x128xf32> to vector<64x128xbf16>
    %c0_130 = arith.constant 0 : index
    %c0_131 = arith.constant 0 : index
    %184 = vector.load %arg12[%c0_130, %c0_131] : memref<128x128xbf16, #tpu.memory_space<vmem>>, vector<128x128xbf16>
    %cst_132 = arith.constant dense<0.000000e+00> : vector<64x128xf32>
    %185 = tpu.matmul %183, %184, %cst_132 {dimension_numbers = #tpu.dot_dimension_numbers<[1], [0], [0], [1], [0, 0, 1, 1], [], []>} : vector<64x128xbf16>, vector<128x128xbf16>, vector<64x128xf32> -> vector<64x128xf32>
    %c0_133 = arith.constant 0 : index
    %c0_134 = arith.constant 0 : index
    %186 = vector.load %arg13[%c0_133, %c0_134] : memref<1x128xf32, #tpu.memory_space<vmem>>, vector<1x128xf32>
    %187 = vector.broadcast %186 : vector<1x128xf32> to vector<64x128xf32>
    %188 = arith.addf %185, %187 : vector<64x128xf32>
    %cst_135 = arith.constant 0.00999999977 : f32
    %189 = vector.broadcast %cst_135 : f32 to vector<64x128xf32>
    %190 = arith.mulf %189, %188 : vector<64x128xf32>
    %191 = arith.maximumf %188, %190 : vector<64x128xf32>
    %192 = arith.truncf %191 : vector<64x128xf32> to vector<64x128xbf16>
    %c0_136 = arith.constant 0 : index
    %c0_137 = arith.constant 0 : index
    %193 = vector.load %arg14[%c0_136, %c0_137] : memref<128x128xbf16, #tpu.memory_space<vmem>>, vector<128x128xbf16>
    %cst_138 = arith.constant dense<0.000000e+00> : vector<64x128xf32>
    %194 = tpu.matmul %192, %193, %cst_138 {dimension_numbers = #tpu.dot_dimension_numbers<[1], [0], [0], [1], [0, 0, 1, 1], [], []>} : vector<64x128xbf16>, vector<128x128xbf16>, vector<64x128xf32> -> vector<64x128xf32>
    %c0_139 = arith.constant 0 : index
    %c0_140 = arith.constant 0 : index
    %195 = vector.load %arg15[%c0_139, %c0_140] : memref<1x128xf32, #tpu.memory_space<vmem>>, vector<1x128xf32>
    %196 = vector.broadcast %195 : vector<1x128xf32> to vector<64x128xf32>
    %197 = arith.addf %194, %196 : vector<64x128xf32>
    %cst_141 = arith.constant 0.00999999977 : f32
    %198 = vector.broadcast %cst_141 : f32 to vector<64x128xf32>
    %199 = arith.mulf %198, %197 : vector<64x128xf32>
    %200 = arith.maximumf %197, %199 : vector<64x128xf32>
    %201 = arith.truncf %200 : vector<64x128xf32> to vector<64x128xbf16>
    %c0_142 = arith.constant 0 : index
    %c0_143 = arith.constant 0 : index
    %202 = vector.load %arg16[%c0_142, %c0_143] : memref<128x128xbf16, #tpu.memory_space<vmem>>, vector<128x128xbf16>
    %cst_144 = arith.constant dense<0.000000e+00> : vector<64x128xf32>
    %203 = tpu.matmul %201, %202, %cst_144 {dimension_numbers = #tpu.dot_dimension_numbers<[1], [0], [0], [1], [0, 0, 1, 1], [], []>} : vector<64x128xbf16>, vector<128x128xbf16>, vector<64x128xf32> -> vector<64x128xf32>
    %c0_145 = arith.constant 0 : index
    %c0_146 = arith.constant 0 : index
    %204 = vector.load %arg17[%c0_145, %c0_146] : memref<1x128xf32, #tpu.memory_space<vmem>>, vector<1x128xf32>
    %205 = vector.broadcast %204 : vector<1x128xf32> to vector<64x128xf32>
    %206 = arith.addf %203, %205 : vector<64x128xf32>
    %207 = arith.addf %191, %206 : vector<64x128xf32>
    %c128_147 = arith.constant 128 : index
    %c0_148 = arith.constant 0 : index
    %208 = vector.load %arg19[%c128_147, %c0_148] : memref<256x256xf32, #tpu.memory_space<vmem>>, vector<64x128xf32>
    tpu.vector_store %arg19[%c128_147, %c0_148], %207 {strides = array<i32>} : memref<256x256xf32, #tpu.memory_space<vmem>>, vector<64x128xf32>,
    %209 = vector.broadcast %0 : f32 to vector<64x128xf32>
    %c128_149 = arith.constant 128 : index
    %c128_150 = arith.constant 128 : index
    %210 = vector.load %arg19[%c128_149, %c128_150] : memref<256x256xf32, #tpu.memory_space<vmem>>, vector<64x128xf32>
    tpu.vector_store %arg19[%c128_149, %c128_150], %209 {strides = array<i32>} : memref<256x256xf32, #tpu.memory_space<vmem>>, vector<64x128xf32>,
    %c192 = arith.constant 192 : index
    %c0_151 = arith.constant 0 : index
    %211 = vector.load %arg1[%c192, %c0_151] : memref<256x128xf32, #tpu.memory_space<vmem>>, vector<64x128xf32>
    %212 = arith.truncf %211 : vector<64x128xf32> to vector<64x128xbf16>
    %c0_152 = arith.constant 0 : index
    %c0_153 = arith.constant 0 : index
    %213 = vector.load %arg2[%c0_152, %c0_153] : memref<128x128xbf16, #tpu.memory_space<vmem>>, vector<128x128xbf16>
    %cst_154 = arith.constant dense<0.000000e+00> : vector<64x128xf32>
    %214 = tpu.matmul %212, %213, %cst_154 {dimension_numbers = #tpu.dot_dimension_numbers<[1], [0], [0], [1], [0, 0, 1, 1], [], []>} : vector<64x128xbf16>, vector<128x128xbf16>, vector<64x128xf32> -> vector<64x128xf32>
    %c0_155 = arith.constant 0 : index
    %c0_156 = arith.constant 0 : index
    %215 = vector.load %arg3[%c0_155, %c0_156] : memref<1x128xf32, #tpu.memory_space<vmem>>, vector<1x128xf32>
    %216 = vector.broadcast %215 : vector<1x128xf32> to vector<64x128xf32>
    %217 = arith.addf %214, %216 : vector<64x128xf32>
    %cst_157 = arith.constant 0.00999999977 : f32
    %218 = vector.broadcast %cst_157 : f32 to vector<64x128xf32>
    %219 = arith.mulf %218, %217 : vector<64x128xf32>
    %220 = arith.maximumf %217, %219 : vector<64x128xf32>
    %221 = arith.truncf %220 : vector<64x128xf32> to vector<64x128xbf16>
    %c0_158 = arith.constant 0 : index
    %c0_159 = arith.constant 0 : index
    %222 = vector.load %arg4[%c0_158, %c0_159] : memref<128x128xbf16, #tpu.memory_space<vmem>>, vector<128x128xbf16>
    %cst_160 = arith.constant dense<0.000000e+00> : vector<64x128xf32>
    %223 = tpu.matmul %221, %222, %cst_160 {dimension_numbers = #tpu.dot_dimension_numbers<[1], [0], [0], [1], [0, 0, 1, 1], [], []>} : vector<64x128xbf16>, vector<128x128xbf16>, vector<64x128xf32> -> vector<64x128xf32>
    %c0_161 = arith.constant 0 : index
    %c0_162 = arith.constant 0 : index
    %224 = vector.load %arg5[%c0_161, %c0_162] : memref<1x128xf32, #tpu.memory_space<vmem>>, vector<1x128xf32>
    %225 = vector.broadcast %224 : vector<1x128xf32> to vector<64x128xf32>
    %226 = arith.addf %223, %225 : vector<64x128xf32>
    %cst_163 = arith.constant 0.00999999977 : f32
    %227 = vector.broadcast %cst_163 : f32 to vector<64x128xf32>
    %228 = arith.mulf %227, %226 : vector<64x128xf32>
    %229 = arith.maximumf %226, %228 : vector<64x128xf32>
    %230 = arith.truncf %229 : vector<64x128xf32> to vector<64x128xbf16>
    %c0_164 = arith.constant 0 : index
    %c0_165 = arith.constant 0 : index
    %231 = vector.load %arg6[%c0_164, %c0_165] : memref<128x128xbf16, #tpu.memory_space<vmem>>, vector<128x128xbf16>
    %cst_166 = arith.constant dense<0.000000e+00> : vector<64x128xf32>
    %232 = tpu.matmul %230, %231, %cst_166 {dimension_numbers = #tpu.dot_dimension_numbers<[1], [0], [0], [1], [0, 0, 1, 1], [], []>} : vector<64x128xbf16>, vector<128x128xbf16>, vector<64x128xf32> -> vector<64x128xf32>
    %c0_167 = arith.constant 0 : index
    %c0_168 = arith.constant 0 : index
    %233 = vector.load %arg7[%c0_167, %c0_168] : memref<1x128xf32, #tpu.memory_space<vmem>>, vector<1x128xf32>
    %234 = vector.broadcast %233 : vector<1x128xf32> to vector<64x128xf32>
    %235 = arith.addf %232, %234 : vector<64x128xf32>
    %236 = arith.addf %220, %235 : vector<64x128xf32>
    %237 = arith.truncf %236 : vector<64x128xf32> to vector<64x128xbf16>
    %c0_169 = arith.constant 0 : index
    %c0_170 = arith.constant 0 : index
    %238 = vector.load %arg8[%c0_169, %c0_170] : memref<128x128xbf16, #tpu.memory_space<vmem>>, vector<128x128xbf16>
    %cst_171 = arith.constant dense<0.000000e+00> : vector<64x128xf32>
    %239 = tpu.matmul %237, %238, %cst_171 {dimension_numbers = #tpu.dot_dimension_numbers<[1], [0], [0], [1], [0, 0, 1, 1], [], []>} : vector<64x128xbf16>, vector<128x128xbf16>, vector<64x128xf32> -> vector<64x128xf32>
    %c0_172 = arith.constant 0 : index
    %c0_173 = arith.constant 0 : index
    %240 = vector.load %arg9[%c0_172, %c0_173] : memref<1x128xf32, #tpu.memory_space<vmem>>, vector<1x128xf32>
    %241 = vector.broadcast %240 : vector<1x128xf32> to vector<64x128xf32>
    %242 = arith.addf %239, %241 : vector<64x128xf32>
    %cst_174 = arith.constant 0.00999999977 : f32
    %243 = vector.broadcast %cst_174 : f32 to vector<64x128xf32>
    %244 = arith.mulf %243, %242 : vector<64x128xf32>
    %245 = arith.maximumf %242, %244 : vector<64x128xf32>
    %246 = arith.truncf %245 : vector<64x128xf32> to vector<64x128xbf16>
    %c0_175 = arith.constant 0 : index
    %c0_176 = arith.constant 0 : index
    %247 = vector.load %arg10[%c0_175, %c0_176] : memref<128x128xbf16, #tpu.memory_space<vmem>>, vector<128x128xbf16>
    %cst_177 = arith.constant dense<0.000000e+00> : vector<64x128xf32>
    %248 = tpu.matmul %246, %247, %cst_177 {dimension_numbers = #tpu.dot_dimension_numbers<[1], [0], [0], [1], [0, 0, 1, 1], [], []>} : vector<64x128xbf16>, vector<128x128xbf16>, vector<64x128xf32> -> vector<64x128xf32>
    %c0_178 = arith.constant 0 : index
    %c0_179 = arith.constant 0 : index
    %249 = vector.load %arg11[%c0_178, %c0_179] : memref<1x128xf32, #tpu.memory_space<vmem>>, vector<1x128xf32>
    %250 = vector.broadcast %249 : vector<1x128xf32> to vector<64x128xf32>
    %251 = arith.addf %248, %250 : vector<64x128xf32>
    %252 = arith.addf %236, %251 : vector<64x128xf32>
    %253 = arith.truncf %252 : vector<64x128xf32> to vector<64x128xbf16>
    %c0_180 = arith.constant 0 : index
    %c0_181 = arith.constant 0 : index
    %254 = vector.load %arg12[%c0_180, %c0_181] : memref<128x128xbf16, #tpu.memory_space<vmem>>, vector<128x128xbf16>
    %cst_182 = arith.constant dense<0.000000e+00> : vector<64x128xf32>
    %255 = tpu.matmul %253, %254, %cst_182 {dimension_numbers = #tpu.dot_dimension_numbers<[1], [0], [0], [1], [0, 0, 1, 1], [], []>} : vector<64x128xbf16>, vector<128x128xbf16>, vector<64x128xf32> -> vector<64x128xf32>
    %c0_183 = arith.constant 0 : index
    %c0_184 = arith.constant 0 : index
    %256 = vector.load %arg13[%c0_183, %c0_184] : memref<1x128xf32, #tpu.memory_space<vmem>>, vector<1x128xf32>
    %257 = vector.broadcast %256 : vector<1x128xf32> to vector<64x128xf32>
    %258 = arith.addf %255, %257 : vector<64x128xf32>
    %cst_185 = arith.constant 0.00999999977 : f32
    %259 = vector.broadcast %cst_185 : f32 to vector<64x128xf32>
    %260 = arith.mulf %259, %258 : vector<64x128xf32>
    %261 = arith.maximumf %258, %260 : vector<64x128xf32>
    %262 = arith.truncf %261 : vector<64x128xf32> to vector<64x128xbf16>
    %c0_186 = arith.constant 0 : index
    %c0_187 = arith.constant 0 : index
    %263 = vector.load %arg14[%c0_186, %c0_187] : memref<128x128xbf16, #tpu.memory_space<vmem>>, vector<128x128xbf16>
    %cst_188 = arith.constant dense<0.000000e+00> : vector<64x128xf32>
    %264 = tpu.matmul %262, %263, %cst_188 {dimension_numbers = #tpu.dot_dimension_numbers<[1], [0], [0], [1], [0, 0, 1, 1], [], []>} : vector<64x128xbf16>, vector<128x128xbf16>, vector<64x128xf32> -> vector<64x128xf32>
    %c0_189 = arith.constant 0 : index
    %c0_190 = arith.constant 0 : index
    %265 = vector.load %arg15[%c0_189, %c0_190] : memref<1x128xf32, #tpu.memory_space<vmem>>, vector<1x128xf32>
    %266 = vector.broadcast %265 : vector<1x128xf32> to vector<64x128xf32>
    %267 = arith.addf %264, %266 : vector<64x128xf32>
    %cst_191 = arith.constant 0.00999999977 : f32
    %268 = vector.broadcast %cst_191 : f32 to vector<64x128xf32>
    %269 = arith.mulf %268, %267 : vector<64x128xf32>
    %270 = arith.maximumf %267, %269 : vector<64x128xf32>
    %271 = arith.truncf %270 : vector<64x128xf32> to vector<64x128xbf16>
    %c0_192 = arith.constant 0 : index
    %c0_193 = arith.constant 0 : index
    %272 = vector.load %arg16[%c0_192, %c0_193] : memref<128x128xbf16, #tpu.memory_space<vmem>>, vector<128x128xbf16>
    %cst_194 = arith.constant dense<0.000000e+00> : vector<64x128xf32>
    %273 = tpu.matmul %271, %272, %cst_194 {dimension_numbers = #tpu.dot_dimension_numbers<[1], [0], [0], [1], [0, 0, 1, 1], [], []>} : vector<64x128xbf16>, vector<128x128xbf16>, vector<64x128xf32> -> vector<64x128xf32>
    %c0_195 = arith.constant 0 : index
    %c0_196 = arith.constant 0 : index
    %274 = vector.load %arg17[%c0_195, %c0_196] : memref<1x128xf32, #tpu.memory_space<vmem>>, vector<1x128xf32>
    %275 = vector.broadcast %274 : vector<1x128xf32> to vector<64x128xf32>
    %276 = arith.addf %273, %275 : vector<64x128xf32>
    %277 = arith.addf %261, %276 : vector<64x128xf32>
    %c192_197 = arith.constant 192 : index
    %c0_198 = arith.constant 0 : index
    %278 = vector.load %arg19[%c192_197, %c0_198] : memref<256x256xf32, #tpu.memory_space<vmem>>, vector<64x128xf32>
    tpu.vector_store %arg19[%c192_197, %c0_198], %277 {strides = array<i32>} : memref<256x256xf32, #tpu.memory_space<vmem>>, vector<64x128xf32>,
    %279 = vector.broadcast %0 : f32 to vector<64x128xf32>
    %c192_199 = arith.constant 192 : index
    %c128_200 = arith.constant 128 : index
    %280 = vector.load %arg19[%c192_199, %c128_200] : memref<256x256xf32, #tpu.memory_space<vmem>>, vector<64x128xf32>
    tpu.vector_store %arg19[%c192_199, %c128_200], %279 {strides = array<i32>} : memref<256x256xf32, #tpu.memory_space<vmem>>, vector<64x128xf32>,
    return
  }
  func.func @transform_0(%arg0: i32) -> (i32, i32) {
    %c0_i32 = arith.constant 0 : i32
    %c0_i32_0 = arith.constant 0 : i32
    return %arg0, %c0_i32 : i32, i32
  }
  func.func @transform_1(%arg0: i32) -> (i32, i32) {
    %c0_i32 = arith.constant 0 : i32
    %c0_i32_0 = arith.constant 0 : i32
    %c0_i32_1 = arith.constant 0 : i32
    return %c0_i32, %c0_i32_0 : i32, i32
  }
  func.func @transform_2(%arg0: i32) -> (i32, i32) {
    %c0_i32 = arith.constant 0 : i32
    %c0_i32_0 = arith.constant 0 : i32
    %c0_i32_1 = arith.constant 0 : i32
    return %c0_i32, %c0_i32_0 : i32, i32
  }
  func.func @transform_3(%arg0: i32) -> (i32, i32) {
    %c0_i32 = arith.constant 0 : i32
    %c0_i32_0 = arith.constant 0 : i32
    %c0_i32_1 = arith.constant 0 : i32
    return %c0_i32, %c0_i32_0 : i32, i32
  }
  func.func @transform_4(%arg0: i32) -> (i32, i32) {
    %c0_i32 = arith.constant 0 : i32
    %c0_i32_0 = arith.constant 0 : i32
    %c0_i32_1 = arith.constant 0 : i32
    return %c0_i32, %c0_i32_0 : i32, i32
  }
  func.func @transform_5(%arg0: i32) -> (i32, i32) {
    %c0_i32 = arith.constant 0 : i32
    %c0_i32_0 = arith.constant 0 : i32
    %c0_i32_1 = arith.constant 0 : i32
    return %c0_i32, %c0_i32_0 : i32, i32
  }
  func.func @transform_6(%arg0: i32) -> (i32, i32) {
    %c0_i32 = arith.constant 0 : i32
    %c0_i32_0 = arith.constant 0 : i32
    %c0_i32_1 = arith.constant 0 : i32
    return %c0_i32, %c0_i32_0 : i32, i32
  }
  func.func @transform_7(%arg0: i32) -> (i32, i32) {
    %c0_i32 = arith.constant 0 : i32
    %c0_i32_0 = arith.constant 0 : i32
    %c0_i32_1 = arith.constant 0 : i32
    return %c0_i32, %c0_i32_0 : i32, i32
  }
  func.func @transform_8(%arg0: i32) -> (i32, i32) {
    %c0_i32 = arith.constant 0 : i32
    %c0_i32_0 = arith.constant 0 : i32
    %c0_i32_1 = arith.constant 0 : i32
    return %c0_i32, %c0_i32_0 : i32, i32
  }
  func.func @transform_9(%arg0: i32) -> (i32, i32) {
    %c0_i32 = arith.constant 0 : i32
    %c0_i32_0 = arith.constant 0 : i32
    %c0_i32_1 = arith.constant 0 : i32
    return %c0_i32, %c0_i32_0 : i32, i32
  }
  func.func @transform_10(%arg0: i32) -> (i32, i32) {
    %c0_i32 = arith.constant 0 : i32
    %c0_i32_0 = arith.constant 0 : i32
    %c0_i32_1 = arith.constant 0 : i32
    return %c0_i32, %c0_i32_0 : i32, i32
  }
  func.func @transform_11(%arg0: i32) -> (i32, i32) {
    %c0_i32 = arith.constant 0 : i32
    %c0_i32_0 = arith.constant 0 : i32
    %c0_i32_1 = arith.constant 0 : i32
    return %c0_i32, %c0_i32_0 : i32, i32
  }
  func.func @transform_12(%arg0: i32) -> (i32, i32) {
    %c0_i32 = arith.constant 0 : i32
    %c0_i32_0 = arith.constant 0 : i32
    %c0_i32_1 = arith.constant 0 : i32
    return %c0_i32, %c0_i32_0 : i32, i32
  }
  func.func @transform_13(%arg0: i32) -> (i32, i32) {
    %c0_i32 = arith.constant 0 : i32
    %c0_i32_0 = arith.constant 0 : i32
    %c0_i32_1 = arith.constant 0 : i32
    return %c0_i32, %c0_i32_0 : i32, i32
  }
  func.func @transform_14(%arg0: i32) -> (i32, i32) {
    %c0_i32 = arith.constant 0 : i32
    %c0_i32_0 = arith.constant 0 : i32
    %c0_i32_1 = arith.constant 0 : i32
    return %c0_i32, %c0_i32_0 : i32, i32
  }
  func.func @transform_15(%arg0: i32) -> (i32, i32) {
    %c0_i32 = arith.constant 0 : i32
    %c0_i32_0 = arith.constant 0 : i32
    %c0_i32_1 = arith.constant 0 : i32
    return %c0_i32, %c0_i32_0 : i32, i32
  }
  func.func @transform_16(%arg0: i32) -> (i32, i32) {
    %c0_i32 = arith.constant 0 : i32
    %c0_i32_0 = arith.constant 0 : i32
    %c0_i32_1 = arith.constant 0 : i32
    return %c0_i32, %c0_i32_0 : i32, i32
  }
  func.func @transform_17(%arg0: i32) -> (i32, i32) {
    %c0_i32 = arith.constant 0 : i32
    %c0_i32_0 = arith.constant 0 : i32
    %c0_i32_1 = arith.constant 0 : i32
    return %c0_i32, %c0_i32_0 : i32, i32
  }
  func.func @transform_18(%arg0: i32) -> (i32, i32) {
    %c0_i32 = arith.constant 0 : i32
    %c0_i32_0 = arith.constant 0 : i32
    return %arg0, %c0_i32 : i32, i32
  }
}

</mosaic_0001>

<bundles_post_ra>
// kernel: tpu_custom_call.1
= control target key start
LH: loop header
LB: loop body
LE: loop exit
PB: predicated region body
PF: predicated region fallthrough
CT: control target
= control target key end

     0   :  { %s6198_s0 = inlined_call_operand.hbm [shape: f32[256,128], index: 0, kind: input, shape index: {}]   ;;  %s6199_s1 = inlined_call_operand.hbm [shape: bf16[128,128], index: 1, kind: input, shape index: {}]   ;;  %s6200_s2 = inlined_call_operand.vmem [shape: f32[1,128], index: 2, kind: input, shape index: {}]   ;;  %s6201_s3 = inlined_call_operand.hbm [shape: bf16[128,128], index: 3, kind: input, shape index: {}]   ;;  %s6202_s4 = inlined_call_operand.vmem [shape: f32[1,128], index: 4, kind: input, shape index: {}]   ;;  %s6203_s5 = inlined_call_operand.hbm [shape: bf16[128,128], index: 5, kind: input, shape index: {}]   ;;  %s6204_s6 = inlined_call_operand.vmem [shape: f32[1,128], index: 6, kind: input, shape index: {}]   ;;  %s6205_s7 = inlined_call_operand.hbm [shape: bf16[128,128], index: 7, kind: input, shape index: {}]   ;;  %s6206_s8 = inlined_call_operand.vmem [shape: f32[1,128], index: 8, kind: input, shape index: {}]   ;;  %s6207_s9 = inlined_call_operand.hbm [shape: bf16[128,128], index: 9, kind: input, shape index: {}]   ;;  %s6208_s10 = inlined_call_operand.vmem [shape: f32[1,128], index: 10, kind: input, shape index: {}]   ;;  %s6209_s11 = inlined_call_operand.hbm [shape: bf16[128,128], index: 11, kind: input, shape index: {}]   ;;  %s6210_s12 = inlined_call_operand.vmem [shape: f32[1,128], index: 12, kind: input, shape index: {}]   ;;  %s6211_s13 = inlined_call_operand.hbm [shape: bf16[128,128], index: 13, kind: input, shape index: {}]   ;;  %s6212_s14 = inlined_call_operand.vmem [shape: f32[1,128], index: 14, kind: input, shape index: {}]   ;;  %s6213_s15 = inlined_call_operand.hbm [shape: bf16[128,128], index: 15, kind: input, shape index: {}]   ;;  %s6214_s16 = inlined_call_operand.vmem [shape: f32[1,128], index: 16, kind: input, shape index: {}]   ;;  %s6215_s17 = inlined_call_operand.<no memory space> [shape: f32[1,1], index: 17, kind: input, shape index: {}]   ;;  %s6216_s18 = inlined_call_operand.hbm [shape: f32[256,256], index: 18, kind: output, shape index: {}]  }
   0x1   :  { %6218 = sst [smem:[#allocation25_spill]] %s6198_s0 }
   0x2   :  { %6219 = sst [smem:[#allocation26_spill]] %s6199_s1 }
   0x3   :  { %6220 = sst [smem:[#allocation27_spill]] %s6200_s2 }
   0x4   :  { %24 = vsyncpa [#allocation4], 0 }
   0x5   :  { %25 = vsyncpa [#allocation7], 0 }
   0x6   :  { %26 = vsyncpa [#allocation10], 0 }
   0x7   :  { %27 = vsyncpa [#allocation13], 0 }
   0x8   :  { %28 = vsyncpa [#allocation16], 0  ;;  %s6221_s29 = sld [smem:[#allocation26_spill]] }
   0xe   :  { %s47_s30 = sshll.u32 %s6221_s29, 4  ;;  %s48_s30 = int_to_ptr.hbm [resolvable:$true] %s47_s30 }
   0xf   :  { %29 = vsyncpa [#allocation5], 0  ;;  %s5550_s0 = smov [#allocation6]   ;;  %s77_s21 = sshll.u32 %s6203_s5, 4  ;;  %s78_s21 = int_to_ptr.hbm [resolvable:$true] %s77_s21 }
  0x10   :  { %s49_s19 = sshll.u32 %s5550_s0, 4  ;;  %s5551_s22 = smov 64   ;;  %s50_s19 = int_to_ptr.vmem [resolvable:$true] %s49_s19 }
  0x11   :  { %s5552_s2 = smov 4   ;;  %s5553_s23 = smov [#allocation9]  }
  0x12   :  { %55 = dma.hbm_to_vmem [thread:$0]  %s48_s30, 1024, %s50_s19, [#allocation7], %s5551_s22, %s5551_s22, %s5552_s2  }
  0x13   :  { %s79_s24 = sshll.u32 %s5553_s23, 4  ;;  %s107_s27 = sshll.u32 %s6207_s9, 4  ;;  %s80_s24 = int_to_ptr.vmem [resolvable:$true] %s79_s24  ;;  %s108_s27 = int_to_ptr.hbm [resolvable:$true] %s107_s27 }
  0x14   :  { %85 = dma.hbm_to_vmem [thread:$0]  %s78_s21, 1024, %s80_s24, [#allocation10], %s5551_s22, %s5551_s22, %s5552_s2  }
  0x15   :  { %s137_s29 = sshll.u32 %s6211_s13, 4  ;;  %s5554_s0 = smov [#allocation12]   ;;  %s138_s29 = int_to_ptr.hbm [resolvable:$true] %s137_s29 }
  0x16   :  { %s109_s1 = sshll.u32 %s5554_s0, 4  ;;  %s5555_s30 = smov [#allocation15]   ;;  %s110_s1 = int_to_ptr.vmem [resolvable:$true] %s109_s1 }
  0x17   :  { %115 = dma.hbm_to_vmem [thread:$0]  %s108_s27, 1024, %s110_s1, [#allocation13], %s5551_s22, %s5551_s22, %s5552_s2  }
  0x18   :  { %s139_s9 = sshll.u32 %s5555_s30, 4  ;;  %s6222_s23 = sld [smem:[#allocation25_spill]]  ;;  %s140_s9 = int_to_ptr.vmem [resolvable:$true] %s139_s9 }
  0x19   :  { %145 = dma.hbm_to_vmem [thread:$0]  %s138_s29, 1024, %s140_s9, [#allocation16], %s5551_s22, %s5551_s22, %s5552_s2  }
  0x1a   :  { %s5556_s13 = smov [#allocation3]   ;;  %s62_s5 = sshll.u32 %s6201_s3, 4  ;;  %s63_s5 = int_to_ptr.hbm [resolvable:$true] %s62_s5 }
  0x1b   :  { %s36_s21 = sshll.u32 %s5556_s13, 4  ;;  %s5557_s27 = smov 128   ;;  %s37_s21 = int_to_ptr.vmem [resolvable:$true] %s36_s21 }
  0x1c   :  { %s5558_s28 = smov 8   ;;  %s5559_s0 = smov [#allocation8]  }
  0x1d   :  { %s64_s1 = sshll.u32 %s5559_s0, 4  ;;  %s92_s20 = sshll.u32 %s6205_s7, 4  ;;  %s65_s1 = int_to_ptr.vmem [resolvable:$true] %s64_s1  ;;  %s93_s20 = int_to_ptr.hbm [resolvable:$true] %s92_s20 }
  0x1e   :  { %s34_s25 = sshll.u32 %s6222_s23, 4  ;;  %s122_s3 = sshll.u32 %s6209_s11, 4  ;;  %s35_s25 = int_to_ptr.hbm [resolvable:$true] %s34_s25  ;;  %s123_s3 = int_to_ptr.hbm [resolvable:$true] %s122_s3 }
  0x1f   :  { %42 = dma.hbm_to_vmem [thread:$0]  %s35_s25, 4096, %s37_s21, [#allocation4], %s5557_s27, %s5557_s27, %s5558_s28  }
  0x20   :  { %70 = dma.hbm_to_vmem [thread:$0]  %s63_s5, 1024, %s65_s1, [#allocation7], %s5551_s22, %s5551_s22, %s5552_s2  }
  0x21   :  { %s5560_s23 = smov [#allocation11]   ;;  %s5561_s25 = smov [#allocation14]  }
  0x22   :  { %s94_s13 = sshll.u32 %s5560_s23, 4  ;;  %s124_s7 = sshll.u32 %s5561_s25, 4  ;;  %s95_s13 = int_to_ptr.vmem [resolvable:$true] %s94_s13  ;;  %s125_s7 = int_to_ptr.vmem [resolvable:$true] %s124_s7 }
  0x23   :  { %100 = dma.hbm_to_vmem [thread:$0]  %s93_s20, 1024, %s95_s13, [#allocation10], %s5551_s22, %s5551_s22, %s5552_s2  }
  0x24   :  { %s152_s26 = sshll.u32 %s6213_s15, 4  ;;  %s5562_s11 = smov [#allocation17]   ;;  %s153_s26 = int_to_ptr.hbm [resolvable:$true] %s152_s26 }
  0x25   :  { %130 = dma.hbm_to_vmem [thread:$0]  %s123_s3, 1024, %s125_s7, [#allocation13], %s5551_s22, %s5551_s22, %s5552_s2  }
  0x26   :  { %s154_s5 = sshll.u32 %s5562_s11, 4  ;;  %s155_s5 = int_to_ptr.vmem [resolvable:$true] %s154_s5 }
  0x27   :  { %160 = dma.hbm_to_vmem [thread:$0]  %s153_s26, 1024, %s155_s5, [#allocation16], %s5551_s22, %s5551_s22, %s5552_s2  }
  0x28   :  { %5538 = dma.done.wait [#allocation4], 4096  }
  0x29   :  { %5539 = vsyncadd [#allocation4], 4294963200 }
  0x2a   :  { %5540 = dma.done.wait [#allocation7], 2048  }
  0x2b   :  { %5541 = vsyncadd [#allocation7], 4294965248 }
  0x2c   :  { %5542 = dma.done.wait [#allocation10], 2048  }
  0x2d   :  { %5543 = vsyncadd [#allocation10], 4294965248 }
  0x2e   :  { %5544 = dma.done.wait [#allocation13], 2048  }
  0x2f   :  { %5545 = vsyncadd [#allocation13], 4294965248 }
  0x30   :  { %5546 = dma.done.wait [#allocation16], 2048  }
  0x31   :  { %5547 = vsyncadd [#allocation16], 4294965248  ;;  %v5001_v0 = vld [vmem:[#allocation6 + $0x38] sm:$0xff]  ;;  %v5000_v1 = vld [vmem:[#allocation6 + $0x30] sm:$0xff]  ;;  %s6223_s2 = sld [smem:[#allocation27_spill]]  ;;  %s3953_s11 = sshll.u32 %s6216_s18, 4  ;;  %s3954_s11 = int_to_ptr.hbm [resolvable:$true] %s3953_s11 }
  0x32   :  { %282 = vmatpush.bf16.msra.mxu0 %v5001_v0  ;;  %v4999_v2 = vld [vmem:[#allocation6 + $0x28] sm:$0xff]  ;;  %v4998_v3 = vld [vmem:[#allocation6 + $0x20] sm:$0xff]  ;;  %v4997_v4 = vld [vmem:[#allocation6 + $0x18] sm:$0xff]  ;;  %s5564_s5 = smov 256   ;;  %s5565_s15 = smov 16  }
  0x33   :  { %v4996_v5 = vld [vmem:[#allocation6 + $0x10] sm:$0xff]  ;;  %v4995_v6 = vld [vmem:[#allocation6 + $0x8] sm:$0xff]  ;;  %v4994_v7 = vld [vmem:[#allocation6] sm:$0xff] }
  0x34   :  { %v202_v8 = vld [vmem:[#allocation3] sm:$0xff]  ;;  %v203_v9 = vld [vmem:[#allocation3 + $0x8] sm:$0xff]  ;;  %v204_v11 = vld [vmem:[#allocation3 + $0x10] sm:$0xff] }
  0x35   :  { %v210_v10 = vpack.c.bf16 %v203_v9, %v202_v8  ;;  %v205_v12 = vld [vmem:[#allocation3 + $0x18] sm:$0xff]  ;;  %v5008_v15 = vld [vmem:[#allocation8 + $0x30] sm:$0xff]  ;;  %v5007_v16 = vld [vmem:[#allocation8 + $0x28] sm:$0xff] }
  0x36   :  { %283 = vmatpush.bf16.msra.mxu0 %v5000_v1  ;;  %v211_v13 = vpack.c.bf16 %v205_v12, %v204_v11  ;;  %v5009_v14 = vld [vmem:[#allocation8 + $0x38] sm:$0xff]  ;;  %v206_v17 = vld [vmem:[#allocation3 + $0x20] sm:$0xff]  ;;  %v207_v18 = vld [vmem:[#allocation3 + $0x28] sm:$0xff] }
  0x37   :  { %399 = vmatpush.bf16.msra.mxu1 %v5009_v14  ;;  %v5006_v19 = vld [vmem:[#allocation8 + $0x20] sm:$0xff]  ;;  %v212_v20 = vpack.c.bf16 %v207_v18, %v206_v17  ;;  %v208_v21 = vld [vmem:[#allocation3 + $0x30] sm:$0xff]  ;;  %v209_v22 = vld [vmem:[#allocation3 + $0x38] sm:$0xff] }
  0x38   :  { %v213_v23 = vpack.c.bf16 %v209_v22, %v208_v21  ;;  %v5005_v24 = vld [vmem:[#allocation8 + $0x18] sm:$0xff]  ;;  %v5004_v25 = vld [vmem:[#allocation8 + $0x10] sm:$0xff]  ;;  %v5003_v26 = vld [vmem:[#allocation8 + $0x8] sm:$0xff] }
  0x39   :  { %v5002_v27 = vld [vmem:[#allocation8] sm:$0xff]  ;;  %v5017_v48 = vld [vmem:[#allocation9 + $0x38] sm:$0xff]  ;;  %v5016_v49 = vld [vmem:[#allocation9 + $0x30] sm:$0xff] }
  0x3a   :  { %284 = vmatpush.bf16.msra.mxu0 %v4999_v2  ;;  %v5266_v29 = vld [vmem:[%s6223_s2] ss:$0 sm:$0xff]  ;;  %516 = vmatpush.bf16.msra.mxu2 %v5017_v48  ;;  %v5015_v51 = vld [vmem:[#allocation9 + $0x28] sm:$0xff] }
  0x3b   :  { %400 = vmatpush.bf16.msra.mxu1 %v5008_v15  ;;  %v5014_v56 = vld [vmem:[#allocation9 + $0x20] sm:$0xff] }
  0x3c   :  { %v5010_v8 = vld [vmem:[#allocation9] sm:$0xff] }
  0x3e   :  { %285 = vmatpush.bf16.msra.mxu0 %v4998_v3  ;;  %517 = vmatpush.bf16.msra.mxu2 %v5016_v49 }
  0x3f   :  { %401 = vmatpush.bf16.msra.mxu1 %v5007_v16 }
  0x42   :  { %286 = vmatpush.bf16.msra.mxu0 %v4997_v4  ;;  %518 = vmatpush.bf16.msra.mxu2 %v5015_v51 }
  0x43   :  { %402 = vmatpush.bf16.msra.mxu1 %v5006_v19 }
  0x46   :  { %287 = vmatpush.bf16.msra.mxu0 %v4996_v5  ;;  %519 = vmatpush.bf16.msra.mxu2 %v5014_v56  ;;  %v5013_v5 = vld [vmem:[#allocation9 + $0x18] sm:$0xff]  ;;  %v5019_v56 = vld [vmem:[#allocation11 + $0x8] sm:$0xff] }
  0x47   :  { %403 = vmatpush.bf16.msra.mxu1 %v5005_v24 }
  0x4a   :  { %288 = vmatpush.bf16.msra.mxu0 %v4995_v6  ;;  %520 = vmatpush.bf16.msra.mxu2 %v5013_v5  ;;  %v5012_v6 = vld [vmem:[#allocation9 + $0x10] sm:$0xff] }
  0x4b   :  { %404 = vmatpush.bf16.msra.mxu1 %v5004_v25 }
  0x4e   :  { %289 = vmatpush.bf16.msra.mxu0 %v4994_v7  ;;  %521 = vmatpush.bf16.msra.mxu2 %v5012_v6  ;;  %v5011_v7 = vld [vmem:[#allocation9 + $0x8] sm:$0xff] }
  0x4f   :  { %405 = vmatpush.bf16.msra.mxu1 %v5003_v26 }
  0x51   :  { %290 = vmatmul.bf16.vlgmr.msra.gmra.mxu0 %v210_v10  ;;  %v5267_v10 = vld [vmem:[%s6202_s4] ss:$0 sm:$0xff] }
  0x52   :  { %522 = vmatpush.bf16.msra.mxu2 %v5011_v7 }
  0x53   :  { %406 = vmatpush.bf16.msra.mxu1 %v5002_v27 }
  0x56   :  { %523 = vmatpush.bf16.msra.mxu2 %v5010_v8 }
  0x61   :  { %295 = vmatmul.bf16.gmra.mxu0 %v211_v13 }
  0x71   :  { %300 = vmatmul.bf16.gmra.mxu0 %v212_v20 }
  0x81   :  { %305 = vmatmul.bf16.gmra.mxu0 %v213_v23 }
  0xce   :  { %v291_v28 = vpop.f32.mrf.mxu0 }
  0xcf   :  { %v292_v30 = vadd.f32 %v5266_v29, %v291_v28 }
  0xd1   :  { %v311_v32 = vmul.f32 0.01, %v292_v30 }
  0xd3   :  { %v5715_v35 = vmax.f32 %v292_v30, %v311_v32  ;;  %v5024_v30 = vld [vmem:[#allocation11 + $0x30] sm:$0xff]  ;;  %v5023_v32 = vld [vmem:[#allocation11 + $0x28] sm:$0xff] }
  0xd6   :  { %v293_v31 = vpop.f32.mrf.mxu0 }
  0xd7   :  { %v294_v33 = vadd.f32 %v5266_v29, %v293_v31 }
  0xd9   :  { %v312_v34 = vmul.f32 0.01, %v294_v33 }
  0xdb   :  { %v5717_v36 = vmax.f32 %v294_v33, %v312_v34 }
  0xdd   :  { %v327_v37 = vpack.c.bf16 %v5717_v36, %v5715_v35 }
  0xde   :  { %v296_v38 = vpop.f32.mrf.mxu0 }
  0xdf   :  { %407 = vmatmul.bf16.vlgmr.msra.gmra.mxu1 %v327_v37  ;;  %v297_v39 = vadd.f32 %v5266_v29, %v296_v38 }
  0xe1   :  { %v313_v41 = vmul.f32 0.01, %v297_v39 }
  0xe3   :  { %v5721_v44 = vmax.f32 %v297_v39, %v313_v41  ;;  %v5022_v39 = vld [vmem:[#allocation11 + $0x20] sm:$0xff] }
  0xe6   :  { %v298_v40 = vpop.f32.mrf.mxu0 }
  0xe7   :  { %v299_v42 = vadd.f32 %v5266_v29, %v298_v40 }
  0xe9   :  { %v314_v43 = vmul.f32 0.01, %v299_v42 }
  0xeb   :  { %v5723_v45 = vmax.f32 %v299_v42, %v314_v43 }
  0xed   :  { %v328_v46 = vpack.c.bf16 %v5723_v45, %v5721_v44 }
  0xee   :  { %v301_v47 = vpop.f32.mrf.mxu0 }
  0xef   :  { %412 = vmatmul.bf16.gmra.mxu1 %v328_v46  ;;  %v302_v50 = vadd.f32 %v5266_v29, %v301_v47 }
  0xf1   :  { %v315_v53 = vmul.f32 0.01, %v302_v50 }
  0xf3   :  { %v5727_v57 = vmax.f32 %v302_v50, %v315_v53 }
  0xf6   :  { %v303_v52 = vpop.f32.mrf.mxu0 }
  0xf7   :  { %v304_v54 = vadd.f32 %v5266_v29, %v303_v52 }
  0xf9   :  { %v316_v55 = vmul.f32 0.01, %v304_v54 }
  0xfb   :  { %v5729_v58 = vmax.f32 %v304_v54, %v316_v55  ;;  %v5021_v54 = vld [vmem:[#allocation11 + $0x18] sm:$0xff]  ;;  %v5020_v55 = vld [vmem:[#allocation11 + $0x10] sm:$0xff] }
  0xfd   :  { %v329_v59 = vpack.c.bf16 %v5729_v58, %v5727_v57 }
  0xfe   :  { %v306_v60 = vpop.f32.mrf.mxu0 }
  0xff   :  { %417 = vmatmul.bf16.gmra.mxu1 %v329_v59  ;;  %v307_v61 = vadd.f32 %v5266_v29, %v306_v60  ;;  %v5018_v59 = vld [vmem:[#allocation11] sm:$0xff] }
 0x101   :  { %v317_v63 = vmul.f32 0.01, %v307_v61 }
 0x103   :  { %v5733_v2 = vmax.f32 %v307_v61, %v317_v63  ;;  %v5268_v61 = vld [vmem:[%s6204_s6] ss:$0 sm:$0xff] }
 0x106   :  { %v308_v62 = vpop.f32.mrf.mxu0 }
 0x107   :  { %v309_v0 = vadd.f32 %v5266_v29, %v308_v62  ;;  %v5025_v29 = vld [vmem:[#allocation11 + $0x38] sm:$0xff] }
 0x108   :  { %625 = vmatpush.bf16.msra.mxu3 %v5025_v29  ;;  %v5065_v29 = vld [vmem:[#allocation6 + $0x38] sm:$0xff] }
 0x109   :  { %v318_v1 = vmul.f32 0.01, %v309_v0 }
 0x10b   :  { %v5735_v3 = vmax.f32 %v309_v0, %v318_v1 }
 0x10c   :  { %626 = vmatpush.bf16.msra.mxu3 %v5024_v30  ;;  %v5064_v30 = vld [vmem:[#allocation6 + $0x30] sm:$0xff] }
 0x10d   :  { %v330_v4 = vpack.c.bf16 %v5735_v3, %v5733_v2 }
 0x10f   :  { %422 = vmatmul.bf16.gmra.mxu1 %v330_v4 }
 0x110   :  { %627 = vmatpush.bf16.msra.mxu3 %v5023_v32 }
 0x114   :  { %628 = vmatpush.bf16.msra.mxu3 %v5022_v39  ;;  %v5062_v39 = vld [vmem:[#allocation6 + $0x20] sm:$0xff] }
 0x118   :  { %629 = vmatpush.bf16.msra.mxu3 %v5021_v54 }
 0x11c   :  { %630 = vmatpush.bf16.msra.mxu3 %v5020_v55 }
 0x120   :  { %631 = vmatpush.bf16.msra.mxu3 %v5019_v56 }
 0x124   :  { %632 = vmatpush.bf16.msra.mxu3 %v5018_v59  ;;  %v5059_v59 = vld [vmem:[#allocation6 + $0x8] sm:$0xff] }
 0x15c   :  { %v408_v9 = vpop.f32.mrf.mxu1 }
 0x15d   :  { %v409_v11 = vadd.f32 %v5267_v10, %v408_v9 }
 0x15f   :  { %v428_v13 = vmul.f32 0.01, %v409_v11 }
 0x161   :  { %v436_v16 = vmax.f32 %v409_v11, %v428_v13  ;;  %v5032_v13 = vld [vmem:[#allocation12 + $0x30] sm:$0xff] }
 0x164   :  { %v410_v12 = vpop.f32.mrf.mxu1 }
 0x165   :  { %v411_v14 = vadd.f32 %v5267_v10, %v410_v12 }
 0x167   :  { %v429_v15 = vmul.f32 0.01, %v411_v14 }
 0x169   :  { %v437_v17 = vmax.f32 %v411_v14, %v429_v15  ;;  %v5031_v14 = vld [vmem:[#allocation12 + $0x28] sm:$0xff] }
 0x16b   :  { %v444_v18 = vpack.c.bf16 %v437_v17, %v436_v16 }
 0x16c   :  { %v413_v19 = vpop.f32.mrf.mxu1 }
 0x16d   :  { %524 = vmatmul.bf16.vlgmr.msra.gmra.mxu2 %v444_v18  ;;  %v414_v20 = vadd.f32 %v5267_v10, %v413_v19  ;;  %v5030_v18 = vld [vmem:[#allocation12 + $0x20] sm:$0xff] }
 0x16f   :  { %v430_v22 = vmul.f32 0.01, %v414_v20 }
 0x171   :  { %v438_v25 = vmax.f32 %v414_v20, %v430_v22  ;;  %v5029_v20 = vld [vmem:[#allocation12 + $0x18] sm:$0xff]  ;;  %v5028_v22 = vld [vmem:[#allocation12 + $0x10] sm:$0xff] }
 0x174   :  { %v415_v21 = vpop.f32.mrf.mxu1 }
 0x175   :  { %v416_v23 = vadd.f32 %v5267_v10, %v415_v21 }
 0x177   :  { %v431_v24 = vmul.f32 0.01, %v416_v23 }
 0x179   :  { %v439_v26 = vmax.f32 %v416_v23, %v431_v24 }
 0x17b   :  { %v445_v27 = vpack.c.bf16 %v439_v26, %v438_v25 }
 0x17c   :  { %v418_v28 = vpop.f32.mrf.mxu1 }
 0x17d   :  { %529 = vmatmul.bf16.gmra.mxu2 %v445_v27  ;;  %v419_v31 = vadd.f32 %v5267_v10, %v418_v28  ;;  %v5027_v27 = vld [vmem:[#allocation12 + $0x8] sm:$0xff]  ;;  %v5026_v28 = vld [vmem:[#allocation12] sm:$0xff] }
 0x17f   :  { %v432_v34 = vmul.f32 0.01, %v419_v31 }
 0x181   :  { %v440_v40 = vmax.f32 %v419_v31, %v432_v34 }
 0x184   :  { %v420_v33 = vpop.f32.mrf.mxu1 }
 0x185   :  { %v421_v37 = vadd.f32 %v5267_v10, %v420_v33 }
 0x187   :  { %v433_v38 = vmul.f32 0.01, %v421_v37 }
 0x189   :  { %v441_v41 = vmax.f32 %v421_v37, %v433_v38 }
 0x18b   :  { %v446_v42 = vpack.c.bf16 %v441_v41, %v440_v40 }
 0x18c   :  { %v423_v43 = vpop.f32.mrf.mxu1 }
 0x18d   :  { %534 = vmatmul.bf16.gmra.mxu2 %v446_v42  ;;  %v424_v46 = vadd.f32 %v5267_v10, %v423_v43 }
 0x18f   :  { %v434_v48 = vmul.f32 0.01, %v424_v46 }
 0x191   :  { %v442_v51 = vmax.f32 %v424_v46, %v434_v48 }
 0x194   :  { %v425_v47 = vpop.f32.mrf.mxu1 }
 0x195   :  { %v426_v49 = vadd.f32 %v5267_v10, %v425_v47  ;;  %v5061_v47 = vld [vmem:[#allocation6 + $0x18] sm:$0xff] }
 0x197   :  { %v435_v50 = vmul.f32 0.01, %v426_v49 }
 0x199   :  { %v443_v52 = vmax.f32 %v426_v49, %v435_v50 }
 0x19b   :  { %v447_v53 = vpack.c.bf16 %v443_v52, %v442_v51  ;;  %v5060_v52 = vld [vmem:[#allocation6 + $0x10] sm:$0xff] }
 0x19d   :  { %539 = vmatmul.bf16.gmra.mxu2 %v447_v53 }
 0x1f0   :  { %v525_v60 = vpop.f32.mrf.mxu2 }
 0x1f1   :  { %v526_v62 = vadd.f32 %v5268_v61, %v525_v60  ;;  %v5058_v60 = vld [vmem:[#allocation6] sm:$0xff] }
 0x1f3   :  { %v5746_v1 = vadd.f32 %v526_v62, %v5715_v35 }
 0x1f8   :  { %v527_v63 = vpop.f32.mrf.mxu2 }
 0x1f9   :  { %v528_v0 = vadd.f32 %v5268_v61, %v527_v63 }
 0x1fb   :  { %v5749_v4 = vadd.f32 %v528_v0, %v5717_v36  ;;  %v5033_v36 = vld [vmem:[#allocation12 + $0x38] sm:$0xff] }
 0x1fc   :  { %742 = vmatpush.bf16.msrb.mxu0 %v5033_v36 }
 0x1fd   :  { %v553_v5 = vpack.c.bf16 %v5749_v4, %v5746_v1 }
 0x1ff   :  { %633 = vmatmul.bf16.vlgmr.msra.gmra.mxu3 %v553_v5 }
 0x200   :  { %v530_v6 = vpop.f32.mrf.mxu2  ;;  %743 = vmatpush.bf16.msrb.mxu0 %v5032_v13 }
 0x201   :  { %v531_v7 = vadd.f32 %v5268_v61, %v530_v6 }
 0x203   :  { %v5754_v10 = vadd.f32 %v531_v7, %v5721_v44 }
 0x204   :  { %744 = vmatpush.bf16.msrb.mxu0 %v5031_v14 }
 0x208   :  { %v532_v8 = vpop.f32.mrf.mxu2  ;;  %745 = vmatpush.bf16.msrb.mxu0 %v5030_v18 }
 0x209   :  { %v533_v9 = vadd.f32 %v5268_v61, %v532_v8 }
 0x20b   :  { %v5757_v11 = vadd.f32 %v533_v9, %v5723_v45 }
 0x20c   :  { %746 = vmatpush.bf16.msrb.mxu0 %v5029_v20  ;;  %v5039_v20 = vld [vmem:[#allocation14 + $0x28] sm:$0xff] }
 0x20d   :  { %v554_v35 = vpack.c.bf16 %v5757_v11, %v5754_v10 }
 0x20f   :  { %638 = vmatmul.bf16.gmra.mxu3 %v554_v35  ;;  %v5041_v35 = vld [vmem:[#allocation14 + $0x38] sm:$0xff] }
 0x210   :  { %v535_v12 = vpop.f32.mrf.mxu2  ;;  %747 = vmatpush.bf16.msrb.mxu0 %v5028_v22  ;;  %851 = vmatpush.bf16.msrb.mxu1 %v5041_v35  ;;  %v1140_v22 = vld [vmem:[#allocation3 + $0x48] sm:$0xff] }
 0x211   :  { %v536_v15 = vadd.f32 %v5268_v61, %v535_v12 }
 0x213   :  { %v5762_v44 = vadd.f32 %v536_v15, %v5727_v57 }
 0x214   :  { %748 = vmatpush.bf16.msrb.mxu0 %v5027_v27  ;;  %v1142_v27 = vld [vmem:[#allocation3 + $0x58] sm:$0xff] }
 0x218   :  { %v537_v16 = vpop.f32.mrf.mxu2  ;;  %749 = vmatpush.bf16.msrb.mxu0 %v5026_v28 }
 0x219   :  { %v538_v17 = vadd.f32 %v5268_v61, %v537_v16 }
 0x21b   :  { %v5765_v45 = vadd.f32 %v538_v17, %v5729_v58 }
 0x21c   :  { %1219 = vmatpush.bf16.msra.mxu0 %v5065_v29  ;;  %v5036_v29 = vld [vmem:[#allocation14 + $0x10] sm:$0xff] }
 0x21d   :  { %v555_v19 = vpack.c.bf16 %v5765_v45, %v5762_v44 }
 0x21f   :  { %643 = vmatmul.bf16.gmra.mxu3 %v555_v19  ;;  %v5040_v19 = vld [vmem:[#allocation14 + $0x30] sm:$0xff] }
 0x220   :  { %v540_v21 = vpop.f32.mrf.mxu2  ;;  %1220 = vmatpush.bf16.msra.mxu0 %v5064_v30  ;;  %852 = vmatpush.bf16.msrb.mxu1 %v5040_v19  ;;  %v5035_v30 = vld [vmem:[#allocation14 + $0x8] sm:$0xff] }
 0x221   :  { %v541_v23 = vadd.f32 %v5268_v61, %v540_v21  ;;  %v1139_v21 = vld [vmem:[#allocation3 + $0x40] sm:$0xff] }
 0x223   :  { %v5770_v26 = vadd.f32 %v541_v23, %v5733_v2  ;;  %v5269_v2 = vld [vmem:[%s6206_s8] ss:$0 sm:$0xff]  ;;  %v1147_v23 = vpack.c.bf16 %v1140_v22, %v1139_v21  ;;  %v5047_v22 = vld [vmem:[#allocation15 + $0x28] sm:$0xff] }
 0x224   :  { %853 = vmatpush.bf16.msrb.mxu1 %v5039_v20 }
 0x228   :  { %v542_v24 = vpop.f32.mrf.mxu2 }
 0x229   :  { %v543_v25 = vadd.f32 %v5268_v61, %v542_v24  ;;  %v5038_v24 = vld [vmem:[#allocation14 + $0x20] sm:$0xff] }
 0x22a   :  { %854 = vmatpush.bf16.msrb.mxu1 %v5038_v24 }
 0x22b   :  { %v5773_v57 = vadd.f32 %v543_v25, %v5735_v3  ;;  %v5063_v3 = vld [vmem:[#allocation6 + $0x28] sm:$0xff]  ;;  %v5037_v25 = vld [vmem:[#allocation14 + $0x18] sm:$0xff] }
 0x22c   :  { %1221 = vmatpush.bf16.msra.mxu0 %v5063_v3  ;;  %v5034_v3 = vld [vmem:[#allocation14] sm:$0xff] }
 0x22d   :  { %v556_v58 = vpack.c.bf16 %v5773_v57, %v5770_v26 }
 0x22e   :  { %855 = vmatpush.bf16.msrb.mxu1 %v5037_v25 }
 0x22f   :  { %648 = vmatmul.bf16.gmra.mxu3 %v556_v58  ;;  %v1141_v58 = vld [vmem:[#allocation3 + $0x50] sm:$0xff] }
 0x230   :  { %1222 = vmatpush.bf16.msra.mxu0 %v5062_v39  ;;  %v1148_v28 = vpack.c.bf16 %v1142_v27, %v1141_v58  ;;  %v5072_v39 = vld [vmem:[#allocation8 + $0x30] sm:$0xff]  ;;  %v5046_v58 = vld [vmem:[#allocation15 + $0x20] sm:$0xff] }
 0x232   :  { %856 = vmatpush.bf16.msrb.mxu1 %v5036_v29 }
 0x234   :  { %1223 = vmatpush.bf16.msra.mxu0 %v5061_v47 }
 0x236   :  { %857 = vmatpush.bf16.msrb.mxu1 %v5035_v30 }
 0x238   :  { %1224 = vmatpush.bf16.msra.mxu0 %v5060_v52 }
 0x23a   :  { %858 = vmatpush.bf16.msrb.mxu1 %v5034_v3 }
 0x23c   :  { %1225 = vmatpush.bf16.msra.mxu0 %v5059_v59  ;;  %v5068_v59 = vld [vmem:[#allocation8 + $0x10] sm:$0xff] }
 0x240   :  { %1226 = vmatpush.bf16.msra.mxu0 %v5058_v60 }
 0x282   :  { %v634_v31 = vpop.f32.mrf.mxu3 }
 0x283   :  { %v635_v32 = vadd.f32 %v5269_v2, %v634_v31  ;;  %v1143_v31 = vld [vmem:[#allocation3 + $0x60] sm:$0xff] }
 0x285   :  { %v654_v34 = vmul.f32 0.01, %v635_v32 }
 0x287   :  { %v662_v40 = vmax.f32 %v635_v32, %v654_v34  ;;  %v1146_v34 = vld [vmem:[#allocation3 + $0x78] sm:$0xff] }
 0x28a   :  { %v636_v33 = vpop.f32.mrf.mxu3 }
 0x28b   :  { %v637_v37 = vadd.f32 %v5269_v2, %v636_v33  ;;  %v1145_v33 = vld [vmem:[#allocation3 + $0x70] sm:$0xff] }
 0x28d   :  { %v655_v38 = vmul.f32 0.01, %v637_v37 }
 0x28f   :  { %v663_v41 = vmax.f32 %v637_v37, %v655_v38  ;;  %v1150_v37 = vpack.c.bf16 %v1146_v34, %v1145_v33  ;;  %v5073_v38 = vld [vmem:[#allocation8 + $0x38] sm:$0xff]  ;;  %v5044_v34 = vld [vmem:[#allocation15 + $0x10] sm:$0xff] }
 0x290   :  { %1336 = vmatpush.bf16.msra.mxu1 %v5073_v38 }
 0x291   :  { %v670_v42 = vpack.c.bf16 %v663_v41, %v662_v40  ;;  %v5270_v41 = vld [vmem:[%s6208_s10] ss:$0 sm:$0xff] }
 0x292   :  { %v639_v43 = vpop.f32.mrf.mxu3 }
 0x293   :  { %750 = vmatmul.bf16.vlgmr.msrb.gmra.mxu0 %v670_v42  ;;  %v640_v46 = vadd.f32 %v5269_v2, %v639_v43  ;;  %v5071_v42 = vld [vmem:[#allocation8 + $0x28] sm:$0xff] }
 0x294   :  { %1337 = vmatpush.bf16.msra.mxu1 %v5072_v39 }
 0x295   :  { %v656_v49 = vmul.f32 0.01, %v640_v46 }
 0x297   :  { %v664_v53 = vmax.f32 %v640_v46, %v656_v49 }
 0x298   :  { %1338 = vmatpush.bf16.msra.mxu1 %v5071_v42 }
 0x29a   :  { %v641_v48 = vpop.f32.mrf.mxu3 }
 0x29b   :  { %v642_v50 = vadd.f32 %v5269_v2, %v641_v48  ;;  %v5070_v48 = vld [vmem:[#allocation8 + $0x20] sm:$0xff] }
 0x29c   :  { %1339 = vmatpush.bf16.msra.mxu1 %v5070_v48  ;;  %v5043_v48 = vld [vmem:[#allocation15 + $0x8] sm:$0xff] }
 0x29d   :  { %v657_v51 = vmul.f32 0.01, %v642_v50 }
 0x29f   :  { %v665_v54 = vmax.f32 %v642_v50, %v657_v51 }
 0x2a1   :  { %v671_v55 = vpack.c.bf16 %v665_v54, %v664_v53  ;;  %v5069_v53 = vld [vmem:[#allocation8 + $0x18] sm:$0xff] }
 0x2a2   :  { %v644_v56 = vpop.f32.mrf.mxu3  ;;  %1340 = vmatpush.bf16.msra.mxu1 %v5069_v53 }
 0x2a3   :  { %755 = vmatmul.bf16.gmra.mxu0 %v671_v55  ;;  %v645_v61 = vadd.f32 %v5269_v2, %v644_v56 }
 0x2a5   :  { %v658_v63 = vmul.f32 0.01, %v645_v61 }
 0x2a6   :  { %1341 = vmatpush.bf16.msra.mxu1 %v5068_v59 }
 0x2a7   :  { %v666_v6 = vmax.f32 %v645_v61, %v658_v63  ;;  %v5067_v63 = vld [vmem:[#allocation8 + $0x8] sm:$0xff] }
 0x2aa   :  { %v646_v62 = vpop.f32.mrf.mxu3  ;;  %1342 = vmatpush.bf16.msra.mxu1 %v5067_v63 }
 0x2ab   :  { %v647_v0 = vadd.f32 %v5269_v2, %v646_v62 }
 0x2ad   :  { %v659_v5 = vmul.f32 0.01, %v647_v0 }
 0x2af   :  { %v667_v7 = vmax.f32 %v647_v0, %v659_v5 }
 0x2b1   :  { %v672_v8 = vpack.c.bf16 %v667_v7, %v666_v6 }
 0x2b2   :  { %v649_v9 = vpop.f32.mrf.mxu3 }
 0x2b3   :  { %760 = vmatmul.bf16.gmra.mxu0 %v672_v8  ;;  %v650_v36 = vadd.f32 %v5269_v2, %v649_v9  ;;  %v5066_v8 = vld [vmem:[#allocation8] sm:$0xff] }
 0x2b4   :  { %1343 = vmatpush.bf16.msra.mxu1 %v5066_v8  ;;  %v5078_v8 = vld [vmem:[#allocation9 + $0x20] sm:$0xff] }
 0x2b5   :  { %v660_v13 = vmul.f32 0.01, %v650_v36 }
 0x2b7   :  { %v668_v16 = vmax.f32 %v650_v36, %v660_v13 }
 0x2ba   :  { %v651_v12 = vpop.f32.mrf.mxu3 }
 0x2bb   :  { %v652_v14 = vadd.f32 %v5269_v2, %v651_v12  ;;  %v1144_v2 = vld [vmem:[#allocation3 + $0x68] sm:$0xff] }
 0x2bc   :  { %v1149_v32 = vpack.c.bf16 %v1144_v2, %v1143_v31  ;;  %v5045_v31 = vld [vmem:[#allocation15 + $0x18] sm:$0xff] }
 0x2bd   :  { %v661_v15 = vmul.f32 0.01, %v652_v14 }
 0x2bf   :  { %v669_v17 = vmax.f32 %v652_v14, %v661_v15  ;;  %v5049_v14 = vld [vmem:[#allocation15 + $0x38] sm:$0xff] }
 0x2c0   :  { %968 = vmatpush.bf16.msrb.mxu2 %v5049_v14 }
 0x2c1   :  { %v673_v18 = vpack.c.bf16 %v669_v17, %v668_v16  ;;  %v5048_v17 = vld [vmem:[#allocation15 + $0x30] sm:$0xff] }
 0x2c3   :  { %765 = vmatmul.bf16.gmra.mxu0 %v673_v18 }
 0x2c4   :  { %969 = vmatpush.bf16.msrb.mxu2 %v5048_v17 }
 0x2c8   :  { %970 = vmatpush.bf16.msrb.mxu2 %v5047_v22 }
 0x2cc   :  { %971 = vmatpush.bf16.msrb.mxu2 %v5046_v58 }
 0x2d0   :  { %972 = vmatpush.bf16.msrb.mxu2 %v5045_v31 }
 0x2d3   :  { %1227 = vmatmul.bf16.vlgmr.msra.gmra.mxu0 %v1147_v23 }
 0x2d4   :  { %973 = vmatpush.bf16.msrb.mxu2 %v5044_v34 }
 0x2d8   :  { %974 = vmatpush.bf16.msrb.mxu2 %v5043_v48  ;;  %v5057_v48 = vld [vmem:[#allocation17 + $0x38] sm:$0xff] }
 0x2d9   :  { %1085 = vmatpush.bf16.msrb.mxu3 %v5057_v48  ;;  %v5087_v48 = vld [vmem:[#allocation11 + $0x28] sm:$0xff] }
 0x2e3   :  { %1232 = vmatmul.bf16.gmra.mxu0 %v1148_v28 }
 0x2f3   :  { %1237 = vmatmul.bf16.gmra.mxu0 %v1149_v32 }
 0x303   :  { %1242 = vmatmul.bf16.gmra.mxu0 %v1150_v37 }
 0x310   :  { %v751_v40 = vpop.f32.mrf.mxu0 }
 0x311   :  { %v752_v43 = vadd.f32 %v5270_v41, %v751_v40 }
 0x313   :  { %v771_v49 = vadd.f32 %v752_v43, %v5746_v1 }
 0x318   :  { %v753_v46 = vpop.f32.mrf.mxu0 }
 0x319   :  { %v754_v47 = vadd.f32 %v5270_v41, %v753_v46 }
 0x31b   :  { %v772_v50 = vadd.f32 %v754_v47, %v5749_v4 }
 0x31d   :  { %v779_v51 = vpack.c.bf16 %v772_v50, %v771_v49 }
 0x31f   :  { %859 = vmatmul.bf16.vlgmr.msrb.gmra.mxu1 %v779_v51  ;;  %v5042_v51 = vld [vmem:[#allocation15] sm:$0xff] }
 0x320   :  { %v756_v52 = vpop.f32.mrf.mxu0  ;;  %975 = vmatpush.bf16.msrb.mxu2 %v5042_v51 }
 0x321   :  { %v757_v54 = vadd.f32 %v5270_v41, %v756_v52 }
 0x323   :  { %v773_v60 = vadd.f32 %v757_v54, %v5754_v10 }
 0x328   :  { %v758_v55 = vpop.f32.mrf.mxu0 }
 0x329   :  { %v759_v56 = vadd.f32 %v5270_v41, %v758_v55 }
 0x32b   :  { %v774_v61 = vadd.f32 %v759_v56, %v5757_v11 }
 0x32d   :  { %v780_v62 = vpack.c.bf16 %v774_v61, %v773_v60  ;;  %v5081_v60 = vld [vmem:[#allocation9 + $0x38] sm:$0xff]  ;;  %v5080_v61 = vld [vmem:[#allocation9 + $0x30] sm:$0xff] }
 0x32e   :  { %1453 = vmatpush.bf16.msra.mxu2 %v5081_v60 }
 0x32f   :  { %864 = vmatmul.bf16.gmra.mxu1 %v780_v62 }
 0x330   :  { %v761_v1 = vpop.f32.mrf.mxu0 }
 0x331   :  { %v762_v4 = vadd.f32 %v5270_v41, %v761_v1  ;;  %v5272_v1 = vld [vmem:[%s6210_s12] ss:$0 sm:$0xff] }
 0x332   :  { %1454 = vmatpush.bf16.msra.mxu2 %v5080_v61 }
 0x333   :  { %v775_v6 = vadd.f32 %v762_v4, %v5762_v44  ;;  %v5271_v44 = vld [vmem:[%s6223_s2] ss:$0 sm:$0xff]  ;;  %v5079_v4 = vld [vmem:[#allocation9 + $0x28] sm:$0xff] }
 0x336   :  { %1455 = vmatpush.bf16.msra.mxu2 %v5079_v4 }
 0x338   :  { %v763_v0 = vpop.f32.mrf.mxu0 }
 0x339   :  { %v764_v5 = vadd.f32 %v5270_v41, %v763_v0 }
 0x33a   :  { %1456 = vmatpush.bf16.msra.mxu2 %v5078_v8 }
 0x33b   :  { %v776_v7 = vadd.f32 %v764_v5, %v5765_v45 }
 0x33d   :  { %v781_v9 = vpack.c.bf16 %v776_v7, %v775_v6 }
 0x33f   :  { %869 = vmatmul.bf16.gmra.mxu1 %v781_v9 }
 0x340   :  { %v766_v10 = vpop.f32.mrf.mxu0 }
 0x341   :  { %v767_v35 = vadd.f32 %v5270_v41, %v766_v10 }
 0x343   :  { %v777_v12 = vadd.f32 %v767_v35, %v5770_v26 }
 0x348   :  { %v768_v11 = vpop.f32.mrf.mxu0 }
 0x349   :  { %v769_v36 = vadd.f32 %v5270_v41, %v768_v11 }
 0x34b   :  { %v778_v13 = vadd.f32 %v769_v36, %v5773_v57 }
 0x34d   :  { %v782_v15 = vpack.c.bf16 %v778_v13, %v777_v12  ;;  %v5077_v12 = vld [vmem:[#allocation9 + $0x18] sm:$0xff] }
 0x34e   :  { %1457 = vmatpush.bf16.msra.mxu2 %v5077_v12  ;;  %v5052_v12 = vld [vmem:[#allocation17 + $0x10] sm:$0xff] }
 0x34f   :  { %874 = vmatmul.bf16.gmra.mxu1 %v782_v15 }
 0x350   :  { %v1228_v16 = vpop.f32.mrf.mxu0 }
 0x351   :  { %v1229_v45 = vadd.f32 %v5271_v44, %v1228_v16 }
 0x353   :  { %v1248_v19 = vmul.f32 0.01, %v1229_v45 }
 0x355   :  { %v5794_v26 = vmax.f32 %v1229_v45, %v1248_v19 }
 0x358   :  { %v1230_v18 = vpop.f32.mrf.mxu0 }
 0x359   :  { %v1231_v20 = vadd.f32 %v5271_v44, %v1230_v18 }
 0x35b   :  { %v1249_v21 = vmul.f32 0.01, %v1231_v20 }
 0x35d   :  { %v5796_v57 = vmax.f32 %v1231_v20, %v1249_v21  ;;  %v5075_v21 = vld [vmem:[#allocation9 + $0x8] sm:$0xff] }
 0x35f   :  { %v1264_v23 = vpack.c.bf16 %v5796_v57, %v5794_v26 }
 0x360   :  { %v1233_v24 = vpop.f32.mrf.mxu0 }
 0x361   :  { %1344 = vmatmul.bf16.vlgmr.msra.gmra.mxu1 %v1264_v23  ;;  %v1234_v25 = vadd.f32 %v5271_v44, %v1233_v24 }
 0x363   :  { %v1250_v28 = vmul.f32 0.01, %v1234_v25 }
 0x365   :  { %v5800_v2 = vmax.f32 %v1234_v25, %v1250_v28  ;;  %v5074_v28 = vld [vmem:[#allocation9] sm:$0xff] }
 0x368   :  { %v1235_v27 = vpop.f32.mrf.mxu0 }
 0x369   :  { %v1236_v29 = vadd.f32 %v5271_v44, %v1235_v27 }
 0x36b   :  { %v1251_v30 = vmul.f32 0.01, %v1236_v29 }
 0x36d   :  { %v5802_v32 = vmax.f32 %v1236_v29, %v1251_v30 }
 0x36f   :  { %v1265_v3 = vpack.c.bf16 %v5802_v32, %v5800_v2 }
 0x370   :  { %v1238_v33 = vpop.f32.mrf.mxu0 }
 0x371   :  { %1349 = vmatmul.bf16.gmra.mxu1 %v1265_v3  ;;  %v1239_v37 = vadd.f32 %v5271_v44, %v1238_v33 }
 0x373   :  { %v1252_v39 = vmul.f32 0.01, %v1239_v37 }
 0x375   :  { %v5806_v42 = vmax.f32 %v1239_v37, %v1252_v39 }
 0x378   :  { %v1240_v38 = vpop.f32.mrf.mxu0 }
 0x379   :  { %v1241_v40 = vadd.f32 %v5271_v44, %v1240_v38 }
 0x37b   :  { %v1253_v41 = vmul.f32 0.01, %v1241_v40 }
 0x37d   :  { %v5808_v43 = vmax.f32 %v1241_v40, %v1253_v41 }
 0x37f   :  { %v1266_v46 = vpack.c.bf16 %v5808_v43, %v5806_v42 }
 0x380   :  { %v1243_v47 = vpop.f32.mrf.mxu0 }
 0x381   :  { %1354 = vmatmul.bf16.gmra.mxu1 %v1266_v46  ;;  %v1244_v49 = vadd.f32 %v5271_v44, %v1243_v47  ;;  %v5273_v46 = vld [vmem:[%s6202_s4] ss:$0 sm:$0xff] }
 0x383   :  { %v1254_v52 = vmul.f32 0.01, %v1244_v49 }
 0x385   :  { %v5812_v55 = vmax.f32 %v1244_v49, %v1254_v52 }
 0x388   :  { %v1245_v50 = vpop.f32.mrf.mxu0 }
 0x389   :  { %v1246_v53 = vadd.f32 %v5271_v44, %v1245_v50  ;;  %v5076_v44 = vld [vmem:[#allocation9 + $0x10] sm:$0xff] }
 0x38a   :  { %1458 = vmatpush.bf16.msra.mxu2 %v5076_v44 }
 0x38b   :  { %v1255_v54 = vmul.f32 0.01, %v1246_v53 }
 0x38d   :  { %v5814_v56 = vmax.f32 %v1246_v53, %v1255_v54  ;;  %v5056_v53 = vld [vmem:[#allocation17 + $0x30] sm:$0xff] }
 0x38e   :  { %1459 = vmatpush.bf16.msra.mxu2 %v5075_v21  ;;  %1086 = vmatpush.bf16.msrb.mxu3 %v5056_v53 }
 0x38f   :  { %v1267_v59 = vpack.c.bf16 %v5814_v56, %v5812_v55 }
 0x391   :  { %1359 = vmatmul.bf16.gmra.mxu1 %v1267_v59 }
 0x392   :  { %1460 = vmatpush.bf16.msra.mxu2 %v5074_v28 }
 0x39c   :  { %v860_v62 = vpop.f32.mrf.mxu1 }
 0x39d   :  { %v861_v63 = vadd.f32 %v5272_v1, %v860_v62 }
 0x39f   :  { %v880_v5 = vmul.f32 0.01, %v861_v63 }
 0x3a1   :  { %v5821_v9 = vmax.f32 %v861_v63, %v880_v5 }
 0x3a4   :  { %v862_v0 = vpop.f32.mrf.mxu1 }
 0x3a5   :  { %v863_v6 = vadd.f32 %v5272_v1, %v862_v0 }
 0x3a7   :  { %v881_v7 = vmul.f32 0.01, %v863_v6 }
 0x3a9   :  { %v5823_v10 = vmax.f32 %v863_v6, %v881_v7  ;;  %v5054_v6 = vld [vmem:[#allocation17 + $0x20] sm:$0xff] }
 0x3ab   :  { %v896_v35 = vpack.c.bf16 %v5823_v10, %v5821_v9 }
 0x3ac   :  { %v865_v11 = vpop.f32.mrf.mxu1 }
 0x3ad   :  { %976 = vmatmul.bf16.vlgmr.msrb.gmra.mxu2 %v896_v35  ;;  %v866_v36 = vadd.f32 %v5272_v1, %v865_v11 }
 0x3af   :  { %v882_v14 = vmul.f32 0.01, %v866_v36 }
 0x3b1   :  { %v5827_v45 = vmax.f32 %v866_v36, %v882_v14  ;;  %v5053_v36 = vld [vmem:[#allocation17 + $0x18] sm:$0xff] }
 0x3b4   :  { %v867_v13 = vpop.f32.mrf.mxu1 }
 0x3b5   :  { %v868_v15 = vadd.f32 %v5272_v1, %v867_v13 }
 0x3b7   :  { %v883_v16 = vmul.f32 0.01, %v868_v15 }
 0x3b9   :  { %v5829_v17 = vmax.f32 %v868_v15, %v883_v16 }
 0x3bb   :  { %v897_v18 = vpack.c.bf16 %v5829_v17, %v5827_v45 }
 0x3bc   :  { %v870_v19 = vpop.f32.mrf.mxu1 }
 0x3bd   :  { %981 = vmatmul.bf16.gmra.mxu2 %v897_v18  ;;  %v871_v20 = vadd.f32 %v5272_v1, %v870_v19 }
 0x3bf   :  { %v884_v23 = vmul.f32 0.01, %v871_v20 }
 0x3c1   :  { %v5833_v58 = vmax.f32 %v871_v20, %v884_v23  ;;  %v5051_v23 = vld [vmem:[#allocation17 + $0x8] sm:$0xff] }
 0x3c4   :  { %v872_v22 = vpop.f32.mrf.mxu1 }
 0x3c5   :  { %v873_v24 = vadd.f32 %v5272_v1, %v872_v22 }
 0x3c7   :  { %v885_v25 = vmul.f32 0.01, %v873_v24 }
 0x3c9   :  { %v5835_v27 = vmax.f32 %v873_v24, %v885_v25 }
 0x3cb   :  { %v898_v29 = vpack.c.bf16 %v5835_v27, %v5833_v58 }
 0x3cc   :  { %v875_v30 = vpop.f32.mrf.mxu1 }
 0x3cd   :  { %986 = vmatmul.bf16.gmra.mxu2 %v898_v29  ;;  %v876_v31 = vadd.f32 %v5272_v1, %v875_v30 }
 0x3cf   :  { %v886_v33 = vmul.f32 0.01, %v876_v31 }
 0x3d1   :  { %v5839_v38 = vmax.f32 %v876_v31, %v886_v33 }
 0x3d4   :  { %v877_v3 = vpop.f32.mrf.mxu1 }
 0x3d5   :  { %v878_v34 = vadd.f32 %v5272_v1, %v877_v3  ;;  %v5055_v1 = vld [vmem:[#allocation17 + $0x28] sm:$0xff]  ;;  %v5050_v3 = vld [vmem:[#allocation17] sm:$0xff] }
 0x3d6   :  { %1087 = vmatpush.bf16.msrb.mxu3 %v5055_v1 }
 0x3d7   :  { %v887_v37 = vmul.f32 0.01, %v878_v34 }
 0x3d9   :  { %v5841_v39 = vmax.f32 %v878_v34, %v887_v37  ;;  %v5089_v34 = vld [vmem:[#allocation11 + $0x38] sm:$0xff]  ;;  %v5088_v37 = vld [vmem:[#allocation11 + $0x30] sm:$0xff] }
 0x3da   :  { %1088 = vmatpush.bf16.msrb.mxu3 %v5054_v6 }
 0x3db   :  { %v899_v40 = vpack.c.bf16 %v5841_v39, %v5839_v38 }
 0x3dd   :  { %991 = vmatmul.bf16.gmra.mxu2 %v899_v40 }
 0x3de   :  { %v1345_v41 = vpop.f32.mrf.mxu1  ;;  %1089 = vmatpush.bf16.msrb.mxu3 %v5053_v36 }
 0x3df   :  { %v1346_v47 = vadd.f32 %v5273_v46, %v1345_v41  ;;  %v5274_v41 = vld [vmem:[%s6212_s14] ss:$0 sm:$0xff] }
 0x3e1   :  { %v1365_v50 = vmul.f32 0.01, %v1346_v47 }
 0x3e2   :  { %1090 = vmatpush.bf16.msrb.mxu3 %v5052_v12  ;;  %v5082_v12 = vld [vmem:[#allocation11] sm:$0xff] }
 0x3e3   :  { %v1373_v54 = vmax.f32 %v1346_v47, %v1365_v50 }
 0x3e6   :  { %v1347_v49 = vpop.f32.mrf.mxu1  ;;  %1091 = vmatpush.bf16.msrb.mxu3 %v5051_v23 }
 0x3e7   :  { %v1348_v51 = vadd.f32 %v5273_v46, %v1347_v49 }
 0x3e9   :  { %v1366_v52 = vmul.f32 0.01, %v1348_v51 }
 0x3ea   :  { %1092 = vmatpush.bf16.msrb.mxu3 %v5050_v3  ;;  %v5275_v3 = vld [vmem:[%s6204_s6] ss:$0 sm:$0xff] }
 0x3eb   :  { %v1374_v59 = vmax.f32 %v1348_v51, %v1366_v52  ;;  %v5086_v52 = vld [vmem:[#allocation11 + $0x20] sm:$0xff] }
 0x3ed   :  { %v1381_v60 = vpack.c.bf16 %v1374_v59, %v1373_v54 }
 0x3ee   :  { %v1350_v61 = vpop.f32.mrf.mxu1  ;;  %1562 = vmatpush.bf16.msra.mxu3 %v5089_v34 }
 0x3ef   :  { %1461 = vmatmul.bf16.vlgmr.msra.gmra.mxu2 %v1381_v60  ;;  %v1351_v62 = vadd.f32 %v5273_v46, %v1350_v61 }
 0x3f1   :  { %v1367_v4 = vmul.f32 0.01, %v1351_v62 }
 0x3f2   :  { %1563 = vmatpush.bf16.msra.mxu3 %v5088_v37 }
 0x3f3   :  { %v1375_v7 = vmax.f32 %v1351_v62, %v1367_v4  ;;  %v5085_v62 = vld [vmem:[#allocation11 + $0x18] sm:$0xff] }
 0x3f6   :  { %v1352_v63 = vpop.f32.mrf.mxu1  ;;  %1564 = vmatpush.bf16.msra.mxu3 %v5087_v48 }
 0x3f7   :  { %v1353_v0 = vadd.f32 %v5273_v46, %v1352_v63 }
 0x3f9   :  { %v1368_v5 = vmul.f32 0.01, %v1353_v0 }
 0x3fa   :  { %1565 = vmatpush.bf16.msra.mxu3 %v5086_v52 }
 0x3fb   :  { %v1376_v8 = vmax.f32 %v1353_v0, %v1368_v5  ;;  %v5084_v5 = vld [vmem:[#allocation11 + $0x10] sm:$0xff] }
 0x3fd   :  { %v1382_v35 = vpack.c.bf16 %v1376_v8, %v1375_v7 }
 0x3fe   :  { %v1355_v11 = vpop.f32.mrf.mxu1  ;;  %1566 = vmatpush.bf16.msra.mxu3 %v5085_v62 }
 0x3ff   :  { %1466 = vmatmul.bf16.gmra.mxu2 %v1382_v35  ;;  %v1356_v13 = vadd.f32 %v5273_v46, %v1355_v11  ;;  %v5083_v11 = vld [vmem:[#allocation11 + $0x8] sm:$0xff] }
 0x401   :  { %v1369_v15 = vmul.f32 0.01, %v1356_v13 }
 0x402   :  { %1567 = vmatpush.bf16.msra.mxu3 %v5084_v5  ;;  %v5276_v5 = vld [vmem:[%s6214_s16] ss:$0 sm:$0xff] }
 0x403   :  { %v1377_v18 = vmax.f32 %v1356_v13, %v1369_v15 }
 0x406   :  { %v1357_v14 = vpop.f32.mrf.mxu1  ;;  %1568 = vmatpush.bf16.msra.mxu3 %v5083_v11 }
 0x407   :  { %v1358_v16 = vadd.f32 %v5273_v46, %v1357_v14 }
 0x409   :  { %v1370_v44 = vmul.f32 0.01, %v1358_v16 }
 0x40a   :  { %1569 = vmatpush.bf16.msra.mxu3 %v5082_v12  ;;  %v5094_v12 = vld [vmem:[#allocation12 + $0x20] sm:$0xff] }
 0x40b   :  { %v1378_v19 = vmax.f32 %v1358_v16, %v1370_v44 }
 0x40d   :  { %v1383_v20 = vpack.c.bf16 %v1378_v19, %v1377_v18 }
 0x40e   :  { %v1360_v21 = vpop.f32.mrf.mxu1 }
 0x40f   :  { %1471 = vmatmul.bf16.gmra.mxu2 %v1383_v20  ;;  %v1361_v22 = vadd.f32 %v5273_v46, %v1360_v21 }
 0x411   :  { %v1371_v25 = vmul.f32 0.01, %v1361_v22 }
 0x413   :  { %v1379_v30 = vmax.f32 %v1361_v22, %v1371_v25 }
 0x416   :  { %v1362_v24 = vpop.f32.mrf.mxu1 }
 0x417   :  { %v1363_v28 = vadd.f32 %v5273_v46, %v1362_v24 }
 0x419   :  { %v1372_v29 = vmul.f32 0.01, %v1363_v28 }
 0x41b   :  { %v1380_v31 = vmax.f32 %v1363_v28, %v1372_v29 }
 0x41d   :  { %v1384_v33 = vpack.c.bf16 %v1380_v31, %v1379_v30 }
 0x41f   :  { %1476 = vmatmul.bf16.gmra.mxu2 %v1384_v33 }
 0x430   :  { %v977_v40 = vpop.f32.mrf.mxu2 }
 0x431   :  { %v978_v47 = vadd.f32 %v5274_v41, %v977_v40 }
 0x433   :  { %v997_v49 = vmul.f32 0.01, %v978_v47 }
 0x435   :  { %v1005_v53 = vmax.f32 %v978_v47, %v997_v49 }
 0x438   :  { %v979_v46 = vpop.f32.mrf.mxu2 }
 0x439   :  { %v980_v50 = vadd.f32 %v5274_v41, %v979_v46 }
 0x43b   :  { %v998_v51 = vmul.f32 0.01, %v980_v50 }
 0x43d   :  { %v1006_v54 = vmax.f32 %v980_v50, %v998_v51 }
 0x43f   :  { %v1013_v59 = vpack.c.bf16 %v1006_v54, %v1005_v53 }
 0x440   :  { %v982_v60 = vpop.f32.mrf.mxu2 }
 0x441   :  { %1093 = vmatmul.bf16.vlgmr.msrb.gmra.mxu3 %v1013_v59  ;;  %v983_v61 = vadd.f32 %v5274_v41, %v982_v60 }
 0x443   :  { %v999_v63 = vmul.f32 0.01, %v983_v61 }
 0x445   :  { %v1007_v6 = vmax.f32 %v983_v61, %v999_v63 }
 0x448   :  { %v984_v1 = vpop.f32.mrf.mxu2 }
 0x449   :  { %v985_v4 = vadd.f32 %v5274_v41, %v984_v1 }
 0x44b   :  { %v1000_v0 = vmul.f32 0.01, %v985_v4 }
 0x44d   :  { %v1008_v7 = vmax.f32 %v985_v4, %v1000_v0 }
 0x44f   :  { %v1014_v8 = vpack.c.bf16 %v1008_v7, %v1007_v6  ;;  %v5096_v6 = vld [vmem:[#allocation12 + $0x30] sm:$0xff] }
 0x450   :  { %v987_v35 = vpop.f32.mrf.mxu2 }
 0x451   :  { %1098 = vmatmul.bf16.gmra.mxu3 %v1014_v8  ;;  %v988_v36 = vadd.f32 %v5274_v41, %v987_v35  ;;  %v5095_v35 = vld [vmem:[#allocation12 + $0x28] sm:$0xff] }
 0x453   :  { %v1001_v14 = vmul.f32 0.01, %v988_v36 }
 0x455   :  { %v1009_v44 = vmax.f32 %v988_v36, %v1001_v14 }
 0x458   :  { %v989_v13 = vpop.f32.mrf.mxu2 }
 0x459   :  { %v990_v15 = vadd.f32 %v5274_v41, %v989_v13 }
 0x45b   :  { %v1002_v16 = vmul.f32 0.01, %v990_v15 }
 0x45d   :  { %v1010_v18 = vmax.f32 %v990_v15, %v1002_v16  ;;  %v5093_v16 = vld [vmem:[#allocation12 + $0x18] sm:$0xff] }
 0x45f   :  { %v1015_v19 = vpack.c.bf16 %v1010_v18, %v1009_v44 }
 0x460   :  { %v992_v20 = vpop.f32.mrf.mxu2 }
 0x461   :  { %1103 = vmatmul.bf16.gmra.mxu3 %v1015_v19  ;;  %v993_v21 = vadd.f32 %v5274_v41, %v992_v20  ;;  %v5092_v19 = vld [vmem:[#allocation12 + $0x10] sm:$0xff] }
 0x463   :  { %v1003_v23 = vmul.f32 0.01, %v993_v21 }
 0x465   :  { %v1011_v28 = vmax.f32 %v993_v21, %v1003_v23 }
 0x468   :  { %v994_v22 = vpop.f32.mrf.mxu2 }
 0x469   :  { %v995_v24 = vadd.f32 %v5274_v41, %v994_v22  ;;  %v5091_v22 = vld [vmem:[#allocation12 + $0x8] sm:$0xff] }
 0x46b   :  { %v1004_v25 = vmul.f32 0.01, %v995_v24 }
 0x46d   :  { %v1012_v29 = vmax.f32 %v995_v24, %v1004_v25  ;;  %v5090_v25 = vld [vmem:[#allocation12] sm:$0xff] }
 0x46f   :  { %v1016_v30 = vpack.c.bf16 %v1012_v29, %v1011_v28 }
 0x471   :  { %1108 = vmatmul.bf16.gmra.mxu3 %v1016_v30  ;;  %v5129_v30 = vld [vmem:[#allocation6 + $0x38] sm:$0xff] }
 0x472   :  { %v1462_v31 = vpop.f32.mrf.mxu2 }
 0x473   :  { %v1463_v33 = vadd.f32 %v5275_v3, %v1462_v31 }
 0x475   :  { %v5855_v40 = vadd.f32 %v1463_v33, %v5794_v26  ;;  %v5128_v33 = vld [vmem:[#allocation6 + $0x30] sm:$0xff] }
 0x47a   :  { %v1464_v34 = vpop.f32.mrf.mxu2 }
 0x47b   :  { %v1465_v37 = vadd.f32 %v5275_v3, %v1464_v34 }
 0x47d   :  { %v5858_v47 = vadd.f32 %v1465_v37, %v5796_v57 }
 0x47f   :  { %v1490_v41 = vpack.c.bf16 %v5858_v47, %v5855_v40 }
 0x481   :  { %1570 = vmatmul.bf16.vlgmr.msra.gmra.mxu3 %v1490_v41  ;;  %v5127_v41 = vld [vmem:[#allocation6 + $0x28] sm:$0xff] }
 0x482   :  { %v1467_v48 = vpop.f32.mrf.mxu2 }
 0x483   :  { %v1468_v46 = vadd.f32 %v5275_v3, %v1467_v48 }
 0x485   :  { %v5863_v51 = vadd.f32 %v1468_v46, %v5800_v2 }
 0x48a   :  { %v1469_v49 = vpop.f32.mrf.mxu2 }
 0x48b   :  { %v1470_v50 = vadd.f32 %v5275_v3, %v1469_v49 }
 0x48d   :  { %v5866_v52 = vadd.f32 %v1470_v50, %v5802_v32 }
 0x48f   :  { %v1491_v26 = vpack.c.bf16 %v5866_v52, %v5863_v51 }
 0x491   :  { %1575 = vmatmul.bf16.gmra.mxu3 %v1491_v26 }
 0x492   :  { %v1472_v57 = vpop.f32.mrf.mxu2 }
 0x493   :  { %v1473_v53 = vadd.f32 %v5275_v3, %v1472_v57  ;;  %v5126_v57 = vld [vmem:[#allocation6 + $0x20] sm:$0xff] }
 0x495   :  { %v5871_v60 = vadd.f32 %v1473_v53, %v5806_v42 }
 0x49a   :  { %v1474_v54 = vpop.f32.mrf.mxu2 }
 0x49b   :  { %v1475_v59 = vadd.f32 %v5275_v3, %v1474_v54 }
 0x49d   :  { %v5874_v61 = vadd.f32 %v1475_v59, %v5808_v43  ;;  %v5097_v43 = vld [vmem:[#allocation12 + $0x38] sm:$0xff] }
 0x49e   :  { %1679 = vmatpush.bf16.msrb.mxu0 %v5097_v43  ;;  %v5125_v59 = vld [vmem:[#allocation6 + $0x18] sm:$0xff]  ;;  %v5124_v43 = vld [vmem:[#allocation6 + $0x10] sm:$0xff] }
 0x49f   :  { %v1492_v2 = vpack.c.bf16 %v5874_v61, %v5871_v60 }
 0x4a1   :  { %1580 = vmatmul.bf16.gmra.mxu3 %v1492_v2 }
 0x4a2   :  { %v1477_v32 = vpop.f32.mrf.mxu2  ;;  %1680 = vmatpush.bf16.msrb.mxu0 %v5096_v6 }
 0x4a3   :  { %v1478_v62 = vadd.f32 %v5275_v3, %v1477_v32 }
 0x4a5   :  { %v5879_v4 = vadd.f32 %v1478_v62, %v5812_v55 }
 0x4a6   :  { %1681 = vmatpush.bf16.msrb.mxu0 %v5095_v35 }
 0x4aa   :  { %v1479_v1 = vpop.f32.mrf.mxu2  ;;  %1682 = vmatpush.bf16.msrb.mxu0 %v5094_v12 }
 0x4ab   :  { %v1480_v63 = vadd.f32 %v5275_v3, %v1479_v1 }
 0x4ad   :  { %v5882_v0 = vadd.f32 %v1480_v63, %v5814_v56 }
 0x4ae   :  { %1683 = vmatpush.bf16.msrb.mxu0 %v5093_v16  ;;  %v5105_v16 = vld [vmem:[#allocation14 + $0x38] sm:$0xff] }
 0x4af   :  { %v1493_v42 = vpack.c.bf16 %v5882_v0, %v5879_v4  ;;  %1788 = vmatpush.bf16.msrb.mxu1 %v5105_v16 }
 0x4b1   :  { %1585 = vmatmul.bf16.gmra.mxu3 %v1493_v42 }
 0x4b2   :  { %1684 = vmatpush.bf16.msrb.mxu0 %v5092_v19 }
 0x4b6   :  { %1685 = vmatpush.bf16.msrb.mxu0 %v5091_v22 }
 0x4ba   :  { %1686 = vmatpush.bf16.msrb.mxu0 %v5090_v25  ;;  %v2076_v25 = vld [vmem:[#allocation3 + $0x88] sm:$0xff] }
 0x4be   :  { %2155 = vmatpush.bf16.msra.mxu0 %v5129_v30  ;;  %v2077_v30 = vld [vmem:[#allocation3 + $0x90] sm:$0xff] }
 0x4c2   :  { %2156 = vmatpush.bf16.msra.mxu0 %v5128_v33  ;;  %v5099_v33 = vld [vmem:[#allocation14 + $0x8] sm:$0xff] }
 0x4c4   :  { %v1094_v7 = vpop.f32.mrf.mxu3 }
 0x4c5   :  { %v1095_v8 = vadd.f32 %v5276_v5, %v1094_v7  ;;  %v5123_v7 = vld [vmem:[#allocation6 + $0x8] sm:$0xff] }
 0x4c6   :  { %2157 = vmatpush.bf16.msra.mxu0 %v5127_v41  ;;  %v5098_v41 = vld [vmem:[#allocation14] sm:$0xff] }
 0x4c7   :  { %v1114_v55 = vadd.f32 %v1095_v8, %v5821_v9  ;;  %v5122_v8 = vld [vmem:[#allocation6] sm:$0xff] }
 0x4c9   :  { %1122 = vst [vmem:[#allocation18] sm:$0xff] %v1114_v55 }
 0x4ca   :  { %2158 = vmatpush.bf16.msra.mxu0 %v5126_v57  ;;  %v5278_v57 = vld [vmem:[%s6208_s10] ss:$0 sm:$0xff] }
 0x4cc   :  { %v1096_v56 = vpop.f32.mrf.mxu3 }
 0x4cd   :  { %v1097_v11 = vadd.f32 %v5276_v5, %v1096_v56 }
 0x4ce   :  { %2159 = vmatpush.bf16.msra.mxu0 %v5125_v59 }
 0x4cf   :  { %v1115_v36 = vadd.f32 %v1097_v11, %v5823_v10 }
 0x4d1   :  { %1123 = vst [vmem:[#allocation18 + $0x10] sm:$0xff] %v1115_v36 }
 0x4d2   :  { %2160 = vmatpush.bf16.msra.mxu0 %v5124_v43 }
 0x4d4   :  { %v1099_v13 = vpop.f32.mrf.mxu3 }
 0x4d5   :  { %v1100_v14 = vadd.f32 %v5276_v5, %v1099_v13 }
 0x4d6   :  { %2161 = vmatpush.bf16.msra.mxu0 %v5123_v7 }
 0x4d7   :  { %v1116_v15 = vadd.f32 %v1100_v14, %v5827_v45 }
 0x4d9   :  { %1124 = vst [vmem:[#allocation18 + $0x20] sm:$0xff] %v1116_v15 }
 0x4da   :  { %2162 = vmatpush.bf16.msra.mxu0 %v5122_v8 }
 0x4dc   :  { %v1101_v44 = vpop.f32.mrf.mxu3 }
 0x4dd   :  { %v1102_v18 = vadd.f32 %v5276_v5, %v1101_v44 }
 0x4df   :  { %v1117_v9 = vadd.f32 %v1102_v18, %v5829_v17 }
 0x4e1   :  { %1125 = vst [vmem:[#allocation18 + $0x30] sm:$0xff] %v1117_v9 }
 0x4e4   :  { %v1104_v20 = vpop.f32.mrf.mxu3 }
 0x4e5   :  { %v1105_v21 = vadd.f32 %v5276_v5, %v1104_v20 }
 0x4e7   :  { %v1118_v10 = vadd.f32 %v1105_v21, %v5833_v58 }
 0x4e9   :  { %1126 = vst [vmem:[#allocation18 + $0x40] sm:$0xff] %v1118_v10 }
 0x4ec   :  { %v1106_v23 = vpop.f32.mrf.mxu3 }
 0x4ed   :  { %v1107_v24 = vadd.f32 %v5276_v5, %v1106_v23  ;;  %v5104_v23 = vld [vmem:[#allocation14 + $0x30] sm:$0xff] }
 0x4ee   :  { %1789 = vmatpush.bf16.msrb.mxu1 %v5104_v23 }
 0x4ef   :  { %v1119_v45 = vadd.f32 %v1107_v24, %v5835_v27  ;;  %v5277_v27 = vld [vmem:[%s6206_s8] ss:$0 sm:$0xff]  ;;  %v5103_v24 = vld [vmem:[#allocation14 + $0x28] sm:$0xff] }
 0x4f1   :  { %1127 = vst [vmem:[#allocation18 + $0x50] sm:$0xff] %v1119_v45  ;;  %v2075_v45 = vld [vmem:[#allocation3 + $0x80] sm:$0xff] }
 0x4f2   :  { %1790 = vmatpush.bf16.msrb.mxu1 %v5103_v24 }
 0x4f4   :  { %v1109_v28 = vpop.f32.mrf.mxu3 }
 0x4f5   :  { %v1110_v29 = vadd.f32 %v5276_v5, %v1109_v28  ;;  %v2083_v28 = vpack.c.bf16 %v2076_v25, %v2075_v45 }
 0x4f7   :  { %v1120_v17 = vadd.f32 %v1110_v29, %v5839_v38  ;;  %v5102_v29 = vld [vmem:[#allocation14 + $0x20] sm:$0xff] }
 0x4f8   :  { %1791 = vmatpush.bf16.msrb.mxu1 %v5102_v29 }
 0x4f9   :  { %1128 = vst [vmem:[#allocation18 + $0x60] sm:$0xff] %v1120_v17  ;;  %v5101_v17 = vld [vmem:[#allocation14 + $0x18] sm:$0xff] }
 0x4fc   :  { %v1111_v31 = vpop.f32.mrf.mxu3  ;;  %1792 = vmatpush.bf16.msrb.mxu1 %v5101_v17 }
 0x4fd   :  { %v1112_v3 = vadd.f32 %v5276_v5, %v1111_v31  ;;  %v2078_v31 = vld [vmem:[#allocation3 + $0x98] sm:$0xff] }
 0x4ff   :  { %v1121_v58 = vadd.f32 %v1112_v3, %v5841_v39  ;;  %v2084_v3 = vpack.c.bf16 %v2078_v31, %v2077_v30  ;;  %v5110_v30 = vld [vmem:[#allocation15 + $0x20] sm:$0xff] }
 0x501   :  { %1129 = vst [vmem:[#allocation18 + $0x70] sm:$0xff] %v1121_v58  ;;  %v5100_v58 = vld [vmem:[#allocation14 + $0x10] sm:$0xff] }
 0x502   :  { %1793 = vmatpush.bf16.msrb.mxu1 %v5100_v58 }
 0x504   :  { %v1571_v34 = vpop.f32.mrf.mxu3 }
 0x505   :  { %v1572_v37 = vadd.f32 %v5277_v27, %v1571_v34  ;;  %v2079_v34 = vld [vmem:[#allocation3 + $0xa0] sm:$0xff] }
 0x506   :  { %1794 = vmatpush.bf16.msrb.mxu1 %v5099_v33 }
 0x507   :  { %v1591_v38 = vmul.f32 0.01, %v1572_v37 }
 0x509   :  { %v1599_v50 = vmax.f32 %v1572_v37, %v1591_v38  ;;  %v2082_v38 = vld [vmem:[#allocation3 + $0xb8] sm:$0xff] }
 0x50a   :  { %1795 = vmatpush.bf16.msrb.mxu1 %v5098_v41 }
 0x50c   :  { %v1573_v48 = vpop.f32.mrf.mxu3 }
 0x50d   :  { %v1574_v46 = vadd.f32 %v5277_v27, %v1573_v48  ;;  %v2081_v48 = vld [vmem:[#allocation3 + $0xb0] sm:$0xff] }
 0x50f   :  { %v1592_v49 = vmul.f32 0.01, %v1574_v46 }
 0x511   :  { %v1600_v26 = vmax.f32 %v1574_v46, %v1592_v49  ;;  %v2086_v46 = vpack.c.bf16 %v2082_v38, %v2081_v48  ;;  %v5137_v49 = vld [vmem:[#allocation8 + $0x38] sm:$0xff]  ;;  %v5108_v38 = vld [vmem:[#allocation15 + $0x10] sm:$0xff] }
 0x512   :  { %2272 = vmatpush.bf16.msra.mxu1 %v5137_v49 }
 0x513   :  { %v1607_v53 = vpack.c.bf16 %v1600_v26, %v1599_v50  ;;  %v5136_v50 = vld [vmem:[#allocation8 + $0x30] sm:$0xff] }
 0x514   :  { %v1576_v39 = vpop.f32.mrf.mxu3 }
 0x515   :  { %1687 = vmatmul.bf16.vlgmr.msrb.gmra.mxu0 %v1607_v53  ;;  %v1577_v54 = vadd.f32 %v5277_v27, %v1576_v39  ;;  %v5135_v53 = vld [vmem:[#allocation8 + $0x28] sm:$0xff] }
 0x516   :  { %2273 = vmatpush.bf16.msra.mxu1 %v5136_v50 }
 0x517   :  { %v1593_v32 = vmul.f32 0.01, %v1577_v54 }
 0x519   :  { %v1601_v63 = vmax.f32 %v1577_v54, %v1593_v32 }
 0x51a   :  { %2274 = vmatpush.bf16.msra.mxu1 %v5135_v53 }
 0x51c   :  { %v1578_v2 = vpop.f32.mrf.mxu3 }
 0x51d   :  { %v1579_v62 = vadd.f32 %v5277_v27, %v1578_v2 }
 0x51f   :  { %v1594_v1 = vmul.f32 0.01, %v1579_v62 }
 0x521   :  { %v1602_v42 = vmax.f32 %v1579_v62, %v1594_v1  ;;  %v5134_v62 = vld [vmem:[#allocation8 + $0x20] sm:$0xff] }
 0x522   :  { %2275 = vmatpush.bf16.msra.mxu1 %v5134_v62 }
 0x523   :  { %v1608_v5 = vpack.c.bf16 %v1602_v42, %v1601_v63  ;;  %v5133_v42 = vld [vmem:[#allocation8 + $0x18] sm:$0xff] }
 0x524   :  { %v1581_v6 = vpop.f32.mrf.mxu3 }
 0x525   :  { %1692 = vmatmul.bf16.gmra.mxu0 %v1608_v5  ;;  %v1582_v55 = vadd.f32 %v5277_v27, %v1581_v6 }
 0x526   :  { %2276 = vmatpush.bf16.msra.mxu1 %v5133_v42 }
 0x527   :  { %v1595_v56 = vmul.f32 0.01, %v1582_v55 }
 0x529   :  { %v1603_v12 = vmax.f32 %v1582_v55, %v1595_v56  ;;  %v5132_v55 = vld [vmem:[#allocation8 + $0x10] sm:$0xff] }
 0x52a   :  { %2277 = vmatpush.bf16.msra.mxu1 %v5132_v55  ;;  %v5144_v55 = vld [vmem:[#allocation9 + $0x30] sm:$0xff] }
 0x52c   :  { %v1583_v35 = vpop.f32.mrf.mxu3 }
 0x52d   :  { %v1584_v11 = vadd.f32 %v5277_v27, %v1583_v35 }
 0x52f   :  { %v1596_v36 = vmul.f32 0.01, %v1584_v11 }
 0x531   :  { %v1604_v13 = vmax.f32 %v1584_v11, %v1596_v36 }
 0x533   :  { %v1609_v14 = vpack.c.bf16 %v1604_v13, %v1603_v12 }
 0x534   :  { %v1586_v15 = vpop.f32.mrf.mxu3 }
 0x535   :  { %1697 = vmatmul.bf16.gmra.mxu0 %v1609_v14  ;;  %v1587_v44 = vadd.f32 %v5277_v27, %v1586_v15  ;;  %v5130_v14 = vld [vmem:[#allocation8] sm:$0xff] }
 0x537   :  { %v1597_v9 = vmul.f32 0.01, %v1587_v44 }
 0x539   :  { %v1605_v21 = vmax.f32 %v1587_v44, %v1597_v9 }
 0x53c   :  { %v1588_v18 = vpop.f32.mrf.mxu3 }
 0x53d   :  { %v1589_v19 = vadd.f32 %v5277_v27, %v1588_v18  ;;  %v2080_v27 = vld [vmem:[#allocation3 + $0xa8] sm:$0xff] }
 0x53e   :  { %v2085_v37 = vpack.c.bf16 %v2080_v27, %v2079_v34 }
 0x53f   :  { %v1598_v20 = vmul.f32 0.01, %v1589_v19 }
 0x541   :  { %v1606_v10 = vmax.f32 %v1589_v19, %v1598_v20  ;;  %v5113_v20 = vld [vmem:[#allocation15 + $0x38] sm:$0xff] }
 0x542   :  { %1905 = vmatpush.bf16.msrb.mxu2 %v5113_v20 }
 0x543   :  { %v1610_v22 = vpack.c.bf16 %v1606_v10, %v1605_v21  ;;  %v5112_v10 = vld [vmem:[#allocation15 + $0x30] sm:$0xff] }
 0x545   :  { %1702 = vmatmul.bf16.gmra.mxu0 %v1610_v22 }
 0x546   :  { %1906 = vmatpush.bf16.msrb.mxu2 %v5112_v10  ;;  %v5140_v10 = vld [vmem:[#allocation9 + $0x10] sm:$0xff] }
 0x555   :  { %2163 = vmatmul.bf16.vlgmr.msra.gmra.mxu0 %v2083_v28 }
 0x565   :  { %2168 = vmatmul.bf16.gmra.mxu0 %v2084_v3 }
 0x575   :  { %2173 = vmatmul.bf16.gmra.mxu0 %v2085_v37  ;;  %v5109_v37 = vld [vmem:[#allocation15 + $0x18] sm:$0xff] }
 0x585   :  { %2178 = vmatmul.bf16.gmra.mxu0 %v2086_v46 }
 0x592   :  { %v1688_v26 = vpop.f32.mrf.mxu0 }
 0x593   :  { %v1689_v39 = vadd.f32 %v5278_v57, %v1688_v26 }
 0x595   :  { %v1708_v2 = vadd.f32 %v1689_v39, %v5855_v40 }
 0x59a   :  { %v1690_v54 = vpop.f32.mrf.mxu0 }
 0x59b   :  { %v1691_v59 = vadd.f32 %v5278_v57, %v1690_v54 }
 0x59d   :  { %v1709_v32 = vadd.f32 %v1691_v59, %v5858_v47  ;;  %v5131_v47 = vld [vmem:[#allocation8 + $0x8] sm:$0xff] }
 0x59e   :  { %2278 = vmatpush.bf16.msra.mxu1 %v5131_v47 }
 0x59f   :  { %v1716_v1 = vpack.c.bf16 %v1709_v32, %v1708_v2  ;;  %v5107_v2 = vld [vmem:[#allocation15 + $0x8] sm:$0xff] }
 0x5a1   :  { %1796 = vmatmul.bf16.vlgmr.msrb.gmra.mxu1 %v1716_v1  ;;  %v5106_v1 = vld [vmem:[#allocation15] sm:$0xff] }
 0x5a2   :  { %v1693_v63 = vpop.f32.mrf.mxu0  ;;  %2279 = vmatpush.bf16.msra.mxu1 %v5130_v14 }
 0x5a3   :  { %v1694_v43 = vadd.f32 %v5278_v57, %v1693_v63 }
 0x5a5   :  { %v1710_v7 = vadd.f32 %v1694_v43, %v5863_v51 }
 0x5aa   :  { %v1695_v5 = vpop.f32.mrf.mxu0 }
 0x5ab   :  { %v1696_v6 = vadd.f32 %v5278_v57, %v1695_v5 }
 0x5ad   :  { %v1711_v8 = vadd.f32 %v1696_v6, %v5866_v52 }
 0x5af   :  { %v1717_v35 = vpack.c.bf16 %v1711_v8, %v1710_v7  ;;  %v5145_v8 = vld [vmem:[#allocation9 + $0x38] sm:$0xff] }
 0x5b1   :  { %1801 = vmatmul.bf16.gmra.mxu1 %v1717_v35 }
 0x5b2   :  { %v1698_v40 = vpop.f32.mrf.mxu0 }
 0x5b3   :  { %v1699_v56 = vadd.f32 %v5278_v57, %v1698_v40  ;;  %v5280_v40 = vld [vmem:[%s6210_s12] ss:$0 sm:$0xff] }
 0x5b5   :  { %v1712_v12 = vadd.f32 %v1699_v56, %v5871_v60  ;;  %v5279_v60 = vld [vmem:[%s6223_s2] ss:$0 sm:$0xff]  ;;  %v5143_v56 = vld [vmem:[#allocation9 + $0x28] sm:$0xff] }
 0x5ba   :  { %v1700_v11 = vpop.f32.mrf.mxu0 }
 0x5bb   :  { %v1701_v36 = vadd.f32 %v5278_v57, %v1700_v11 }
 0x5bd   :  { %v1713_v13 = vadd.f32 %v1701_v36, %v5874_v61 }
 0x5bf   :  { %v1718_v15 = vpack.c.bf16 %v1713_v13, %v1712_v12 }
 0x5c1   :  { %1806 = vmatmul.bf16.gmra.mxu1 %v1718_v15 }
 0x5c2   :  { %v1703_v51 = vpop.f32.mrf.mxu0 }
 0x5c3   :  { %v1704_v52 = vadd.f32 %v5278_v57, %v1703_v51  ;;  %v5142_v51 = vld [vmem:[#allocation9 + $0x20] sm:$0xff] }
 0x5c5   :  { %v1714_v18 = vadd.f32 %v1704_v52, %v5879_v4 }
 0x5ca   :  { %v1705_v16 = vpop.f32.mrf.mxu0 }
 0x5cb   :  { %v1706_v44 = vadd.f32 %v5278_v57, %v1705_v16 }
 0x5cd   :  { %v1715_v9 = vadd.f32 %v1706_v44, %v5882_v0  ;;  %v5111_v0 = vld [vmem:[#allocation15 + $0x28] sm:$0xff] }
 0x5ce   :  { %1907 = vmatpush.bf16.msrb.mxu2 %v5111_v0 }
 0x5cf   :  { %v1719_v19 = vpack.c.bf16 %v1715_v9, %v1714_v18  ;;  %v5141_v18 = vld [vmem:[#allocation9 + $0x18] sm:$0xff] }
 0x5d1   :  { %1811 = vmatmul.bf16.gmra.mxu1 %v1719_v19 }
 0x5d2   :  { %v2164_v21 = vpop.f32.mrf.mxu0  ;;  %1908 = vmatpush.bf16.msrb.mxu2 %v5110_v30 }
 0x5d3   :  { %v2165_v61 = vadd.f32 %v5279_v60, %v2164_v21 }
 0x5d5   :  { %v2184_v23 = vmul.f32 0.01, %v2165_v61 }
 0x5d6   :  { %1909 = vmatpush.bf16.msrb.mxu2 %v5109_v37 }
 0x5d7   :  { %v5914_v25 = vmax.f32 %v2165_v61, %v2184_v23 }
 0x5da   :  { %v2166_v22 = vpop.f32.mrf.mxu0  ;;  %1910 = vmatpush.bf16.msrb.mxu2 %v5108_v38 }
 0x5db   :  { %v2167_v24 = vadd.f32 %v5279_v60, %v2166_v22 }
 0x5dd   :  { %v2185_v45 = vmul.f32 0.01, %v2167_v24 }
 0x5de   :  { %1911 = vmatpush.bf16.msrb.mxu2 %v5107_v2  ;;  %v5121_v2 = vld [vmem:[#allocation17 + $0x38] sm:$0xff] }
 0x5df   :  { %v5916_v4 = vmax.f32 %v2167_v24, %v2185_v45  ;;  %v5139_v45 = vld [vmem:[#allocation9 + $0x8] sm:$0xff]  ;;  %2022 = vmatpush.bf16.msrb.mxu3 %v5121_v2 }
 0x5e0   :  { %v5151_v2 = vld [vmem:[#allocation11 + $0x28] sm:$0xff] }
 0x5e1   :  { %v2200_v28 = vpack.c.bf16 %v5916_v4, %v5914_v25 }
 0x5e2   :  { %v2169_v29 = vpop.f32.mrf.mxu0  ;;  %1912 = vmatpush.bf16.msrb.mxu2 %v5106_v1 }
 0x5e3   :  { %2280 = vmatmul.bf16.vlgmr.msra.gmra.mxu1 %v2200_v28  ;;  %v2170_v17 = vadd.f32 %v5279_v60, %v2169_v29 }
 0x5e5   :  { %v2186_v3 = vmul.f32 0.01, %v2170_v17 }
 0x5e6   :  { %2389 = vmatpush.bf16.msra.mxu2 %v5145_v8 }
 0x5e7   :  { %v5920_v34 = vmax.f32 %v2170_v17, %v2186_v3  ;;  %v5138_v3 = vld [vmem:[#allocation9] sm:$0xff] }
 0x5ea   :  { %v2171_v31 = vpop.f32.mrf.mxu0  ;;  %2390 = vmatpush.bf16.msra.mxu2 %v5144_v55 }
 0x5eb   :  { %v2172_v58 = vadd.f32 %v5279_v60, %v2171_v31 }
 0x5ed   :  { %v2187_v33 = vmul.f32 0.01, %v2172_v58 }
 0x5ee   :  { %2391 = vmatpush.bf16.msra.mxu2 %v5143_v56 }
 0x5ef   :  { %v5922_v27 = vmax.f32 %v2172_v58, %v2187_v33 }
 0x5f1   :  { %v2201_v41 = vpack.c.bf16 %v5922_v27, %v5920_v34 }
 0x5f2   :  { %v2174_v48 = vpop.f32.mrf.mxu0  ;;  %2392 = vmatpush.bf16.msra.mxu2 %v5142_v51  ;;  %v5118_v51 = vld [vmem:[#allocation17 + $0x20] sm:$0xff] }
 0x5f3   :  { %2285 = vmatmul.bf16.gmra.mxu1 %v2201_v41  ;;  %v2175_v46 = vadd.f32 %v5279_v60, %v2174_v48 }
 0x5f5   :  { %v2188_v50 = vmul.f32 0.01, %v2175_v46 }
 0x5f6   :  { %2393 = vmatpush.bf16.msra.mxu2 %v5141_v18  ;;  %v5116_v18 = vld [vmem:[#allocation17 + $0x10] sm:$0xff] }
 0x5f7   :  { %v5926_v53 = vmax.f32 %v2175_v46, %v2188_v50 }
 0x5fa   :  { %v2176_v49 = vpop.f32.mrf.mxu0  ;;  %2394 = vmatpush.bf16.msra.mxu2 %v5140_v10 }
 0x5fb   :  { %v2177_v26 = vadd.f32 %v5279_v60, %v2176_v49 }
 0x5fd   :  { %v2189_v57 = vmul.f32 0.01, %v2177_v26 }
 0x5fe   :  { %2395 = vmatpush.bf16.msra.mxu2 %v5139_v45 }
 0x5ff   :  { %v5928_v39 = vmax.f32 %v2177_v26, %v2189_v57 }
 0x601   :  { %v2202_v54 = vpack.c.bf16 %v5928_v39, %v5926_v53 }
 0x602   :  { %v2179_v59 = vpop.f32.mrf.mxu0  ;;  %2396 = vmatpush.bf16.msra.mxu2 %v5138_v3 }
 0x603   :  { %2290 = vmatmul.bf16.gmra.mxu1 %v2202_v54  ;;  %v2180_v32 = vadd.f32 %v5279_v60, %v2179_v59  ;;  %v5281_v54 = vld [vmem:[%s6202_s4] ss:$0 sm:$0xff] }
 0x605   :  { %v2190_v63 = vmul.f32 0.01, %v2180_v32 }
 0x607   :  { %v5932_v5 = vmax.f32 %v2180_v32, %v2190_v63 }
 0x60a   :  { %v2181_v62 = vpop.f32.mrf.mxu0 }
 0x60b   :  { %v2182_v42 = vadd.f32 %v5279_v60, %v2181_v62 }
 0x60d   :  { %v2191_v43 = vmul.f32 0.01, %v2182_v42 }
 0x60f   :  { %v5934_v6 = vmax.f32 %v2182_v42, %v2191_v43 }
 0x611   :  { %v2203_v7 = vpack.c.bf16 %v5934_v6, %v5932_v5 }
 0x613   :  { %2295 = vmatmul.bf16.gmra.mxu1 %v2203_v7  ;;  %v5120_v7 = vld [vmem:[#allocation17 + $0x30] sm:$0xff] }
 0x614   :  { %2023 = vmatpush.bf16.msrb.mxu3 %v5120_v7 }
 0x61e   :  { %v1797_v35 = vpop.f32.mrf.mxu1 }
 0x61f   :  { %v1798_v47 = vadd.f32 %v5280_v40, %v1797_v35 }
 0x621   :  { %v1817_v36 = vmul.f32 0.01, %v1798_v47 }
 0x623   :  { %v5941_v14 = vmax.f32 %v1798_v47, %v1817_v36 }
 0x626   :  { %v1799_v11 = vpop.f32.mrf.mxu1 }
 0x627   :  { %v1800_v12 = vadd.f32 %v5280_v40, %v1799_v11 }
 0x629   :  { %v1818_v13 = vmul.f32 0.01, %v1800_v12 }
 0x62b   :  { %v5943_v15 = vmax.f32 %v1800_v12, %v1818_v13 }
 0x62d   :  { %v1833_v52 = vpack.c.bf16 %v5943_v15, %v5941_v14 }
 0x62e   :  { %v1802_v16 = vpop.f32.mrf.mxu1 }
 0x62f   :  { %1913 = vmatmul.bf16.vlgmr.msrb.gmra.mxu2 %v1833_v52  ;;  %v1803_v44 = vadd.f32 %v5280_v40, %v1802_v16 }
 0x631   :  { %v1819_v19 = vmul.f32 0.01, %v1803_v44 }
 0x633   :  { %v5947_v60 = vmax.f32 %v1803_v44, %v1819_v19  ;;  %v5117_v44 = vld [vmem:[#allocation17 + $0x18] sm:$0xff] }
 0x636   :  { %v1804_v9 = vpop.f32.mrf.mxu1 }
 0x637   :  { %v1805_v20 = vadd.f32 %v5280_v40, %v1804_v9 }
 0x639   :  { %v1820_v21 = vmul.f32 0.01, %v1805_v20 }
 0x63b   :  { %v5949_v61 = vmax.f32 %v1805_v20, %v1820_v21 }
 0x63d   :  { %v1834_v22 = vpack.c.bf16 %v5949_v61, %v5947_v60 }
 0x63e   :  { %v1807_v23 = vpop.f32.mrf.mxu1 }
 0x63f   :  { %1918 = vmatmul.bf16.gmra.mxu2 %v1834_v22  ;;  %v1808_v24 = vadd.f32 %v5280_v40, %v1807_v23 }
 0x641   :  { %v1821_v28 = vmul.f32 0.01, %v1808_v24 }
 0x643   :  { %v5953_v30 = vmax.f32 %v1808_v24, %v1821_v28  ;;  %v5115_v28 = vld [vmem:[#allocation17 + $0x8] sm:$0xff] }
 0x646   :  { %v1809_v0 = vpop.f32.mrf.mxu1 }
 0x647   :  { %v1810_v29 = vadd.f32 %v5280_v40, %v1809_v0 }
 0x649   :  { %v1822_v17 = vmul.f32 0.01, %v1810_v29 }
 0x64b   :  { %v5955_v31 = vmax.f32 %v1810_v29, %v1822_v17 }
 0x64d   :  { %v1835_v58 = vpack.c.bf16 %v5955_v31, %v5953_v30 }
 0x64e   :  { %v1812_v33 = vpop.f32.mrf.mxu1 }
 0x64f   :  { %1923 = vmatmul.bf16.gmra.mxu2 %v1835_v58  ;;  %v1813_v37 = vadd.f32 %v5280_v40, %v1812_v33 }
 0x651   :  { %v1823_v48 = vmul.f32 0.01, %v1813_v37 }
 0x653   :  { %v5959_v49 = vmax.f32 %v1813_v37, %v1823_v48 }
 0x656   :  { %v1814_v41 = vpop.f32.mrf.mxu1 }
 0x657   :  { %v1815_v38 = vadd.f32 %v5280_v40, %v1814_v41  ;;  %v5119_v40 = vld [vmem:[#allocation17 + $0x28] sm:$0xff]  ;;  %v5114_v41 = vld [vmem:[#allocation17] sm:$0xff] }
 0x658   :  { %2024 = vmatpush.bf16.msrb.mxu3 %v5119_v40 }
 0x659   :  { %v1824_v46 = vmul.f32 0.01, %v1815_v38 }
 0x65b   :  { %v5961_v50 = vmax.f32 %v1815_v38, %v1824_v46  ;;  %v5153_v38 = vld [vmem:[#allocation11 + $0x38] sm:$0xff]  ;;  %v5152_v46 = vld [vmem:[#allocation11 + $0x30] sm:$0xff] }
 0x65c   :  { %2025 = vmatpush.bf16.msrb.mxu3 %v5118_v51 }
 0x65d   :  { %v1836_v26 = vpack.c.bf16 %v5961_v50, %v5959_v49 }
 0x65f   :  { %1928 = vmatmul.bf16.gmra.mxu2 %v1836_v26 }
 0x660   :  { %v2281_v57 = vpop.f32.mrf.mxu1  ;;  %2026 = vmatpush.bf16.msrb.mxu3 %v5117_v44 }
 0x661   :  { %v2282_v59 = vadd.f32 %v5281_v54, %v2281_v57  ;;  %v5282_v57 = vld [vmem:[%s6212_s14] ss:$0 sm:$0xff] }
 0x663   :  { %v2301_v62 = vmul.f32 0.01, %v2282_v59 }
 0x664   :  { %2027 = vmatpush.bf16.msrb.mxu3 %v5116_v18  ;;  %v5146_v18 = vld [vmem:[#allocation11] sm:$0xff] }
 0x665   :  { %v2309_v42 = vmax.f32 %v2282_v59, %v2301_v62 }
 0x668   :  { %v2283_v32 = vpop.f32.mrf.mxu1  ;;  %2028 = vmatpush.bf16.msrb.mxu3 %v5115_v28 }
 0x669   :  { %v2284_v1 = vadd.f32 %v5281_v54, %v2283_v32 }
 0x66b   :  { %v2302_v63 = vmul.f32 0.01, %v2284_v1 }
 0x66c   :  { %2029 = vmatpush.bf16.msrb.mxu3 %v5114_v41  ;;  %v5283_v41 = vld [vmem:[%s6204_s6] ss:$0 sm:$0xff] }
 0x66d   :  { %v2310_v43 = vmax.f32 %v2284_v1, %v2302_v63 }
 0x66f   :  { %v2317_v8 = vpack.c.bf16 %v2310_v43, %v2309_v42  ;;  %v5150_v43 = vld [vmem:[#allocation11 + $0x20] sm:$0xff] }
 0x670   :  { %v2286_v55 = vpop.f32.mrf.mxu1  ;;  %2498 = vmatpush.bf16.msra.mxu3 %v5153_v38 }
 0x671   :  { %2397 = vmatmul.bf16.vlgmr.msra.gmra.mxu2 %v2317_v8  ;;  %v2287_v35 = vadd.f32 %v5281_v54, %v2286_v55 }
 0x673   :  { %v2303_v56 = vmul.f32 0.01, %v2287_v35 }
 0x674   :  { %2499 = vmatpush.bf16.msra.mxu3 %v5152_v46 }
 0x675   :  { %v2311_v12 = vmax.f32 %v2287_v35, %v2303_v56  ;;  %v5149_v35 = vld [vmem:[#allocation11 + $0x18] sm:$0xff] }
 0x678   :  { %v2288_v47 = vpop.f32.mrf.mxu1  ;;  %2500 = vmatpush.bf16.msra.mxu3 %v5151_v2 }
 0x679   :  { %v2289_v11 = vadd.f32 %v5281_v54, %v2288_v47 }
 0x67b   :  { %v2304_v36 = vmul.f32 0.01, %v2289_v11 }
 0x67c   :  { %2501 = vmatpush.bf16.msra.mxu3 %v5150_v43 }
 0x67d   :  { %v2312_v13 = vmax.f32 %v2289_v11, %v2304_v36 }
 0x67f   :  { %v2318_v52 = vpack.c.bf16 %v2312_v13, %v2311_v12  ;;  %v5148_v13 = vld [vmem:[#allocation11 + $0x10] sm:$0xff] }
 0x680   :  { %v2291_v16 = vpop.f32.mrf.mxu1  ;;  %2502 = vmatpush.bf16.msra.mxu3 %v5149_v35 }
 0x681   :  { %2402 = vmatmul.bf16.gmra.mxu2 %v2318_v52  ;;  %v2292_v9 = vadd.f32 %v5281_v54, %v2291_v16  ;;  %v5147_v16 = vld [vmem:[#allocation11 + $0x8] sm:$0xff] }
 0x683   :  { %v2305_v20 = vmul.f32 0.01, %v2292_v9 }
 0x684   :  { %2503 = vmatpush.bf16.msra.mxu3 %v5148_v13 }
 0x685   :  { %v2313_v22 = vmax.f32 %v2292_v9, %v2305_v20 }
 0x688   :  { %v2293_v19 = vpop.f32.mrf.mxu1  ;;  %2504 = vmatpush.bf16.msra.mxu3 %v5147_v16 }
 0x689   :  { %v2294_v21 = vadd.f32 %v5281_v54, %v2293_v19 }
 0x68b   :  { %v2306_v10 = vmul.f32 0.01, %v2294_v21 }
 0x68c   :  { %2505 = vmatpush.bf16.msra.mxu3 %v5146_v18  ;;  %v5158_v18 = vld [vmem:[#allocation12 + $0x20] sm:$0xff] }
 0x68d   :  { %v2314_v23 = vmax.f32 %v2294_v21, %v2306_v10 }
 0x68f   :  { %v2319_v24 = vpack.c.bf16 %v2314_v23, %v2313_v22 }
 0x690   :  { %v2296_v45 = vpop.f32.mrf.mxu1 }
 0x691   :  { %2407 = vmatmul.bf16.gmra.mxu2 %v2319_v24  ;;  %v2297_v0 = vadd.f32 %v5281_v54, %v2296_v45 }
 0x693   :  { %v2307_v17 = vmul.f32 0.01, %v2297_v0 }
 0x695   :  { %v2315_v33 = vmax.f32 %v2297_v0, %v2307_v17 }
 0x698   :  { %v2298_v29 = vpop.f32.mrf.mxu1 }
 0x699   :  { %v2299_v3 = vadd.f32 %v5281_v54, %v2298_v29 }
 0x69b   :  { %v2308_v58 = vmul.f32 0.01, %v2299_v3 }
 0x69d   :  { %v2316_v37 = vmax.f32 %v2299_v3, %v2308_v58 }
 0x69f   :  { %v2320_v48 = vpack.c.bf16 %v2316_v37, %v2315_v33 }
 0x6a1   :  { %2412 = vmatmul.bf16.gmra.mxu2 %v2320_v48 }
 0x6b2   :  { %v1914_v26 = vpop.f32.mrf.mxu2 }
 0x6b3   :  { %v1915_v59 = vadd.f32 %v5282_v57, %v1914_v26 }
 0x6b5   :  { %v1934_v32 = vmul.f32 0.01, %v1915_v59 }
 0x6b7   :  { %v1942_v63 = vmax.f32 %v1915_v59, %v1934_v32 }
 0x6ba   :  { %v1916_v54 = vpop.f32.mrf.mxu2 }
 0x6bb   :  { %v1917_v62 = vadd.f32 %v5282_v57, %v1916_v54 }
 0x6bd   :  { %v1935_v1 = vmul.f32 0.01, %v1917_v62 }
 0x6bf   :  { %v1943_v42 = vmax.f32 %v1917_v62, %v1935_v1 }
 0x6c1   :  { %v1950_v7 = vpack.c.bf16 %v1943_v42, %v1942_v63 }
 0x6c2   :  { %v1919_v8 = vpop.f32.mrf.mxu2 }
 0x6c3   :  { %2030 = vmatmul.bf16.vlgmr.msrb.gmra.mxu3 %v1950_v7  ;;  %v1920_v55 = vadd.f32 %v5282_v57, %v1919_v8 }
 0x6c5   :  { %v1936_v47 = vmul.f32 0.01, %v1920_v55 }
 0x6c7   :  { %v1944_v36 = vmax.f32 %v1920_v55, %v1936_v47 }
 0x6ca   :  { %v1921_v40 = vpop.f32.mrf.mxu2 }
 0x6cb   :  { %v1922_v56 = vadd.f32 %v5282_v57, %v1921_v40 }
 0x6cd   :  { %v1937_v11 = vmul.f32 0.01, %v1922_v56 }
 0x6cf   :  { %v1945_v12 = vmax.f32 %v1922_v56, %v1937_v11 }
 0x6d1   :  { %v1951_v51 = vpack.c.bf16 %v1945_v12, %v1944_v36  ;;  %v5284_v36 = vld [vmem:[%s6214_s16] ss:$0 sm:$0xff]  ;;  %v5160_v12 = vld [vmem:[#allocation12 + $0x30] sm:$0xff] }
 0x6d2   :  { %v1924_v52 = vpop.f32.mrf.mxu2 }
 0x6d3   :  { %2035 = vmatmul.bf16.gmra.mxu3 %v1951_v51  ;;  %v1925_v44 = vadd.f32 %v5282_v57, %v1924_v52  ;;  %v5159_v52 = vld [vmem:[#allocation12 + $0x28] sm:$0xff] }
 0x6d5   :  { %v1938_v19 = vmul.f32 0.01, %v1925_v44 }
 0x6d7   :  { %v1946_v10 = vmax.f32 %v1925_v44, %v1938_v19 }
 0x6da   :  { %v1926_v9 = vpop.f32.mrf.mxu2 }
 0x6db   :  { %v1927_v20 = vadd.f32 %v5282_v57, %v1926_v9 }
 0x6dd   :  { %v1939_v21 = vmul.f32 0.01, %v1927_v20 }
 0x6df   :  { %v1947_v22 = vmax.f32 %v1927_v20, %v1939_v21  ;;  %v5157_v21 = vld [vmem:[#allocation12 + $0x18] sm:$0xff] }
 0x6e1   :  { %v1952_v23 = vpack.c.bf16 %v1947_v22, %v1946_v10 }
 0x6e2   :  { %v1929_v24 = vpop.f32.mrf.mxu2 }
 0x6e3   :  { %2040 = vmatmul.bf16.gmra.mxu3 %v1952_v23  ;;  %v1930_v45 = vadd.f32 %v5282_v57, %v1929_v24  ;;  %v5156_v23 = vld [vmem:[#allocation12 + $0x10] sm:$0xff] }
 0x6e5   :  { %v1940_v28 = vmul.f32 0.01, %v1930_v45 }
 0x6e7   :  { %v1948_v3 = vmax.f32 %v1930_v45, %v1940_v28 }
 0x6ea   :  { %v1931_v0 = vpop.f32.mrf.mxu2 }
 0x6eb   :  { %v1932_v29 = vadd.f32 %v5282_v57, %v1931_v0  ;;  %v5155_v0 = vld [vmem:[#allocation12 + $0x8] sm:$0xff] }
 0x6ed   :  { %v1941_v17 = vmul.f32 0.01, %v1932_v29 }
 0x6ef   :  { %v1949_v58 = vmax.f32 %v1932_v29, %v1941_v17  ;;  %v5154_v17 = vld [vmem:[#allocation12] sm:$0xff] }
 0x6f1   :  { %v1953_v33 = vpack.c.bf16 %v1949_v58, %v1948_v3 }
 0x6f3   :  { %2045 = vmatmul.bf16.gmra.mxu3 %v1953_v33  ;;  %v5193_v33 = vld [vmem:[#allocation6 + $0x38] sm:$0xff] }
 0x6f4   :  { %v2398_v37 = vpop.f32.mrf.mxu2 }
 0x6f5   :  { %v2399_v48 = vadd.f32 %v5283_v41, %v2398_v37 }
 0x6f7   :  { %v5975_v26 = vadd.f32 %v2399_v48, %v5914_v25  ;;  %v5192_v48 = vld [vmem:[#allocation6 + $0x30] sm:$0xff] }
 0x6fc   :  { %v2400_v38 = vpop.f32.mrf.mxu2 }
 0x6fd   :  { %v2401_v46 = vadd.f32 %v5283_v41, %v2400_v38 }
 0x6ff   :  { %v5978_v59 = vadd.f32 %v2401_v46, %v5916_v4 }
 0x701   :  { %v2426_v57 = vpack.c.bf16 %v5978_v59, %v5975_v26 }
 0x703   :  { %2506 = vmatmul.bf16.vlgmr.msra.gmra.mxu3 %v2426_v57  ;;  %v5191_v57 = vld [vmem:[#allocation6 + $0x28] sm:$0xff] }
 0x704   :  { %v2403_v2 = vpop.f32.mrf.mxu2 }
 0x705   :  { %v2404_v54 = vadd.f32 %v5283_v41, %v2403_v2 }
 0x707   :  { %v5983_v1 = vadd.f32 %v2404_v54, %v5920_v34 }
 0x70c   :  { %v2405_v32 = vpop.f32.mrf.mxu2 }
 0x70d   :  { %v2406_v62 = vadd.f32 %v5283_v41, %v2405_v32 }
 0x70f   :  { %v5986_v63 = vadd.f32 %v2406_v62, %v5922_v27 }
 0x711   :  { %v2427_v25 = vpack.c.bf16 %v5986_v63, %v5983_v1 }
 0x713   :  { %2511 = vmatmul.bf16.gmra.mxu3 %v2427_v25 }
 0x714   :  { %v2408_v4 = vpop.f32.mrf.mxu2 }
 0x715   :  { %v2409_v42 = vadd.f32 %v5283_v41, %v2408_v4  ;;  %v5190_v4 = vld [vmem:[#allocation6 + $0x20] sm:$0xff] }
 0x717   :  { %v5991_v8 = vadd.f32 %v2409_v42, %v5926_v53 }
 0x71c   :  { %v2410_v43 = vpop.f32.mrf.mxu2 }
 0x71d   :  { %v2411_v7 = vadd.f32 %v5283_v41, %v2410_v43 }
 0x71f   :  { %v5994_v55 = vadd.f32 %v2411_v7, %v5928_v39  ;;  %v5161_v39 = vld [vmem:[#allocation12 + $0x38] sm:$0xff] }
 0x720   :  { %2615 = vmatpush.bf16.msrb.mxu0 %v5161_v39  ;;  %v5189_v7 = vld [vmem:[#allocation6 + $0x18] sm:$0xff]  ;;  %v5188_v39 = vld [vmem:[#allocation6 + $0x10] sm:$0xff] }
 0x721   :  { %v2428_v34 = vpack.c.bf16 %v5994_v55, %v5991_v8 }
 0x723   :  { %2516 = vmatmul.bf16.gmra.mxu3 %v2428_v34 }
 0x724   :  { %v2413_v27 = vpop.f32.mrf.mxu2  ;;  %2616 = vmatpush.bf16.msrb.mxu0 %v5160_v12 }
 0x725   :  { %v2414_v35 = vadd.f32 %v5283_v41, %v2413_v27 }
 0x727   :  { %v5999_v56 = vadd.f32 %v2414_v35, %v5932_v5 }
 0x728   :  { %2617 = vmatpush.bf16.msrb.mxu0 %v5159_v52 }
 0x72c   :  { %v2415_v40 = vpop.f32.mrf.mxu2  ;;  %2618 = vmatpush.bf16.msrb.mxu0 %v5158_v18 }
 0x72d   :  { %v2416_v47 = vadd.f32 %v5283_v41, %v2415_v40 }
 0x72f   :  { %v6002_v11 = vadd.f32 %v2416_v47, %v5934_v6 }
 0x730   :  { %2619 = vmatpush.bf16.msrb.mxu0 %v5157_v21  ;;  %v5169_v21 = vld [vmem:[#allocation14 + $0x38] sm:$0xff] }
 0x731   :  { %v2429_v53 = vpack.c.bf16 %v6002_v11, %v5999_v56  ;;  %2724 = vmatpush.bf16.msrb.mxu1 %v5169_v21 }
 0x733   :  { %2521 = vmatmul.bf16.gmra.mxu3 %v2429_v53 }
 0x734   :  { %2620 = vmatpush.bf16.msrb.mxu0 %v5156_v23 }
 0x738   :  { %2621 = vmatpush.bf16.msrb.mxu0 %v5155_v0 }
 0x73c   :  { %2622 = vmatpush.bf16.msrb.mxu0 %v5154_v17  ;;  %v3012_v17 = vld [vmem:[#allocation3 + $0xc8] sm:$0xff] }
 0x740   :  { %3091 = vmatpush.bf16.msra.mxu0 %v5193_v33  ;;  %v3013_v33 = vld [vmem:[#allocation3 + $0xd0] sm:$0xff] }
 0x744   :  { %3092 = vmatpush.bf16.msra.mxu0 %v5192_v48  ;;  %v5163_v48 = vld [vmem:[#allocation14 + $0x8] sm:$0xff] }
 0x746   :  { %v2031_v13 = vpop.f32.mrf.mxu3 }
 0x747   :  { %v2032_v51 = vadd.f32 %v5284_v36, %v2031_v13  ;;  %v5187_v13 = vld [vmem:[#allocation6 + $0x8] sm:$0xff] }
 0x748   :  { %3093 = vmatpush.bf16.msra.mxu0 %v5191_v57  ;;  %v5162_v57 = vld [vmem:[#allocation14] sm:$0xff] }
 0x749   :  { %v2051_v5 = vadd.f32 %v2032_v51, %v5941_v14  ;;  %v5186_v51 = vld [vmem:[#allocation6] sm:$0xff] }
 0x74b   :  { %2059 = vst [vmem:[#allocation18 + $0x80] sm:$0xff] %v2051_v5 }
 0x74c   :  { %3094 = vmatpush.bf16.msra.mxu0 %v5190_v4  ;;  %v5286_v4 = vld [vmem:[%s6208_s10] ss:$0 sm:$0xff] }
 0x74e   :  { %v2033_v6 = vpop.f32.mrf.mxu3 }
 0x74f   :  { %v2034_v16 = vadd.f32 %v5284_v36, %v2033_v6 }
 0x750   :  { %3095 = vmatpush.bf16.msra.mxu0 %v5189_v7 }
 0x751   :  { %v2052_v44 = vadd.f32 %v2034_v16, %v5943_v15 }
 0x753   :  { %2060 = vst [vmem:[#allocation18 + $0x90] sm:$0xff] %v2052_v44 }
 0x754   :  { %3096 = vmatpush.bf16.msra.mxu0 %v5188_v39 }
 0x756   :  { %v2036_v9 = vpop.f32.mrf.mxu3 }
 0x757   :  { %v2037_v19 = vadd.f32 %v5284_v36, %v2036_v9 }
 0x758   :  { %3097 = vmatpush.bf16.msra.mxu0 %v5187_v13 }
 0x759   :  { %v2053_v20 = vadd.f32 %v2037_v19, %v5947_v60 }
 0x75b   :  { %2061 = vst [vmem:[#allocation18 + $0xa0] sm:$0xff] %v2053_v20 }
 0x75c   :  { %3098 = vmatpush.bf16.msra.mxu0 %v5186_v51 }
 0x75e   :  { %v2038_v10 = vpop.f32.mrf.mxu3 }
 0x75f   :  { %v2039_v22 = vadd.f32 %v5284_v36, %v2038_v10 }
 0x761   :  { %v2054_v14 = vadd.f32 %v2039_v22, %v5949_v61 }
 0x763   :  { %2062 = vst [vmem:[#allocation18 + $0xb0] sm:$0xff] %v2054_v14 }
 0x766   :  { %v2041_v24 = vpop.f32.mrf.mxu3 }
 0x767   :  { %v2042_v45 = vadd.f32 %v5284_v36, %v2041_v24 }
 0x769   :  { %v2055_v15 = vadd.f32 %v2042_v45, %v5953_v30 }
 0x76b   :  { %2063 = vst [vmem:[#allocation18 + $0xc0] sm:$0xff] %v2055_v15 }
 0x76e   :  { %v2043_v28 = vpop.f32.mrf.mxu3 }
 0x76f   :  { %v2044_v29 = vadd.f32 %v5284_v36, %v2043_v28  ;;  %v5168_v28 = vld [vmem:[#allocation14 + $0x30] sm:$0xff] }
 0x770   :  { %2725 = vmatpush.bf16.msrb.mxu1 %v5168_v28 }
 0x771   :  { %v2056_v60 = vadd.f32 %v2044_v29, %v5955_v31  ;;  %v5285_v31 = vld [vmem:[%s6206_s8] ss:$0 sm:$0xff]  ;;  %v5167_v29 = vld [vmem:[#allocation14 + $0x28] sm:$0xff] }
 0x773   :  { %2064 = vst [vmem:[#allocation18 + $0xd0] sm:$0xff] %v2056_v60  ;;  %v3011_v60 = vld [vmem:[#allocation3 + $0xc0] sm:$0xff] }
 0x774   :  { %2726 = vmatpush.bf16.msrb.mxu1 %v5167_v29 }
 0x776   :  { %v2046_v3 = vpop.f32.mrf.mxu3 }
 0x777   :  { %v2047_v58 = vadd.f32 %v5284_v36, %v2046_v3  ;;  %v3019_v3 = vpack.c.bf16 %v3012_v17, %v3011_v60 }
 0x779   :  { %v2057_v61 = vadd.f32 %v2047_v58, %v5959_v49  ;;  %v5166_v58 = vld [vmem:[#allocation14 + $0x20] sm:$0xff] }
 0x77a   :  { %2727 = vmatpush.bf16.msrb.mxu1 %v5166_v58 }
 0x77b   :  { %2065 = vst [vmem:[#allocation18 + $0xe0] sm:$0xff] %v2057_v61  ;;  %v5165_v61 = vld [vmem:[#allocation14 + $0x18] sm:$0xff] }
 0x77e   :  { %v2048_v37 = vpop.f32.mrf.mxu3  ;;  %2728 = vmatpush.bf16.msrb.mxu1 %v5165_v61 }
 0x77f   :  { %v2049_v41 = vadd.f32 %v5284_v36, %v2048_v37  ;;  %v3014_v37 = vld [vmem:[#allocation3 + $0xd8] sm:$0xff] }
 0x781   :  { %v2058_v30 = vadd.f32 %v2049_v41, %v5961_v50  ;;  %v3020_v41 = vpack.c.bf16 %v3014_v37, %v3013_v33  ;;  %v5174_v33 = vld [vmem:[#allocation15 + $0x20] sm:$0xff] }
 0x783   :  { %2066 = vst [vmem:[#allocation18 + $0xf0] sm:$0xff] %v2058_v30  ;;  %v5164_v30 = vld [vmem:[#allocation14 + $0x10] sm:$0xff] }
 0x784   :  { %2729 = vmatpush.bf16.msrb.mxu1 %v5164_v30 }
 0x786   :  { %v2507_v38 = vpop.f32.mrf.mxu3 }
 0x787   :  { %v2508_v46 = vadd.f32 %v5285_v31, %v2507_v38  ;;  %v3015_v38 = vld [vmem:[#allocation3 + $0xe0] sm:$0xff] }
 0x788   :  { %2730 = vmatpush.bf16.msrb.mxu1 %v5163_v48 }
 0x789   :  { %v2527_v49 = vmul.f32 0.01, %v2508_v46 }
 0x78b   :  { %v2535_v62 = vmax.f32 %v2508_v46, %v2527_v49  ;;  %v3018_v49 = vld [vmem:[#allocation3 + $0xf8] sm:$0xff] }
 0x78c   :  { %2731 = vmatpush.bf16.msrb.mxu1 %v5162_v57 }
 0x78e   :  { %v2509_v2 = vpop.f32.mrf.mxu3 }
 0x78f   :  { %v2510_v54 = vadd.f32 %v5285_v31, %v2509_v2  ;;  %v3017_v2 = vld [vmem:[#allocation3 + $0xf0] sm:$0xff] }
 0x791   :  { %v2528_v32 = vmul.f32 0.01, %v2510_v54 }
 0x793   :  { %v2536_v25 = vmax.f32 %v2510_v54, %v2528_v32  ;;  %v3022_v54 = vpack.c.bf16 %v3018_v49, %v3017_v2  ;;  %v5201_v32 = vld [vmem:[#allocation8 + $0x38] sm:$0xff]  ;;  %v5172_v49 = vld [vmem:[#allocation15 + $0x10] sm:$0xff] }
 0x794   :  { %3208 = vmatpush.bf16.msra.mxu1 %v5201_v32 }
 0x795   :  { %v2543_v42 = vpack.c.bf16 %v2536_v25, %v2535_v62  ;;  %v5200_v62 = vld [vmem:[#allocation8 + $0x30] sm:$0xff] }
 0x796   :  { %v2512_v50 = vpop.f32.mrf.mxu3 }
 0x797   :  { %2623 = vmatmul.bf16.vlgmr.msrb.gmra.mxu0 %v2543_v42  ;;  %v2513_v43 = vadd.f32 %v5285_v31, %v2512_v50  ;;  %v5199_v42 = vld [vmem:[#allocation8 + $0x28] sm:$0xff] }
 0x798   :  { %3209 = vmatpush.bf16.msra.mxu1 %v5200_v62 }
 0x799   :  { %v2529_v27 = vmul.f32 0.01, %v2513_v43 }
 0x79b   :  { %v2537_v47 = vmax.f32 %v2513_v43, %v2529_v27 }
 0x79c   :  { %3210 = vmatpush.bf16.msra.mxu1 %v5199_v42 }
 0x79e   :  { %v2514_v34 = vpop.f32.mrf.mxu3 }
 0x79f   :  { %v2515_v35 = vadd.f32 %v5285_v31, %v2514_v34 }
 0x7a1   :  { %v2530_v40 = vmul.f32 0.01, %v2515_v35 }
 0x7a3   :  { %v2538_v53 = vmax.f32 %v2515_v35, %v2530_v40  ;;  %v5198_v35 = vld [vmem:[#allocation8 + $0x20] sm:$0xff] }
 0x7a4   :  { %3211 = vmatpush.bf16.msra.mxu1 %v5198_v35 }
 0x7a5   :  { %v2544_v36 = vpack.c.bf16 %v2538_v53, %v2537_v47  ;;  %v5197_v53 = vld [vmem:[#allocation8 + $0x18] sm:$0xff] }
 0x7a6   :  { %v2517_v12 = vpop.f32.mrf.mxu3 }
 0x7a7   :  { %2628 = vmatmul.bf16.gmra.mxu0 %v2544_v36  ;;  %v2518_v5 = vadd.f32 %v5285_v31, %v2517_v12 }
 0x7a8   :  { %3212 = vmatpush.bf16.msra.mxu1 %v5197_v53 }
 0x7a9   :  { %v2531_v6 = vmul.f32 0.01, %v2518_v5 }
 0x7ab   :  { %v2539_v18 = vmax.f32 %v2518_v5, %v2531_v6  ;;  %v5196_v5 = vld [vmem:[#allocation8 + $0x10] sm:$0xff] }
 0x7ac   :  { %3213 = vmatpush.bf16.msra.mxu1 %v5196_v5  ;;  %v5208_v5 = vld [vmem:[#allocation9 + $0x30] sm:$0xff] }
 0x7ae   :  { %v2519_v52 = vpop.f32.mrf.mxu3 }
 0x7af   :  { %v2520_v16 = vadd.f32 %v5285_v31, %v2519_v52 }
 0x7b1   :  { %v2532_v44 = vmul.f32 0.01, %v2520_v16 }
 0x7b3   :  { %v2540_v9 = vmax.f32 %v2520_v16, %v2532_v44 }
 0x7b5   :  { %v2545_v19 = vpack.c.bf16 %v2540_v9, %v2539_v18 }
 0x7b6   :  { %v2522_v20 = vpop.f32.mrf.mxu3 }
 0x7b7   :  { %2633 = vmatmul.bf16.gmra.mxu0 %v2545_v19  ;;  %v2523_v10 = vadd.f32 %v5285_v31, %v2522_v20  ;;  %v5194_v19 = vld [vmem:[#allocation8] sm:$0xff] }
 0x7b9   :  { %v2533_v14 = vmul.f32 0.01, %v2523_v10 }
 0x7bb   :  { %v2541_v45 = vmax.f32 %v2523_v10, %v2533_v14 }
 0x7be   :  { %v2524_v22 = vpop.f32.mrf.mxu3 }
 0x7bf   :  { %v2525_v23 = vadd.f32 %v5285_v31, %v2524_v22  ;;  %v3016_v31 = vld [vmem:[#allocation3 + $0xe8] sm:$0xff] }
 0x7c0   :  { %v3021_v46 = vpack.c.bf16 %v3016_v31, %v3015_v38 }
 0x7c1   :  { %v2534_v24 = vmul.f32 0.01, %v2525_v23 }
 0x7c3   :  { %v2542_v15 = vmax.f32 %v2525_v23, %v2534_v24  ;;  %v5177_v24 = vld [vmem:[#allocation15 + $0x38] sm:$0xff] }
 0x7c4   :  { %2841 = vmatpush.bf16.msrb.mxu2 %v5177_v24 }
 0x7c5   :  { %v2546_v0 = vpack.c.bf16 %v2542_v15, %v2541_v45  ;;  %v5176_v15 = vld [vmem:[#allocation15 + $0x30] sm:$0xff] }
 0x7c7   :  { %2638 = vmatmul.bf16.gmra.mxu0 %v2546_v0 }
 0x7c8   :  { %2842 = vmatpush.bf16.msrb.mxu2 %v5176_v15  ;;  %v5204_v15 = vld [vmem:[#allocation9 + $0x10] sm:$0xff] }
 0x7d7   :  { %3099 = vmatmul.bf16.vlgmr.msra.gmra.mxu0 %v3019_v3 }
 0x7e7   :  { %3104 = vmatmul.bf16.gmra.mxu0 %v3020_v41 }
 0x7f7   :  { %3109 = vmatmul.bf16.gmra.mxu0 %v3021_v46  ;;  %v5173_v46 = vld [vmem:[#allocation15 + $0x18] sm:$0xff] }
 0x807   :  { %3114 = vmatmul.bf16.gmra.mxu0 %v3022_v54 }
 0x814   :  { %v2624_v25 = vpop.f32.mrf.mxu0 }
 0x815   :  { %v2625_v50 = vadd.f32 %v5286_v4, %v2624_v25 }
 0x817   :  { %v2644_v34 = vadd.f32 %v2625_v50, %v5975_v26 }
 0x81c   :  { %v2626_v43 = vpop.f32.mrf.mxu0 }
 0x81d   :  { %v2627_v7 = vadd.f32 %v5286_v4, %v2626_v43 }
 0x81f   :  { %v2645_v27 = vadd.f32 %v2627_v7, %v5978_v59  ;;  %v5195_v59 = vld [vmem:[#allocation8 + $0x8] sm:$0xff] }
 0x820   :  { %3214 = vmatpush.bf16.msra.mxu1 %v5195_v59 }
 0x821   :  { %v2652_v40 = vpack.c.bf16 %v2645_v27, %v2644_v34  ;;  %v5171_v34 = vld [vmem:[#allocation15 + $0x8] sm:$0xff] }
 0x823   :  { %2732 = vmatmul.bf16.vlgmr.msrb.gmra.mxu1 %v2652_v40  ;;  %v5170_v40 = vld [vmem:[#allocation15] sm:$0xff] }
 0x824   :  { %v2629_v47 = vpop.f32.mrf.mxu0  ;;  %3215 = vmatpush.bf16.msra.mxu1 %v5194_v19 }
 0x825   :  { %v2630_v39 = vadd.f32 %v5286_v4, %v2629_v47 }
 0x827   :  { %v2646_v13 = vadd.f32 %v2630_v39, %v5983_v1 }
 0x82c   :  { %v2631_v36 = vpop.f32.mrf.mxu0 }
 0x82d   :  { %v2632_v12 = vadd.f32 %v5286_v4, %v2631_v36 }
 0x82f   :  { %v2647_v51 = vadd.f32 %v2632_v12, %v5986_v63 }
 0x831   :  { %v2653_v52 = vpack.c.bf16 %v2647_v51, %v2646_v13  ;;  %v5209_v51 = vld [vmem:[#allocation9 + $0x38] sm:$0xff] }
 0x833   :  { %2737 = vmatmul.bf16.gmra.mxu1 %v2653_v52 }
 0x834   :  { %v2634_v26 = vpop.f32.mrf.mxu0 }
 0x835   :  { %v2635_v6 = vadd.f32 %v5286_v4, %v2634_v26  ;;  %v5288_v26 = vld [vmem:[%s6210_s12] ss:$0 sm:$0xff] }
 0x837   :  { %v2648_v18 = vadd.f32 %v2635_v6, %v5991_v8  ;;  %v5287_v8 = vld [vmem:[%s6223_s2] ss:$0 sm:$0xff]  ;;  %v5207_v6 = vld [vmem:[#allocation9 + $0x28] sm:$0xff] }
 0x83c   :  { %v2636_v16 = vpop.f32.mrf.mxu0 }
 0x83d   :  { %v2637_v44 = vadd.f32 %v5286_v4, %v2636_v16 }
 0x83f   :  { %v2649_v9 = vadd.f32 %v2637_v44, %v5994_v55 }
 0x841   :  { %v2654_v20 = vpack.c.bf16 %v2649_v9, %v2648_v18 }
 0x843   :  { %2742 = vmatmul.bf16.gmra.mxu1 %v2654_v20 }
 0x844   :  { %v2639_v1 = vpop.f32.mrf.mxu0 }
 0x845   :  { %v2640_v63 = vadd.f32 %v5286_v4, %v2639_v1  ;;  %v5206_v1 = vld [vmem:[#allocation9 + $0x20] sm:$0xff] }
 0x847   :  { %v2650_v22 = vadd.f32 %v2640_v63, %v5999_v56 }
 0x84c   :  { %v2641_v21 = vpop.f32.mrf.mxu0 }
 0x84d   :  { %v2642_v10 = vadd.f32 %v5286_v4, %v2641_v21 }
 0x84f   :  { %v2651_v14 = vadd.f32 %v2642_v10, %v6002_v11  ;;  %v5175_v11 = vld [vmem:[#allocation15 + $0x28] sm:$0xff] }
 0x850   :  { %2843 = vmatpush.bf16.msrb.mxu2 %v5175_v11 }
 0x851   :  { %v2655_v23 = vpack.c.bf16 %v2651_v14, %v2650_v22  ;;  %v5205_v22 = vld [vmem:[#allocation9 + $0x18] sm:$0xff] }
 0x853   :  { %2747 = vmatmul.bf16.gmra.mxu1 %v2655_v23 }
 0x854   :  { %v3100_v45 = vpop.f32.mrf.mxu0  ;;  %2844 = vmatpush.bf16.msrb.mxu2 %v5174_v33 }
 0x855   :  { %v3101_v55 = vadd.f32 %v5287_v8, %v3100_v45 }
 0x857   :  { %v3120_v28 = vmul.f32 0.01, %v3101_v55 }
 0x858   :  { %2845 = vmatpush.bf16.msrb.mxu2 %v5173_v46 }
 0x859   :  { %v6034_v17 = vmax.f32 %v3101_v55, %v3120_v28 }
 0x85c   :  { %v3102_v0 = vpop.f32.mrf.mxu0  ;;  %2846 = vmatpush.bf16.msrb.mxu2 %v5172_v49 }
 0x85d   :  { %v3103_v29 = vadd.f32 %v5287_v8, %v3102_v0 }
 0x85f   :  { %v3121_v60 = vmul.f32 0.01, %v3103_v29 }
 0x860   :  { %2847 = vmatpush.bf16.msrb.mxu2 %v5171_v34  ;;  %v5185_v34 = vld [vmem:[#allocation17 + $0x38] sm:$0xff] }
 0x861   :  { %v6036_v56 = vmax.f32 %v3103_v29, %v3121_v60  ;;  %v5203_v60 = vld [vmem:[#allocation9 + $0x8] sm:$0xff]  ;;  %2958 = vmatpush.bf16.msrb.mxu3 %v5185_v34 }
 0x862   :  { %v5215_v34 = vld [vmem:[#allocation11 + $0x28] sm:$0xff] }
 0x863   :  { %v3136_v3 = vpack.c.bf16 %v6036_v56, %v6034_v17 }
 0x864   :  { %v3105_v58 = vpop.f32.mrf.mxu0  ;;  %2848 = vmatpush.bf16.msrb.mxu2 %v5170_v40 }
 0x865   :  { %3216 = vmatmul.bf16.vlgmr.msra.gmra.mxu1 %v3136_v3  ;;  %v3106_v61 = vadd.f32 %v5287_v8, %v3105_v58 }
 0x867   :  { %v3122_v41 = vmul.f32 0.01, %v3106_v61 }
 0x868   :  { %3325 = vmatpush.bf16.msra.mxu2 %v5209_v51 }
 0x869   :  { %v6040_v38 = vmax.f32 %v3106_v61, %v3122_v41  ;;  %v5202_v41 = vld [vmem:[#allocation9] sm:$0xff] }
 0x86c   :  { %v3107_v37 = vpop.f32.mrf.mxu0  ;;  %3326 = vmatpush.bf16.msra.mxu2 %v5208_v5 }
 0x86d   :  { %v3108_v30 = vadd.f32 %v5287_v8, %v3107_v37 }
 0x86f   :  { %v3123_v48 = vmul.f32 0.01, %v3108_v30 }
 0x870   :  { %3327 = vmatpush.bf16.msra.mxu2 %v5207_v6 }
 0x871   :  { %v6042_v31 = vmax.f32 %v3108_v30, %v3123_v48 }
 0x873   :  { %v3137_v57 = vpack.c.bf16 %v6042_v31, %v6040_v38 }
 0x874   :  { %v3110_v2 = vpop.f32.mrf.mxu0  ;;  %3328 = vmatpush.bf16.msra.mxu2 %v5206_v1  ;;  %v5182_v1 = vld [vmem:[#allocation17 + $0x20] sm:$0xff] }
 0x875   :  { %3221 = vmatmul.bf16.gmra.mxu1 %v3137_v57  ;;  %v3111_v54 = vadd.f32 %v5287_v8, %v3110_v2 }
 0x877   :  { %v3124_v62 = vmul.f32 0.01, %v3111_v54 }
 0x878   :  { %3329 = vmatpush.bf16.msra.mxu2 %v5205_v22  ;;  %v5180_v22 = vld [vmem:[#allocation17 + $0x10] sm:$0xff] }
 0x879   :  { %v6046_v42 = vmax.f32 %v3111_v54, %v3124_v62 }
 0x87c   :  { %v3112_v32 = vpop.f32.mrf.mxu0  ;;  %3330 = vmatpush.bf16.msra.mxu2 %v5204_v15 }
 0x87d   :  { %v3113_v25 = vadd.f32 %v5287_v8, %v3112_v32 }
 0x87f   :  { %v3125_v4 = vmul.f32 0.01, %v3113_v25 }
 0x880   :  { %3331 = vmatpush.bf16.msra.mxu2 %v5203_v60 }
 0x881   :  { %v6048_v50 = vmax.f32 %v3113_v25, %v3125_v4 }
 0x883   :  { %v3138_v43 = vpack.c.bf16 %v6048_v50, %v6046_v42 }
 0x884   :  { %v3115_v7 = vpop.f32.mrf.mxu0  ;;  %3332 = vmatpush.bf16.msra.mxu2 %v5202_v41 }
 0x885   :  { %3226 = vmatmul.bf16.gmra.mxu1 %v3138_v43  ;;  %v3116_v27 = vadd.f32 %v5287_v8, %v3115_v7  ;;  %v5289_v43 = vld [vmem:[%s6202_s4] ss:$0 sm:$0xff] }
 0x887   :  { %v3126_v47 = vmul.f32 0.01, %v3116_v27 }
 0x889   :  { %v6052_v36 = vmax.f32 %v3116_v27, %v3126_v47 }
 0x88c   :  { %v3117_v35 = vpop.f32.mrf.mxu0 }
 0x88d   :  { %v3118_v53 = vadd.f32 %v5287_v8, %v3117_v35 }
 0x88f   :  { %v3127_v39 = vmul.f32 0.01, %v3118_v53 }
 0x891   :  { %v6054_v12 = vmax.f32 %v3118_v53, %v3127_v39 }
 0x893   :  { %v3139_v13 = vpack.c.bf16 %v6054_v12, %v6052_v36 }
 0x895   :  { %3231 = vmatmul.bf16.gmra.mxu1 %v3139_v13  ;;  %v5184_v13 = vld [vmem:[#allocation17 + $0x30] sm:$0xff] }
 0x896   :  { %2959 = vmatpush.bf16.msrb.mxu3 %v5184_v13 }
 0x8a0   :  { %v2733_v52 = vpop.f32.mrf.mxu1 }
 0x8a1   :  { %v2734_v59 = vadd.f32 %v5288_v26, %v2733_v52 }
 0x8a3   :  { %v2753_v44 = vmul.f32 0.01, %v2734_v59 }
 0x8a5   :  { %v6061_v19 = vmax.f32 %v2734_v59, %v2753_v44 }
 0x8a8   :  { %v2735_v16 = vpop.f32.mrf.mxu1 }
 0x8a9   :  { %v2736_v18 = vadd.f32 %v5288_v26, %v2735_v16 }
 0x8ab   :  { %v2754_v9 = vmul.f32 0.01, %v2736_v18 }
 0x8ad   :  { %v6063_v20 = vmax.f32 %v2736_v18, %v2754_v9 }
 0x8af   :  { %v2769_v63 = vpack.c.bf16 %v6063_v20, %v6061_v19 }
 0x8b0   :  { %v2738_v21 = vpop.f32.mrf.mxu1 }
 0x8b1   :  { %2849 = vmatmul.bf16.vlgmr.msrb.gmra.mxu2 %v2769_v63  ;;  %v2739_v10 = vadd.f32 %v5288_v26, %v2738_v21 }
 0x8b3   :  { %v2755_v23 = vmul.f32 0.01, %v2739_v10 }
 0x8b5   :  { %v6067_v8 = vmax.f32 %v2739_v10, %v2755_v23  ;;  %v5181_v10 = vld [vmem:[#allocation17 + $0x18] sm:$0xff] }
 0x8b8   :  { %v2740_v14 = vpop.f32.mrf.mxu1 }
 0x8b9   :  { %v2741_v24 = vadd.f32 %v5288_v26, %v2740_v14 }
 0x8bb   :  { %v2756_v45 = vmul.f32 0.01, %v2741_v24 }
 0x8bd   :  { %v6069_v55 = vmax.f32 %v2741_v24, %v2756_v45 }
 0x8bf   :  { %v2770_v0 = vpack.c.bf16 %v6069_v55, %v6067_v8 }
 0x8c0   :  { %v2743_v28 = vpop.f32.mrf.mxu1 }
 0x8c1   :  { %2854 = vmatmul.bf16.gmra.mxu2 %v2770_v0  ;;  %v2744_v29 = vadd.f32 %v5288_v26, %v2743_v28 }
 0x8c3   :  { %v2757_v3 = vmul.f32 0.01, %v2744_v29 }
 0x8c5   :  { %v6073_v33 = vmax.f32 %v2744_v29, %v2757_v3  ;;  %v5179_v3 = vld [vmem:[#allocation17 + $0x8] sm:$0xff] }
 0x8c8   :  { %v2745_v11 = vpop.f32.mrf.mxu1 }
 0x8c9   :  { %v2746_v58 = vadd.f32 %v5288_v26, %v2745_v11 }
 0x8cb   :  { %v2758_v61 = vmul.f32 0.01, %v2746_v58 }
 0x8cd   :  { %v6075_v37 = vmax.f32 %v2746_v58, %v2758_v61 }
 0x8cf   :  { %v2771_v30 = vpack.c.bf16 %v6075_v37, %v6073_v33 }
 0x8d0   :  { %v2748_v48 = vpop.f32.mrf.mxu1 }
 0x8d1   :  { %2859 = vmatmul.bf16.gmra.mxu2 %v2771_v30  ;;  %v2749_v46 = vadd.f32 %v5288_v26, %v2748_v48 }
 0x8d3   :  { %v2759_v2 = vmul.f32 0.01, %v2749_v46 }
 0x8d5   :  { %v6079_v32 = vmax.f32 %v2749_v46, %v2759_v2 }
 0x8d8   :  { %v2750_v57 = vpop.f32.mrf.mxu1 }
 0x8d9   :  { %v2751_v49 = vadd.f32 %v5288_v26, %v2750_v57  ;;  %v5183_v26 = vld [vmem:[#allocation17 + $0x28] sm:$0xff]  ;;  %v5178_v57 = vld [vmem:[#allocation17] sm:$0xff] }
 0x8da   :  { %2960 = vmatpush.bf16.msrb.mxu3 %v5183_v26 }
 0x8db   :  { %v2760_v54 = vmul.f32 0.01, %v2751_v49 }
 0x8dd   :  { %v6081_v62 = vmax.f32 %v2751_v49, %v2760_v54  ;;  %v5217_v49 = vld [vmem:[#allocation11 + $0x38] sm:$0xff]  ;;  %v5216_v54 = vld [vmem:[#allocation11 + $0x30] sm:$0xff] }
 0x8de   :  { %2961 = vmatpush.bf16.msrb.mxu3 %v5182_v1 }
 0x8df   :  { %v2772_v25 = vpack.c.bf16 %v6081_v62, %v6079_v32 }
 0x8e1   :  { %2864 = vmatmul.bf16.gmra.mxu2 %v2772_v25 }
 0x8e2   :  { %v3217_v4 = vpop.f32.mrf.mxu1  ;;  %2962 = vmatpush.bf16.msrb.mxu3 %v5181_v10 }
 0x8e3   :  { %v3218_v7 = vadd.f32 %v5289_v43, %v3217_v4  ;;  %v5290_v4 = vld [vmem:[%s6212_s14] ss:$0 sm:$0xff] }
 0x8e5   :  { %v3237_v35 = vmul.f32 0.01, %v3218_v7 }
 0x8e6   :  { %2963 = vmatpush.bf16.msrb.mxu3 %v5180_v22  ;;  %v5210_v22 = vld [vmem:[#allocation11] sm:$0xff] }
 0x8e7   :  { %v3245_v53 = vmax.f32 %v3218_v7, %v3237_v35 }
 0x8ea   :  { %v3219_v27 = vpop.f32.mrf.mxu1  ;;  %2964 = vmatpush.bf16.msrb.mxu3 %v5179_v3 }
 0x8eb   :  { %v3220_v40 = vadd.f32 %v5289_v43, %v3219_v27 }
 0x8ed   :  { %v3238_v47 = vmul.f32 0.01, %v3220_v40 }
 0x8ee   :  { %2965 = vmatpush.bf16.msrb.mxu3 %v5178_v57  ;;  %v5291_v57 = vld [vmem:[%s6204_s6] ss:$0 sm:$0xff] }
 0x8ef   :  { %v3246_v39 = vmax.f32 %v3220_v40, %v3238_v47 }
 0x8f1   :  { %v3253_v51 = vpack.c.bf16 %v3246_v39, %v3245_v53  ;;  %v5214_v39 = vld [vmem:[#allocation11 + $0x20] sm:$0xff] }
 0x8f2   :  { %v3222_v5 = vpop.f32.mrf.mxu1  ;;  %3434 = vmatpush.bf16.msra.mxu3 %v5217_v49 }
 0x8f3   :  { %3333 = vmatmul.bf16.vlgmr.msra.gmra.mxu2 %v3253_v51  ;;  %v3223_v52 = vadd.f32 %v5289_v43, %v3222_v5 }
 0x8f5   :  { %v3239_v6 = vmul.f32 0.01, %v3223_v52 }
 0x8f6   :  { %3435 = vmatpush.bf16.msra.mxu3 %v5216_v54 }
 0x8f7   :  { %v3247_v18 = vmax.f32 %v3223_v52, %v3239_v6  ;;  %v5213_v52 = vld [vmem:[#allocation11 + $0x18] sm:$0xff] }
 0x8fa   :  { %v3224_v59 = vpop.f32.mrf.mxu1  ;;  %3436 = vmatpush.bf16.msra.mxu3 %v5215_v34 }
 0x8fb   :  { %v3225_v16 = vadd.f32 %v5289_v43, %v3224_v59 }
 0x8fd   :  { %v3240_v44 = vmul.f32 0.01, %v3225_v16 }
 0x8fe   :  { %3437 = vmatpush.bf16.msra.mxu3 %v5214_v39 }
 0x8ff   :  { %v3248_v9 = vmax.f32 %v3225_v16, %v3240_v44 }
 0x901   :  { %v3254_v63 = vpack.c.bf16 %v3248_v9, %v3247_v18  ;;  %v5212_v9 = vld [vmem:[#allocation11 + $0x10] sm:$0xff] }
 0x902   :  { %v3227_v21 = vpop.f32.mrf.mxu1  ;;  %3438 = vmatpush.bf16.msra.mxu3 %v5213_v52 }
 0x903   :  { %3338 = vmatmul.bf16.gmra.mxu2 %v3254_v63  ;;  %v3228_v14 = vadd.f32 %v5289_v43, %v3227_v21  ;;  %v5211_v21 = vld [vmem:[#allocation11 + $0x8] sm:$0xff] }
 0x905   :  { %v3241_v24 = vmul.f32 0.01, %v3228_v14 }
 0x906   :  { %3439 = vmatpush.bf16.msra.mxu3 %v5212_v9 }
 0x907   :  { %v3249_v0 = vmax.f32 %v3228_v14, %v3241_v24 }
 0x90a   :  { %v3229_v23 = vpop.f32.mrf.mxu1  ;;  %3440 = vmatpush.bf16.msra.mxu3 %v5211_v21 }
 0x90b   :  { %v3230_v45 = vadd.f32 %v5289_v43, %v3229_v23 }
 0x90d   :  { %v3242_v15 = vmul.f32 0.01, %v3230_v45 }
 0x90e   :  { %3441 = vmatpush.bf16.msra.mxu3 %v5210_v22  ;;  %v5222_v22 = vld [vmem:[#allocation12 + $0x20] sm:$0xff] }
 0x90f   :  { %v3250_v28 = vmax.f32 %v3230_v45, %v3242_v15 }
 0x911   :  { %v3255_v29 = vpack.c.bf16 %v3250_v28, %v3249_v0 }
 0x912   :  { %v3232_v60 = vpop.f32.mrf.mxu1 }
 0x913   :  { %3343 = vmatmul.bf16.gmra.mxu2 %v3255_v29  ;;  %v3233_v11 = vadd.f32 %v5289_v43, %v3232_v60 }
 0x915   :  { %v3243_v61 = vmul.f32 0.01, %v3233_v11 }
 0x917   :  { %v3251_v48 = vmax.f32 %v3233_v11, %v3243_v61 }
 0x91a   :  { %v3234_v58 = vpop.f32.mrf.mxu1 }
 0x91b   :  { %v3235_v41 = vadd.f32 %v5289_v43, %v3234_v58 }
 0x91d   :  { %v3244_v30 = vmul.f32 0.01, %v3235_v41 }
 0x91f   :  { %v3252_v46 = vmax.f32 %v3235_v41, %v3244_v30 }
 0x921   :  { %v3256_v2 = vpack.c.bf16 %v3252_v46, %v3251_v48 }
 0x923   :  { %3348 = vmatmul.bf16.gmra.mxu2 %v3256_v2 }
 0x934   :  { %v2850_v25 = vpop.f32.mrf.mxu2 }
 0x935   :  { %v2851_v7 = vadd.f32 %v5290_v4, %v2850_v25 }
 0x937   :  { %v2870_v27 = vmul.f32 0.01, %v2851_v7 }
 0x939   :  { %v2878_v47 = vmax.f32 %v2851_v7, %v2870_v27 }
 0x93c   :  { %v2852_v43 = vpop.f32.mrf.mxu2 }
 0x93d   :  { %v2853_v35 = vadd.f32 %v5290_v4, %v2852_v43 }
 0x93f   :  { %v2871_v40 = vmul.f32 0.01, %v2853_v35 }
 0x941   :  { %v2879_v53 = vmax.f32 %v2853_v35, %v2871_v40 }
 0x943   :  { %v2886_v13 = vpack.c.bf16 %v2879_v53, %v2878_v47 }
 0x944   :  { %v2855_v51 = vpop.f32.mrf.mxu2 }
 0x945   :  { %2966 = vmatmul.bf16.vlgmr.msrb.gmra.mxu3 %v2886_v13  ;;  %v2856_v5 = vadd.f32 %v5290_v4, %v2855_v51 }
 0x947   :  { %v2872_v59 = vmul.f32 0.01, %v2856_v5 }
 0x949   :  { %v2880_v44 = vmax.f32 %v2856_v5, %v2872_v59 }
 0x94c   :  { %v2857_v26 = vpop.f32.mrf.mxu2 }
 0x94d   :  { %v2858_v6 = vadd.f32 %v5290_v4, %v2857_v26 }
 0x94f   :  { %v2873_v16 = vmul.f32 0.01, %v2858_v6 }
 0x951   :  { %v2881_v18 = vmax.f32 %v2858_v6, %v2873_v16 }
 0x953   :  { %v2887_v1 = vpack.c.bf16 %v2881_v18, %v2880_v44  ;;  %v5292_v44 = vld [vmem:[%s6214_s16] ss:$0 sm:$0xff]  ;;  %v5224_v18 = vld [vmem:[#allocation12 + $0x30] sm:$0xff] }
 0x954   :  { %v2860_v63 = vpop.f32.mrf.mxu2 }
 0x955   :  { %2971 = vmatmul.bf16.gmra.mxu3 %v2887_v1  ;;  %v2861_v10 = vadd.f32 %v5290_v4, %v2860_v63  ;;  %v5223_v63 = vld [vmem:[#allocation12 + $0x28] sm:$0xff] }
 0x957   :  { %v2874_v23 = vmul.f32 0.01, %v2861_v10 }
 0x959   :  { %v2882_v15 = vmax.f32 %v2861_v10, %v2874_v23 }
 0x95c   :  { %v2862_v14 = vpop.f32.mrf.mxu2 }
 0x95d   :  { %v2863_v24 = vadd.f32 %v5290_v4, %v2862_v14 }
 0x95f   :  { %v2875_v45 = vmul.f32 0.01, %v2863_v24 }
 0x961   :  { %v2883_v0 = vmax.f32 %v2863_v24, %v2875_v45  ;;  %v5221_v45 = vld [vmem:[#allocation12 + $0x18] sm:$0xff] }
 0x963   :  { %v2888_v28 = vpack.c.bf16 %v2883_v0, %v2882_v15 }
 0x964   :  { %v2865_v29 = vpop.f32.mrf.mxu2 }
 0x965   :  { %2976 = vmatmul.bf16.gmra.mxu3 %v2888_v28  ;;  %v2866_v60 = vadd.f32 %v5290_v4, %v2865_v29  ;;  %v5220_v28 = vld [vmem:[#allocation12 + $0x10] sm:$0xff] }
 0x967   :  { %v2876_v3 = vmul.f32 0.01, %v2866_v60 }
 0x969   :  { %v2884_v41 = vmax.f32 %v2866_v60, %v2876_v3 }
 0x96c   :  { %v2867_v11 = vpop.f32.mrf.mxu2 }
 0x96d   :  { %v2868_v58 = vadd.f32 %v5290_v4, %v2867_v11  ;;  %v5219_v11 = vld [vmem:[#allocation12 + $0x8] sm:$0xff] }
 0x96f   :  { %v2877_v61 = vmul.f32 0.01, %v2868_v58 }
 0x971   :  { %v2885_v30 = vmax.f32 %v2868_v58, %v2877_v61  ;;  %v5218_v61 = vld [vmem:[#allocation12] sm:$0xff] }
 0x973   :  { %v2889_v48 = vpack.c.bf16 %v2885_v30, %v2884_v41 }
 0x975   :  { %2981 = vmatmul.bf16.gmra.mxu3 %v2889_v48 }
 0x976   :  { %v3334_v46 = vpop.f32.mrf.mxu2 }
 0x977   :  { %v3335_v2 = vadd.f32 %v5291_v57, %v3334_v46 }
 0x979   :  { %v6095_v25 = vadd.f32 %v3335_v2, %v6034_v17  ;;  %v5293_v2 = vld [vmem:[%s6206_s8] ss:$0 sm:$0xff] }
 0x97e   :  { %v3336_v49 = vpop.f32.mrf.mxu2 }
 0x97f   :  { %v3337_v54 = vadd.f32 %v5291_v57, %v3336_v49 }
 0x981   :  { %v6098_v7 = vadd.f32 %v3337_v54, %v6036_v56 }
 0x983   :  { %v3362_v4 = vpack.c.bf16 %v6098_v7, %v6095_v25 }
 0x985   :  { %3442 = vmatmul.bf16.vlgmr.msra.gmra.mxu3 %v3362_v4 }
 0x986   :  { %v3339_v34 = vpop.f32.mrf.mxu2 }
 0x987   :  { %v3340_v43 = vadd.f32 %v5291_v57, %v3339_v34 }
 0x989   :  { %v6103_v40 = vadd.f32 %v3340_v43, %v6040_v38 }
 0x98e   :  { %v3341_v27 = vpop.f32.mrf.mxu2 }
 0x98f   :  { %v3342_v35 = vadd.f32 %v5291_v57, %v3341_v27 }
 0x991   :  { %v6106_v47 = vadd.f32 %v3342_v35, %v6042_v31 }
 0x993   :  { %v3363_v17 = vpack.c.bf16 %v6106_v47, %v6103_v40 }
 0x995   :  { %3447 = vmatmul.bf16.gmra.mxu3 %v3363_v17 }
 0x996   :  { %v3344_v56 = vpop.f32.mrf.mxu2 }
 0x997   :  { %v3345_v53 = vadd.f32 %v5291_v57, %v3344_v56 }
 0x999   :  { %v6111_v51 = vadd.f32 %v3345_v53, %v6046_v42 }
 0x99e   :  { %v3346_v39 = vpop.f32.mrf.mxu2 }
 0x99f   :  { %v3347_v13 = vadd.f32 %v5291_v57, %v3346_v39 }
 0x9a1   :  { %v6114_v5 = vadd.f32 %v3347_v13, %v6048_v50  ;;  %v5225_v50 = vld [vmem:[#allocation12 + $0x38] sm:$0xff] }
 0x9a2   :  { %3551 = vmatpush.bf16.msrb.mxu0 %v5225_v50  ;;  %v5231_v50 = vld [vmem:[#allocation14 + $0x28] sm:$0xff] }
 0x9a3   :  { %v3364_v38 = vpack.c.bf16 %v6114_v5, %v6111_v51 }
 0x9a5   :  { %3452 = vmatmul.bf16.gmra.mxu3 %v3364_v38 }
 0x9a6   :  { %v3349_v31 = vpop.f32.mrf.mxu2  ;;  %3552 = vmatpush.bf16.msrb.mxu0 %v5224_v18 }
 0x9a7   :  { %v3350_v52 = vadd.f32 %v5291_v57, %v3349_v31 }
 0x9a9   :  { %v6119_v6 = vadd.f32 %v3350_v52, %v6052_v36 }
 0x9aa   :  { %3553 = vmatpush.bf16.msrb.mxu0 %v5223_v63 }
 0x9ae   :  { %v3351_v26 = vpop.f32.mrf.mxu2  ;;  %3554 = vmatpush.bf16.msrb.mxu0 %v5222_v22 }
 0x9af   :  { %v3352_v59 = vadd.f32 %v5291_v57, %v3351_v26  ;;  %v5233_v26 = vld [vmem:[#allocation14 + $0x38] sm:$0xff] }
 0x9b0   :  { %3660 = vmatpush.bf16.msrb.mxu1 %v5233_v26 }
 0x9b1   :  { %v6122_v16 = vadd.f32 %v3352_v59, %v6054_v12  ;;  %v5232_v59 = vld [vmem:[#allocation14 + $0x30] sm:$0xff] }
 0x9b2   :  { %3555 = vmatpush.bf16.msrb.mxu0 %v5221_v45 }
 0x9b3   :  { %v3365_v42 = vpack.c.bf16 %v6122_v16, %v6119_v6 }
 0x9b4   :  { %3661 = vmatpush.bf16.msrb.mxu1 %v5232_v59  ;;  %v5295_v59 = vld [vmem:[%s6210_s12] ss:$0 sm:$0xff] }
 0x9b5   :  { %3457 = vmatmul.bf16.gmra.mxu3 %v3365_v42 }
 0x9b6   :  { %3556 = vmatpush.bf16.msrb.mxu0 %v5220_v28 }
 0x9b8   :  { %3662 = vmatpush.bf16.msrb.mxu1 %v5231_v50 }
 0x9ba   :  { %3557 = vmatpush.bf16.msrb.mxu0 %v5219_v11 }
 0x9be   :  { %3558 = vmatpush.bf16.msrb.mxu0 %v5218_v61 }
 0x9c8   :  { %v2967_v9 = vpop.f32.mrf.mxu3 }
 0x9c9   :  { %v2968_v1 = vadd.f32 %v5292_v44, %v2967_v9 }
 0x9cb   :  { %v2987_v36 = vadd.f32 %v2968_v1, %v6061_v19 }
 0x9cd   :  { %2995 = vst [vmem:[#allocation18 + $0x100] sm:$0xff] %v2987_v36  ;;  %v5230_v36 = vld [vmem:[#allocation14 + $0x20] sm:$0xff] }
 0x9ce   :  { %3663 = vmatpush.bf16.msrb.mxu1 %v5230_v36 }
 0x9d0   :  { %v2969_v12 = vpop.f32.mrf.mxu3 }
 0x9d1   :  { %v2970_v21 = vadd.f32 %v5292_v44, %v2969_v12 }
 0x9d3   :  { %v2988_v10 = vadd.f32 %v2970_v21, %v6063_v20 }
 0x9d5   :  { %2996 = vst [vmem:[#allocation18 + $0x110] sm:$0xff] %v2988_v10  ;;  %v5229_v10 = vld [vmem:[#allocation14 + $0x18] sm:$0xff] }
 0x9d6   :  { %3664 = vmatpush.bf16.msrb.mxu1 %v5229_v10 }
 0x9d8   :  { %v2972_v14 = vpop.f32.mrf.mxu3 }
 0x9d9   :  { %v2973_v23 = vadd.f32 %v5292_v44, %v2972_v14  ;;  %v5228_v14 = vld [vmem:[#allocation14 + $0x10] sm:$0xff] }
 0x9da   :  { %3665 = vmatpush.bf16.msrb.mxu1 %v5228_v14 }
 0x9db   :  { %v2989_v24 = vadd.f32 %v2973_v23, %v6067_v8 }
 0x9dd   :  { %2997 = vst [vmem:[#allocation18 + $0x120] sm:$0xff] %v2989_v24  ;;  %v5227_v24 = vld [vmem:[#allocation14 + $0x8] sm:$0xff] }
 0x9de   :  { %3666 = vmatpush.bf16.msrb.mxu1 %v5227_v24 }
 0x9e0   :  { %v2974_v15 = vpop.f32.mrf.mxu3 }
 0x9e1   :  { %v2975_v0 = vadd.f32 %v5292_v44, %v2974_v15 }
 0x9e3   :  { %v2990_v19 = vadd.f32 %v2975_v0, %v6069_v55 }
 0x9e5   :  { %2998 = vst [vmem:[#allocation18 + $0x130] sm:$0xff] %v2990_v19 }
 0x9e8   :  { %v2977_v29 = vpop.f32.mrf.mxu3 }
 0x9e9   :  { %v2978_v60 = vadd.f32 %v5292_v44, %v2977_v29 }
 0x9eb   :  { %v2991_v20 = vadd.f32 %v2978_v60, %v6073_v33 }
 0x9ed   :  { %2999 = vst [vmem:[#allocation18 + $0x140] sm:$0xff] %v2991_v20  ;;  %v5226_v20 = vld [vmem:[#allocation14] sm:$0xff] }
 0x9ee   :  { %3667 = vmatpush.bf16.msrb.mxu1 %v5226_v20 }
 0x9f0   :  { %v2979_v3 = vpop.f32.mrf.mxu3 }
 0x9f1   :  { %v2980_v58 = vadd.f32 %v5292_v44, %v2979_v3  ;;  %v5294_v3 = vld [vmem:[%s6208_s10] ss:$0 sm:$0xff] }
 0x9f3   :  { %v2992_v8 = vadd.f32 %v2980_v58, %v6075_v37 }
 0x9f5   :  { %3000 = vst [vmem:[#allocation18 + $0x150] sm:$0xff] %v2992_v8 }
 0x9f8   :  { %v2982_v41 = vpop.f32.mrf.mxu3 }
 0x9f9   :  { %v2983_v30 = vadd.f32 %v5292_v44, %v2982_v41 }
 0x9fb   :  { %v2993_v55 = vadd.f32 %v2983_v30, %v6079_v32 }
 0x9fd   :  { %3001 = vst [vmem:[#allocation18 + $0x160] sm:$0xff] %v2993_v55 }
 0xa00   :  { %v2984_v48 = vpop.f32.mrf.mxu3 }
 0xa01   :  { %v2985_v46 = vadd.f32 %v5292_v44, %v2984_v48 }
 0xa03   :  { %v2994_v57 = vadd.f32 %v2985_v46, %v6081_v62 }
 0xa05   :  { %3002 = vst [vmem:[#allocation18 + $0x170] sm:$0xff] %v2994_v57 }
 0xa08   :  { %v3443_v33 = vpop.f32.mrf.mxu3 }
 0xa09   :  { %v3444_v49 = vadd.f32 %v5293_v2, %v3443_v33 }
 0xa0b   :  { %v3463_v54 = vmul.f32 0.01, %v3444_v49 }
 0xa0d   :  { %v3471_v43 = vmax.f32 %v3444_v49, %v3463_v54  ;;  %v5241_v54 = vld [vmem:[#allocation15 + $0x38] sm:$0xff] }
 0xa0e   :  { %3777 = vmatpush.bf16.msrb.mxu2 %v5241_v54 }
 0xa10   :  { %v3445_v37 = vpop.f32.mrf.mxu3 }
 0xa11   :  { %v3446_v4 = vadd.f32 %v5293_v2, %v3445_v37 }
 0xa13   :  { %v3464_v34 = vmul.f32 0.01, %v3446_v4 }
 0xa15   :  { %v3472_v27 = vmax.f32 %v3446_v4, %v3464_v34  ;;  %v5240_v34 = vld [vmem:[#allocation15 + $0x30] sm:$0xff] }
 0xa16   :  { %3778 = vmatpush.bf16.msrb.mxu2 %v5240_v34  ;;  %v5242_v34 = vld [vmem:[#allocation17] sm:$0xff] }
 0xa17   :  { %v3479_v35 = vpack.c.bf16 %v3472_v27, %v3471_v43 }
 0xa18   :  { %v3448_v32 = vpop.f32.mrf.mxu3 }
 0xa19   :  { %3559 = vmatmul.bf16.vlgmr.msrb.gmra.mxu0 %v3479_v35  ;;  %v3449_v17 = vadd.f32 %v5293_v2, %v3448_v32  ;;  %v5238_v35 = vld [vmem:[#allocation15 + $0x20] sm:$0xff] }
 0xa1b   :  { %v3465_v53 = vmul.f32 0.01, %v3449_v17 }
 0xa1d   :  { %v3473_v13 = vmax.f32 %v3449_v17, %v3465_v53  ;;  %v5236_v53 = vld [vmem:[#allocation15 + $0x10] sm:$0xff] }
 0xa20   :  { %v3450_v56 = vpop.f32.mrf.mxu3 }
 0xa21   :  { %v3451_v62 = vadd.f32 %v5293_v2, %v3450_v56 }
 0xa23   :  { %v3466_v39 = vmul.f32 0.01, %v3451_v62 }
 0xa25   :  { %v3474_v38 = vmax.f32 %v3451_v62, %v3466_v39 }
 0xa27   :  { %v3480_v31 = vpack.c.bf16 %v3474_v38, %v3473_v13 }
 0xa28   :  { %v3453_v52 = vpop.f32.mrf.mxu3 }
 0xa29   :  { %3564 = vmatmul.bf16.gmra.mxu0 %v3480_v31  ;;  %v3454_v42 = vadd.f32 %v5293_v2, %v3453_v52 }
 0xa2b   :  { %v3467_v18 = vmul.f32 0.01, %v3454_v42 }
 0xa2d   :  { %v3475_v63 = vmax.f32 %v3454_v42, %v3467_v18 }
 0xa30   :  { %v3455_v44 = vpop.f32.mrf.mxu3 }
 0xa31   :  { %v3456_v9 = vadd.f32 %v5293_v2, %v3455_v44 }
 0xa33   :  { %v3468_v1 = vmul.f32 0.01, %v3456_v9 }
 0xa35   :  { %v3476_v12 = vmax.f32 %v3456_v9, %v3468_v1 }
 0xa37   :  { %v3481_v21 = vpack.c.bf16 %v3476_v12, %v3475_v63 }
 0xa38   :  { %v3458_v22 = vpop.f32.mrf.mxu3 }
 0xa39   :  { %3569 = vmatmul.bf16.gmra.mxu0 %v3481_v21  ;;  %v3459_v23 = vadd.f32 %v5293_v2, %v3458_v22 }
 0xa3b   :  { %v3469_v15 = vmul.f32 0.01, %v3459_v23 }
 0xa3d   :  { %v3477_v28 = vmax.f32 %v3459_v23, %v3469_v15  ;;  %v5249_v15 = vld [vmem:[#allocation17 + $0x38] sm:$0xff] }
 0xa3e   :  { %3894 = vmatpush.bf16.msrb.mxu3 %v5249_v15 }
 0xa40   :  { %v3460_v45 = vpop.f32.mrf.mxu3 }
 0xa41   :  { %v3461_v0 = vadd.f32 %v5293_v2, %v3460_v45 }
 0xa43   :  { %v3470_v19 = vmul.f32 0.01, %v3461_v0 }
 0xa45   :  { %v3478_v29 = vmax.f32 %v3461_v0, %v3470_v19  ;;  %v5248_v0 = vld [vmem:[#allocation17 + $0x30] sm:$0xff] }
 0xa46   :  { %3895 = vmatpush.bf16.msrb.mxu3 %v5248_v0 }
 0xa47   :  { %v3482_v60 = vpack.c.bf16 %v3478_v29, %v3477_v28  ;;  %v5247_v28 = vld [vmem:[#allocation17 + $0x28] sm:$0xff] }
 0xa49   :  { %3574 = vmatmul.bf16.gmra.mxu0 %v3482_v60 }
 0xa4a   :  { %3896 = vmatpush.bf16.msrb.mxu3 %v5247_v28 }
 0xa96   :  { %v3560_v11 = vpop.f32.mrf.mxu0 }
 0xa97   :  { %v3561_v58 = vadd.f32 %v5294_v3, %v3560_v11 }
 0xa99   :  { %v3580_v41 = vadd.f32 %v3561_v58, %v6095_v25  ;;  %v5239_v25 = vld [vmem:[#allocation15 + $0x28] sm:$0xff] }
 0xa9a   :  { %3779 = vmatpush.bf16.msrb.mxu2 %v5239_v25 }
 0xa9e   :  { %v3562_v8 = vpop.f32.mrf.mxu0  ;;  %3780 = vmatpush.bf16.msrb.mxu2 %v5238_v35 }
 0xa9f   :  { %v3563_v61 = vadd.f32 %v5294_v3, %v3562_v8 }
 0xaa1   :  { %v3581_v30 = vadd.f32 %v3563_v61, %v6098_v7 }
 0xaa3   :  { %v3588_v55 = vpack.c.bf16 %v3581_v30, %v3580_v41  ;;  %v5245_v41 = vld [vmem:[#allocation17 + $0x18] sm:$0xff] }
 0xaa5   :  { %3668 = vmatmul.bf16.vlgmr.msrb.gmra.mxu1 %v3588_v55  ;;  %v5244_v55 = vld [vmem:[#allocation17 + $0x10] sm:$0xff] }
 0xaa6   :  { %v3565_v48 = vpop.f32.mrf.mxu0 }
 0xaa7   :  { %v3566_v46 = vadd.f32 %v5294_v3, %v3565_v48 }
 0xaa9   :  { %v3582_v2 = vadd.f32 %v3566_v46, %v6103_v40 }
 0xaae   :  { %v3567_v57 = vpop.f32.mrf.mxu0 }
 0xaaf   :  { %v3568_v33 = vadd.f32 %v5294_v3, %v3567_v57 }
 0xab1   :  { %v3583_v49 = vadd.f32 %v3568_v33, %v6106_v47  ;;  %v5237_v47 = vld [vmem:[#allocation15 + $0x18] sm:$0xff] }
 0xab2   :  { %3781 = vmatpush.bf16.msrb.mxu2 %v5237_v47 }
 0xab3   :  { %v3589_v37 = vpack.c.bf16 %v3583_v49, %v3582_v2 }
 0xab5   :  { %3673 = vmatmul.bf16.gmra.mxu1 %v3589_v37 }
 0xab6   :  { %v3570_v4 = vpop.f32.mrf.mxu0  ;;  %3782 = vmatpush.bf16.msrb.mxu2 %v5236_v53 }
 0xab7   :  { %v3571_v43 = vadd.f32 %v5294_v3, %v3570_v4  ;;  %v5243_v4 = vld [vmem:[#allocation17 + $0x8] sm:$0xff] }
 0xab9   :  { %v3584_v32 = vadd.f32 %v3571_v43, %v6111_v51  ;;  %v5235_v51 = vld [vmem:[#allocation15 + $0x8] sm:$0xff]  ;;  %v5296_v43 = vld [vmem:[%s6212_s14] ss:$0 sm:$0xff] }
 0xaba   :  { %3783 = vmatpush.bf16.msrb.mxu2 %v5235_v51 }
 0xabe   :  { %v3572_v7 = vpop.f32.mrf.mxu0 }
 0xabf   :  { %v3573_v27 = vadd.f32 %v5294_v3, %v3572_v7 }
 0xac1   :  { %v3585_v17 = vadd.f32 %v3573_v27, %v6114_v5  ;;  %v5234_v5 = vld [vmem:[#allocation15] sm:$0xff] }
 0xac2   :  { %3784 = vmatpush.bf16.msrb.mxu2 %v5234_v5 }
 0xac3   :  { %v3590_v40 = vpack.c.bf16 %v3585_v17, %v3584_v32 }
 0xac5   :  { %3678 = vmatmul.bf16.gmra.mxu1 %v3590_v40 }
 0xac6   :  { %v3575_v56 = vpop.f32.mrf.mxu0 }
 0xac7   :  { %v3576_v62 = vadd.f32 %v5294_v3, %v3575_v56 }
 0xac9   :  { %v3586_v38 = vadd.f32 %v3576_v62, %v6119_v6 }
 0xace   :  { %v3577_v39 = vpop.f32.mrf.mxu0 }
 0xacf   :  { %v3578_v13 = vadd.f32 %v5294_v3, %v3577_v39  ;;  %v5246_v3 = vld [vmem:[#allocation17 + $0x20] sm:$0xff] }
 0xad0   :  { %3897 = vmatpush.bf16.msrb.mxu3 %v5246_v3 }
 0xad1   :  { %v3587_v31 = vadd.f32 %v3578_v13, %v6122_v16 }
 0xad3   :  { %v3591_v52 = vpack.c.bf16 %v3587_v31, %v3586_v38 }
 0xad4   :  { %3898 = vmatpush.bf16.msrb.mxu3 %v5245_v41 }
 0xad5   :  { %3683 = vmatmul.bf16.gmra.mxu1 %v3591_v52 }
 0xad8   :  { %3899 = vmatpush.bf16.msrb.mxu3 %v5244_v55 }
 0xadc   :  { %3900 = vmatpush.bf16.msrb.mxu3 %v5243_v4 }
 0xae0   :  { %3901 = vmatpush.bf16.msrb.mxu3 %v5242_v34 }
 0xb22   :  { %v3669_v26 = vpop.f32.mrf.mxu1 }
 0xb23   :  { %v3670_v42 = vadd.f32 %v5295_v59, %v3669_v26 }
 0xb25   :  { %v3689_v44 = vmul.f32 0.01, %v3670_v42 }
 0xb27   :  { %v6154_v1 = vmax.f32 %v3670_v42, %v3689_v44 }
 0xb2a   :  { %v3671_v50 = vpop.f32.mrf.mxu1 }
 0xb2b   :  { %v3672_v18 = vadd.f32 %v5295_v59, %v3671_v50 }
 0xb2d   :  { %v3690_v9 = vmul.f32 0.01, %v3672_v18 }
 0xb2f   :  { %v6156_v6 = vmax.f32 %v3672_v18, %v3690_v9 }
 0xb31   :  { %v3705_v16 = vpack.c.bf16 %v6156_v6, %v6154_v1 }
 0xb32   :  { %v3674_v36 = vpop.f32.mrf.mxu1 }
 0xb33   :  { %3785 = vmatmul.bf16.vlgmr.msrb.gmra.mxu2 %v3705_v16  ;;  %v3675_v63 = vadd.f32 %v5295_v59, %v3674_v36 }
 0xb35   :  { %v3691_v21 = vmul.f32 0.01, %v3675_v63 }
 0xb37   :  { %v6160_v14 = vmax.f32 %v3675_v63, %v3691_v21 }
 0xb3a   :  { %v3676_v12 = vpop.f32.mrf.mxu1 }
 0xb3b   :  { %v3677_v10 = vadd.f32 %v5295_v59, %v3676_v12 }
 0xb3d   :  { %v3692_v22 = vmul.f32 0.01, %v3677_v10 }
 0xb3f   :  { %v6162_v23 = vmax.f32 %v3677_v10, %v3692_v22 }
 0xb41   :  { %v3706_v24 = vpack.c.bf16 %v6162_v23, %v6160_v14 }
 0xb42   :  { %v3679_v45 = vpop.f32.mrf.mxu1 }
 0xb43   :  { %3790 = vmatmul.bf16.gmra.mxu2 %v3706_v24  ;;  %v3680_v19 = vadd.f32 %v5295_v59, %v3679_v45 }
 0xb45   :  { %v3693_v60 = vmul.f32 0.01, %v3680_v19 }
 0xb47   :  { %v6166_v58 = vmax.f32 %v3680_v19, %v3693_v60  ;;  %v5297_v19 = vld [vmem:[%s6214_s16] ss:$0 sm:$0xff] }
 0xb4a   :  { %v3681_v29 = vpop.f32.mrf.mxu1 }
 0xb4b   :  { %v3682_v20 = vadd.f32 %v5295_v59, %v3681_v29 }
 0xb4d   :  { %v3694_v11 = vmul.f32 0.01, %v3682_v20 }
 0xb4f   :  { %v6168_v8 = vmax.f32 %v3682_v20, %v3694_v11 }
 0xb51   :  { %v3707_v61 = vpack.c.bf16 %v6168_v8, %v6166_v58 }
 0xb52   :  { %v3684_v30 = vpop.f32.mrf.mxu1 }
 0xb53   :  { %3795 = vmatmul.bf16.gmra.mxu2 %v3707_v61  ;;  %v3685_v48 = vadd.f32 %v5295_v59, %v3684_v30 }
 0xb55   :  { %v3695_v57 = vmul.f32 0.01, %v3685_v48 }
 0xb57   :  { %v6172_v49 = vmax.f32 %v3685_v48, %v3695_v57  ;;  %v1130_v57 = vstv %s6215_s17  ;;  %s5563_s17 = smov [#allocation18]  }
 0xb58   :  { %1131 = vst [vmem:[#allocation18 + $0x8] sm:$0xff] %v1130_v57  ;;  %s3951_s21 = sshll.u32 %s5563_s17, 4  ;;  %s3952_s21 = int_to_ptr.vmem [resolvable:$true] %s3951_s21 }
 0xb59   :  { %1132 = vst [vmem:[#allocation18 + $0x18] sm:$0xff] %v1130_v57 }
 0xb5a   :  { %v3686_v46 = vpop.f32.mrf.mxu1  ;;  %1133 = vst [vmem:[#allocation18 + $0x28] sm:$0xff] %v1130_v57 }
 0xb5b   :  { %v3687_v33 = vadd.f32 %v5295_v59, %v3686_v46  ;;  %1134 = vst [vmem:[#allocation18 + $0x38] sm:$0xff] %v1130_v57 }
 0xb5c   :  { %1135 = vst [vmem:[#allocation18 + $0x48] sm:$0xff] %v1130_v57 }
 0xb5d   :  { %v3696_v2 = vmul.f32 0.01, %v3687_v33  ;;  %1136 = vst [vmem:[#allocation18 + $0x58] sm:$0xff] %v1130_v57 }
 0xb5e   :  { %1137 = vst [vmem:[#allocation18 + $0x68] sm:$0xff] %v1130_v57 }
 0xb5f   :  { %v6174_v37 = vmax.f32 %v3687_v33, %v3696_v2  ;;  %1138 = vst [vmem:[#allocation18 + $0x78] sm:$0xff] %v1130_v57 }
 0xb60   :  { %2067 = vst [vmem:[#allocation18 + $0x88] sm:$0xff] %v1130_v57 }
 0xb61   :  { %v3708_v54 = vpack.c.bf16 %v6174_v37, %v6172_v49  ;;  %2068 = vst [vmem:[#allocation18 + $0x98] sm:$0xff] %v1130_v57 }
 0xb62   :  { %2069 = vst [vmem:[#allocation18 + $0xa8] sm:$0xff] %v1130_v57 }
 0xb63   :  { %3800 = vmatmul.bf16.gmra.mxu2 %v3708_v54  ;;  %2070 = vst [vmem:[#allocation18 + $0xb8] sm:$0xff] %v1130_v57 }
 0xb64   :  { %2071 = vst [vmem:[#allocation18 + $0xc8] sm:$0xff] %v1130_v57 }
 0xb65   :  { %2072 = vst [vmem:[#allocation18 + $0xd8] sm:$0xff] %v1130_v57 }
 0xb66   :  { %2073 = vst [vmem:[#allocation18 + $0xe8] sm:$0xff] %v1130_v57 }
 0xb67   :  { %2074 = vst [vmem:[#allocation18 + $0xf8] sm:$0xff] %v1130_v57 }
 0xb68   :  { %3003 = vst [vmem:[#allocation18 + $0x108] sm:$0xff] %v1130_v57 }
 0xb69   :  { %3004 = vst [vmem:[#allocation18 + $0x118] sm:$0xff] %v1130_v57 }
 0xb6a   :  { %3005 = vst [vmem:[#allocation18 + $0x128] sm:$0xff] %v1130_v57 }
 0xb6b   :  { %3006 = vst [vmem:[#allocation18 + $0x138] sm:$0xff] %v1130_v57 }
 0xb6c   :  { %3007 = vst [vmem:[#allocation18 + $0x148] sm:$0xff] %v1130_v57 }
 0xb6d   :  { %3008 = vst [vmem:[#allocation18 + $0x158] sm:$0xff] %v1130_v57 }
 0xb6e   :  { %3009 = vst [vmem:[#allocation18 + $0x168] sm:$0xff] %v1130_v57 }
 0xb6f   :  { %3010 = vst [vmem:[#allocation18 + $0x178] sm:$0xff] %v1130_v57 }
 0xb70   :  { %3939 = vst [vmem:[#allocation18 + $0x188] sm:$0xff] %v1130_v57 }
 0xb71   :  { %3940 = vst [vmem:[#allocation18 + $0x198] sm:$0xff] %v1130_v57 }
 0xb72   :  { %3941 = vst [vmem:[#allocation18 + $0x1a8] sm:$0xff] %v1130_v57 }
 0xb73   :  { %3942 = vst [vmem:[#allocation18 + $0x1b8] sm:$0xff] %v1130_v57 }
 0xb74   :  { %3943 = vst [vmem:[#allocation18 + $0x1c8] sm:$0xff] %v1130_v57 }
 0xb75   :  { %3944 = vst [vmem:[#allocation18 + $0x1d8] sm:$0xff] %v1130_v57 }
 0xb76   :  { %3945 = vst [vmem:[#allocation18 + $0x1e8] sm:$0xff] %v1130_v57 }
 0xb77   :  { %3946 = vst [vmem:[#allocation18 + $0x1f8] sm:$0xff] %v1130_v57 }
 0xbb6   :  { %v3786_v25 = vpop.f32.mrf.mxu2 }
 0xbb7   :  { %v3787_v7 = vadd.f32 %v5296_v43, %v3786_v25 }
 0xbb9   :  { %v3806_v35 = vmul.f32 0.01, %v3787_v7 }
 0xbbb   :  { %v3814_v40 = vmax.f32 %v3787_v7, %v3806_v35 }
 0xbbe   :  { %v3788_v27 = vpop.f32.mrf.mxu2 }
 0xbbf   :  { %v3789_v32 = vadd.f32 %v5296_v43, %v3788_v27 }
 0xbc1   :  { %v3807_v17 = vmul.f32 0.01, %v3789_v32 }
 0xbc3   :  { %v3815_v47 = vmax.f32 %v3789_v32, %v3807_v17 }
 0xbc5   :  { %v3822_v56 = vpack.c.bf16 %v3815_v47, %v3814_v40 }
 0xbc6   :  { %v3791_v53 = vpop.f32.mrf.mxu2 }
 0xbc7   :  { %3902 = vmatmul.bf16.vlgmr.msrb.gmra.mxu3 %v3822_v56  ;;  %v3792_v62 = vadd.f32 %v5296_v43, %v3791_v53 }
 0xbc9   :  { %v3808_v13 = vmul.f32 0.01, %v3792_v62 }
 0xbcb   :  { %v3816_v52 = vmax.f32 %v3792_v62, %v3808_v13 }
 0xbce   :  { %v3793_v39 = vpop.f32.mrf.mxu2 }
 0xbcf   :  { %v3794_v38 = vadd.f32 %v5296_v43, %v3793_v39 }
 0xbd1   :  { %v3809_v31 = vmul.f32 0.01, %v3794_v38 }
 0xbd3   :  { %v3817_v51 = vmax.f32 %v3794_v38, %v3809_v31 }
 0xbd5   :  { %v3823_v5 = vpack.c.bf16 %v3817_v51, %v3816_v52 }
 0xbd6   :  { %v3796_v26 = vpop.f32.mrf.mxu2 }
 0xbd7   :  { %3907 = vmatmul.bf16.gmra.mxu3 %v3823_v5  ;;  %v3797_v59 = vadd.f32 %v5296_v43, %v3796_v26 }
 0xbd9   :  { %v3810_v50 = vmul.f32 0.01, %v3797_v59 }
 0xbdb   :  { %v3818_v9 = vmax.f32 %v3797_v59, %v3810_v50 }
 0xbde   :  { %v3798_v42 = vpop.f32.mrf.mxu2 }
 0xbdf   :  { %v3799_v44 = vadd.f32 %v5296_v43, %v3798_v42 }
 0xbe1   :  { %v3811_v18 = vmul.f32 0.01, %v3799_v44 }
 0xbe3   :  { %v3819_v16 = vmax.f32 %v3799_v44, %v3811_v18 }
 0xbe5   :  { %v3824_v36 = vpack.c.bf16 %v3819_v16, %v3818_v9 }
 0xbe6   :  { %v3801_v63 = vpop.f32.mrf.mxu2 }
 0xbe7   :  { %3912 = vmatmul.bf16.gmra.mxu3 %v3824_v36  ;;  %v3802_v12 = vadd.f32 %v5296_v43, %v3801_v63 }
 0xbe9   :  { %v3812_v10 = vmul.f32 0.01, %v3802_v12 }
 0xbeb   :  { %v3820_v45 = vmax.f32 %v3802_v12, %v3812_v10 }
 0xbee   :  { %v3803_v21 = vpop.f32.mrf.mxu2 }
 0xbef   :  { %v3804_v22 = vadd.f32 %v5296_v43, %v3803_v21 }
 0xbf1   :  { %v3813_v24 = vmul.f32 0.01, %v3804_v22 }
 0xbf3   :  { %v3821_v15 = vmax.f32 %v3804_v22, %v3813_v24 }
 0xbf5   :  { %v3825_v0 = vpack.c.bf16 %v3821_v15, %v3820_v45 }
 0xbf7   :  { %3917 = vmatmul.bf16.gmra.mxu3 %v3825_v0 }
 0xc4a   :  { %v3903_v28 = vpop.f32.mrf.mxu3 }
 0xc4b   :  { %v3904_v29 = vadd.f32 %v5297_v19, %v3903_v28 }
 0xc4d   :  { %v3923_v60 = vadd.f32 %v3904_v29, %v6154_v1 }
 0xc4f   :  { %3931 = vst [vmem:[#allocation18 + $0x180] sm:$0xff] %v3923_v60 }
 0xc52   :  { %v3905_v20 = vpop.f32.mrf.mxu3 }
 0xc53   :  { %v3906_v11 = vadd.f32 %v5297_v19, %v3905_v20 }
 0xc55   :  { %v3924_v3 = vadd.f32 %v3906_v11, %v6156_v6 }
 0xc57   :  { %3932 = vst [vmem:[#allocation18 + $0x190] sm:$0xff] %v3924_v3 }
 0xc5a   :  { %v3908_v61 = vpop.f32.mrf.mxu3 }
 0xc5b   :  { %v3909_v41 = vadd.f32 %v5297_v19, %v3908_v61 }
 0xc5d   :  { %v3925_v30 = vadd.f32 %v3909_v41, %v6160_v14 }
 0xc5f   :  { %3933 = vst [vmem:[#allocation18 + $0x1a0] sm:$0xff] %v3925_v30 }
 0xc62   :  { %v3910_v55 = vpop.f32.mrf.mxu3 }
 0xc63   :  { %v3911_v48 = vadd.f32 %v5297_v19, %v3910_v55 }
 0xc65   :  { %v3926_v46 = vadd.f32 %v3911_v48, %v6162_v23 }
 0xc67   :  { %3934 = vst [vmem:[#allocation18 + $0x1b0] sm:$0xff] %v3926_v46 }
 0xc6a   :  { %v3913_v1 = vpop.f32.mrf.mxu3 }
 0xc6b   :  { %v3914_v6 = vadd.f32 %v5297_v19, %v3913_v1 }
 0xc6d   :  { %v3927_v33 = vadd.f32 %v3914_v6, %v6166_v58 }
 0xc6f   :  { %3935 = vst [vmem:[#allocation18 + $0x1c0] sm:$0xff] %v3927_v33 }
 0xc72   :  { %v3915_v14 = vpop.f32.mrf.mxu3 }
 0xc73   :  { %v3916_v23 = vadd.f32 %v5297_v19, %v3915_v14 }
 0xc75   :  { %v3928_v2 = vadd.f32 %v3916_v23, %v6168_v8 }
 0xc77   :  { %3936 = vst [vmem:[#allocation18 + $0x1d0] sm:$0xff] %v3928_v2 }
 0xc7a   :  { %v3918_v54 = vpop.f32.mrf.mxu3 }
 0xc7b   :  { %v3919_v58 = vadd.f32 %v5297_v19, %v3918_v54 }
 0xc7d   :  { %v3929_v4 = vadd.f32 %v3919_v58, %v6172_v49 }
 0xc7f   :  { %3937 = vst [vmem:[#allocation18 + $0x1e0] sm:$0xff] %v3929_v4 }
 0xc82   :  { %v3920_v34 = vpop.f32.mrf.mxu3 }
 0xc83   :  { %v3921_v8 = vadd.f32 %v5297_v19, %v3920_v34 }
 0xc85   :  { %v3930_v25 = vadd.f32 %v3921_v8, %v6174_v37 }
 0xc87   :  { %3938 = vst [vmem:[#allocation18 + $0x1f0] sm:$0xff] %v3930_v25 }
 0xc88   :  { %3959 = dma.vmem_to_hbm [thread:$0]  %s3952_s21, 8192, %s3954_s11, [#allocation5], %s5564_s5, %s5564_s5, %s5565_s15  }
 0xc89   :  { %5548 = dma.done.wait [#allocation5], 8192  }
 0xc8a   :  { %5549 = vsyncadd [#allocation5], 4294959104 }
 0xc8b   :  { %3964 = vsyncpa [#allocation4], 1 }
 0xc8c   :  { %3965 = vsyncpa [#allocation7], 1 }
 0xc8d   :  { %3966 = vsyncpa [#allocation10], 1 }
 0xc8e   :  { %3967 = vsyncpa [#allocation13], 1 }
 0xc8f   :  { %3968 = vsyncpa [#allocation16], 1 }
 0xc90   :  { %3969 = vsyncpa [#allocation5], 1 }

</bundles_post_ra>
